<compile_context>
chip_gen: v5e
topology: v5e:2x2
jax: 0.10.0
libtpu: 0.0.40
codegen_flags: <defaults>
</compile_context>

<pallas_src>
import functools

import numpy as np
import jax
import jax.numpy as jnp
from jax import lax
from jax.experimental import pallas as pl
from jax.experimental.pallas import tpu as pltpu

# "hp" hyper-parameters referenced by the PyTorch module (fixed small values)
NUM_HIDDEN_NODES = 32
NUM_ENCODER_LAYER = 2
# TODO(synk): training-mode BatchNorm (batch statistics) and LSTM inter-layer
# dropout are not reproduced; eval-mode semantics are used instead.


def _round_up(a, b):
    return (a + b - 1) // b * b


# ----------------------------------------------------------------------------
# Pallas kernel 1: conv layer = 3 accumulated matmuls (time taps) + BN + ReLU
# ----------------------------------------------------------------------------
def conv3_kernel(x0_ref, x1_ref, x2_ref, w0_ref, w1_ref, w2_ref,
                 scale_ref, shift_ref, o_ref):
    acc = jnp.dot(x0_ref[...], w0_ref[...], preferred_element_type=jnp.float32)
    acc += jnp.dot(x1_ref[...], w1_ref[...], preferred_element_type=jnp.float32)
    acc += jnp.dot(x2_ref[...], w2_ref[...], preferred_element_type=jnp.float32)
    y = acc * scale_ref[...] + shift_ref[...]          # folded BN (eval) + bias
    o_ref[...] = jnp.maximum(y, 0.0).astype(o_ref.dtype)


def conv_layer(frames, wmats, scale_col, shift_col, w_out, tm_max=512):
    """frames: (W_in, B, CH) bf16 time-major frames (freq already padded).
    Returns (W_out, B, N) bf16 frames, N = Cout * (optionally padded) out-freq."""
    w_in, b, ch = frames.shape
    n = wmats[0].shape[1]
    # three stride-2 time-tap views (leading-dim strided slices, no gathers)
    taps = [frames[k:k + 2 * w_out:2].reshape(w_out * b, ch) for k in range(3)]
    m = w_out * b
    tm = min(tm_max, _round_up(m, 8))
    m_pad = _round_up(m, tm)
    if m_pad != m:
        taps = [jnp.pad(t, ((0, m_pad - m), (0, 0))) for t in taps]
    out = pl.pallas_call(
        conv3_kernel,
        out_shape=jax.ShapeDtypeStruct((m_pad, n), jnp.bfloat16),
        grid_spec=pltpu.PrefetchScalarGridSpec(
            num_scalar_prefetch=0,
            grid=(m_pad // tm,),
            in_specs=(
                [pl.BlockSpec((tm, ch), lambda i: (i, 0)) for _ in range(3)]
                + [pl.BlockSpec((ch, n), lambda i: (0, 0)) for _ in range(3)]
                + [pl.BlockSpec((1, n), lambda i: (0, 0)) for _ in range(2)]),
            out_specs=pl.BlockSpec((tm, n), lambda i: (i, 0)),
        ),
        compiler_params=pltpu.CompilerParams(
            dimension_semantics=("parallel",)),
    )(*taps, *wmats, scale_col, shift_col)
    return out[:m].reshape(w_out, b, n)


# ----------------------------------------------------------------------------
# Pallas kernel 2: hoisted LSTM input projection  Z = X @ [Wih_f|Wih_b] + b
# ----------------------------------------------------------------------------
def proj_kernel(x_ref, w_ref, b_ref, o_ref):
    z = jnp.dot(x_ref[...], w_ref[...], preferred_element_type=jnp.float32)
    o_ref[...] = (z + b_ref[...]).astype(o_ref.dtype)


def proj_layer(x_flat, w, b, tm_max=512):
    m, k = x_flat.shape
    n = w.shape[1]
    tm = min(tm_max, _round_up(m, 8))
    m_pad = _round_up(m, tm)
    if m_pad != m:
        x_flat = jnp.pad(x_flat, ((0, m_pad - m), (0, 0)))
    out = pl.pallas_call(
        proj_kernel,
        out_shape=jax.ShapeDtypeStruct((m_pad, n), jnp.float32),
        grid_spec=pltpu.PrefetchScalarGridSpec(
            num_scalar_prefetch=0,
            grid=(m_pad // tm,),
            in_specs=[pl.BlockSpec((tm, k), lambda i: (i, 0)),
                      pl.BlockSpec((k, n), lambda i: (0, 0)),
                      pl.BlockSpec((1, n), lambda i: (0, 0))],
            out_specs=pl.BlockSpec((tm, n), lambda i: (i, 0)),
        ),
        compiler_params=pltpu.CompilerParams(
            dimension_semantics=("parallel",)),
    )(x_flat, w, b)
    return out[:m]


# ----------------------------------------------------------------------------
# Pallas kernel 3: fused bidirectional LSTM recurrence
#   grid over time chunks ("arbitrary"); fori_loop inside the chunk;
#   only h @ Whh per step (x @ Wih precomputed as zf / zb);
#   backward direction = reversed chunk order via index_maps, no gathers.
# ----------------------------------------------------------------------------
def bilstm_kernel(zf_ref, zb_ref, len_ref, whf_ref, whb_ref,
                  of_ref, ob_ref,
                  hf_sc, cf_sc, hb_sc, cb_sc,
                  *, chunk, t_pad, hidden):
    i = pl.program_id(0)

    @pl.when(i == 0)
    def _():
        hf_sc[...] = jnp.zeros_like(hf_sc)
        cf_sc[...] = jnp.zeros_like(cf_sc)
        hb_sc[...] = jnp.zeros_like(hb_sc)
        cb_sc[...] = jnp.zeros_like(cb_sc)

    lens = len_ref[...]                       # (B, 1) int32 packed lengths
    whf = whf_ref[...]                        # (H, 4H) bf16
    whb = whb_ref[...]
    h = hidden

    def cell(z, h_prev, c_prev, m):
        # z: (B, 4H) f32, PyTorch gate order [i | f | g | o]
        sz = jax.nn.sigmoid(z)                # one full-width (4H-lane) EUP pass
        gi = sz[:, 0:h]
        gf = sz[:, h:2 * h]
        go = sz[:, 3 * h:4 * h]
        gg = jnp.tanh(z[:, 2 * h:3 * h])
        c_new = gf * c_prev + gi * gg
        h_new = go * jnp.tanh(c_new)
        # packed-sequence semantics: freeze state & zero output past length
        c_out = m * c_new + (1.0 - m) * c_prev
        h_out = m * h_new + (1.0 - m) * h_prev
        return h_out, c_out, m * h_new

    def step(s, carry):
        hf, cf, hb, cb = carry
        t = i * chunk + s                     # global forward time
        tb = t_pad - 1 - t                    # global backward time
        mf = (t < lens).astype(jnp.float32)   # (B, 1)
        mb = (tb < lens).astype(jnp.float32)

        # forward direction
        zf = zf_ref[s] + jnp.dot(hf.astype(jnp.bfloat16), whf,
                                 preferred_element_type=jnp.float32)
        hf, cf, out_f = cell(zf, hf, cf, mf)
        of_ref[s] = out_f

        # backward direction (this block is the time-reversed slice of Z)
        sb = chunk - 1 - s
        zb = zb_ref[sb] + jnp.dot(hb.astype(jnp.bfloat16), whb,
                                  preferred_element_type=jnp.float32)
        hb, cb, out_b = cell(zb, hb, cb, mb)
        ob_ref[sb] = out_b
        return hf, cf, hb, cb

    init = (hf_sc[...], cf_sc[...], hb_sc[...], cb_sc[...])
    hf, cf, hb, cb = lax.fori_loop(0, chunk, step, init,
                                   unroll=min(chunk, 8))
    hf_sc[...] = hf
    cf_sc[...] = cf
    hb_sc[...] = hb
    cb_sc[...] = cb


def bilstm_recurrence(zf, zb, lens, whh_f, whh_b, *, chunk):
    t_pad, b, g = zf.shape
    h = g // 4
    nchunks = t_pad // chunk
    kern = functools.partial(bilstm_kernel, chunk=chunk, t_pad=t_pad, hidden=h)
    return pl.pallas_call(
        kern,
        out_shape=(jax.ShapeDtypeStruct((t_pad, b, h), jnp.float32),
                   jax.ShapeDtypeStruct((t_pad, b, h), jnp.float32)),
        grid_spec=pltpu.PrefetchScalarGridSpec(
            num_scalar_prefetch=0,
            grid=(nchunks,),
            in_specs=[
                pl.BlockSpec((chunk, b, g), lambda i: (i, 0, 0)),
                pl.BlockSpec((chunk, b, g),
                             lambda i: (nchunks - 1 - i, 0, 0)),
                pl.BlockSpec((b, 1), lambda i: (0, 0)),
                pl.BlockSpec((h, g), lambda i: (0, 0)),
                pl.BlockSpec((h, g), lambda i: (0, 0)),
            ],
            out_specs=(
                pl.BlockSpec((chunk, b, h), lambda i: (i, 0, 0)),
                pl.BlockSpec((chunk, b, h),
                             lambda i: (nchunks - 1 - i, 0, 0)),
            ),
            scratch_shapes=[pltpu.VMEM((b, h), jnp.float32)
                            for _ in range(4)],
        ),
        compiler_params=pltpu.CompilerParams(
            dimension_semantics=("arbitrary",)),
    )(zf, zb, lens, whh_f, whh_b)


# ----------------------------------------------------------------------------
# Parameters: raw (PyTorch-like) init + conversion to kernel-ready layout
# ----------------------------------------------------------------------------
def init_params(key):
    hdim = NUM_HIDDEN_NODES
    eps = 1e-5
    ks = iter(jax.random.split(key, 64))

    def nrm(shape, scale=0.1):
        return scale * jax.random.normal(next(ks), shape, jnp.float32)

    p = {}
    for name, cin in (("1", 3), ("2", 32)):
        w = nrm((32, cin, 3, 3))
        bias = nrm((32,))
        gamma = 1.0 + nrm((32,))
        beta = nrm((32,))
        mean = nrm((32,))
        var = 1.0 + jnp.abs(nrm((32,)))
        s = gamma / jnp.sqrt(var + eps)           # fold eval-mode BN + conv bias
        p["w" + name] = w
        p["scale" + name] = s
        p["shift" + name] = (bias - mean) * s + beta

    # NOTE: a real PyTorch checkpoint stores weight_ih as (4H, Din) and two
    # biases (b_ih, b_hh); convert with W.T and b_ih + b_hh to this layout.
    p["lstm"] = []
    din = 640
    for _ in range(NUM_ENCODER_LAYER):
        layer = {}
        for d in ("fwd", "bwd"):
            layer[d] = (nrm((din, 4 * hdim)), nrm((hdim, 4 * hdim)),
                        nrm((1, 4 * hdim)))
        p["lstm"].append(layer)
        din = 2 * hdim
    return p


def _build_banded(w, h_in, out_pad):
    """w: (Co, Ci, 3, 3) numpy.  Returns 3 banded matrices (one per time tap)
    of shape (Ci*(h_in+2), Co*(h_out+2*out_pad)) mapping freq-padded input
    frames to (optionally freq-padded) output frames.  Stride 2, freq pad 1."""
    co_n, ci_n, _, _ = w.shape
    hp_in = h_in + 2
    h_out = (hp_in - 3) // 2 + 1
    hp_out = h_out + 2 * out_pad
    mats = []
    for kw in range(3):
        m = np.zeros((ci_n, hp_in, co_n, hp_out), np.float32)
        for kh in range(3):
            wk = np.transpose(w[:, :, kh, kw], (1, 0))        # (Ci, Co)
            for ho in range(h_out):
                m[:, 2 * ho + kh, :, ho + out_pad] += wk
        mats.append(m.reshape(ci_n * hp_in, co_n * hp_out))
    return mats, h_out, hp_out


def prepare_params(raw, freq):
    prep = {"conv": [], "lstm": []}
    h_in = freq
    for idx, out_pad in ((1, 1), (2, 0)):     # conv1 emits conv2's freq padding
        w = np.asarray(raw[f"w{idx}"], np.float32)
        s = np.asarray(raw[f"scale{idx}"], np.float32)
        sh = np.asarray(raw[f"shift{idx}"], np.float32)
        mats, h_out, hp_out = _build_banded(w, h_in, out_pad)
        co = w.shape[0]
        scale_col = np.repeat(s[:, None], hp_out, axis=1)
        shift_col = np.zeros((co, hp_out), np.float32)
        shift_col[:, out_pad:out_pad + h_out] = sh[:, None]   # pad cols stay 0
        prep["conv"].append(dict(
            wmats=[jnp.asarray(m, jnp.bfloat16) for m in mats],
            scale=jnp.asarray(scale_col.reshape(1, -1), jnp.float32),
            shift=jnp.asarray(shift_col.reshape(1, -1), jnp.float32)))
        h_in = h_out

    assert 32 * h_in == raw["lstm"][0]["fwd"][0].shape[0], \
        "conv feature dim must equal LSTM input_size"

    for layer in raw["lstm"]:
        wf, uf, bf = layer["fwd"]
        wb, ub, bb = layer["bwd"]
        prep["lstm"].append(dict(
            wih=jnp.concatenate([wf, wb], axis=1).astype(jnp.bfloat16),
            bias=jnp.concatenate([bf, bb], axis=1).astype(jnp.float32),
            whh_f=uf.astype(jnp.bfloat16),
            whh_b=ub.astype(jnp.bfloat16)))
    return prep


def compute_newlengths(lengths):
    # exact copy of the PyTorch length arithmetic (host-side, trace time)
    newlengths = []
    for xlen in np.asarray(lengths):
        xlen = int(xlen)
        q1, mod1 = divmod(xlen, 2)
        if mod1 == 0:
            xlen1 = xlen // 2 - 1
        else:
            xlen1 = (xlen - 1) // 2
        q2, mod2 = divmod(xlen1, 2)
        if mod2 == 0:
            xlen2 = xlen1 // 2 - 1
        else:
            xlen2 = (xlen1 - 1) // 2
        newlengths.append(xlen2)
    return newlengths


# ----------------------------------------------------------------------------
# Full forward
# ----------------------------------------------------------------------------
def encoder_forward(x, lengths, prep):
    bsz, t_in, c_in, freq = x.shape
    b_pad = _round_up(max(bsz, 8), 8)
    hdim = NUM_HIDDEN_NODES

    # conv1 input frames: (T, B_pad, C*(F+2)), freq pre-padded, bf16, time-major
    xp = jnp.pad(x, ((0, 0), (0, 0), (0, 0), (1, 1)))
    frames = jnp.transpose(xp, (1, 0, 2, 3)).reshape(t_in, bsz,
                                                     c_in * (freq + 2))
    frames = jnp.pad(frames, ((0, 0), (0, b_pad - bsz), (0, 0)))
    frames = frames.astype(jnp.bfloat16)

    # conv1 (+BN+ReLU) -> conv2 (+BN+ReLU), both as 3-tap Pallas matmuls
    w1 = (t_in - 3) // 2 + 1
    frames = conv_layer(frames, prep["conv"][0]["wmats"],
                        prep["conv"][0]["scale"], prep["conv"][0]["shift"], w1)
    w2 = (w1 - 3) // 2 + 1
    frames = conv_layer(frames, prep["conv"][1]["wmats"],
                        prep["conv"][1]["scale"], prep["conv"][1]["shift"], w2)
    # frames: (W2, B_pad, 640) bf16 == cnnout, already time-major for the LSTM

    # pack_padded / pad_packed bookkeeping
    newlengths = compute_newlengths(lengths)
    max_len = int(max(newlengths))
    nl = np.zeros((b_pad, 1), np.int32)
    nl[:bsz, 0] = np.asarray(newlengths, np.int32)
    nl = jnp.asarray(nl)

    chunk = min(64, _round_up(w2, 8))
    t_pad = _round_up(w2, chunk)
    feat = jnp.pad(frames, ((0, t_pad - w2), (0, 0), (0, 0)))

    out_f = out_b = None
    for lp in prep["lstm"]:
        # hoisted input projection for both directions at once (one MXU matmul)
        z = proj_layer(feat.reshape(t_pad * b_pad, feat.shape[-1]),
                       lp["wih"], lp["bias"])
        z = z.reshape(t_pad, b_pad, 8 * hdim)
        zf = z[:, :, :4 * hdim]
        zb = z[:, :, 4 * hdim:]
        out_f, out_b = bilstm_recurrence(zf, zb, nl, lp["whh_f"], lp["whh_b"],
                                         chunk=chunk)
        feat = jnp.concatenate([out_f, out_b], axis=-1).astype(jnp.bfloat16)
        # TODO(synk): inter-layer dropout skipped (eval-mode identity).

    hbatch = jnp.concatenate([out_f, out_b], axis=-1)     # (t_pad, B_pad, 2H)
    hbatch = jnp.transpose(hbatch, (1, 0, 2))[:bsz, :max_len]
    return hbatch


if __name__ == "__main__":
    B, T_in, C_in, F_in = 2, 16, 3, 80   # F=80 -> 32*20 = 640 = LSTM input_size
    key = jax.random.PRNGKey(0)
    kx, kp = jax.random.split(key)
    x = jax.random.normal(kx, (B, T_in, C_in, F_in), jnp.float32)
    lengths = np.array([16, 14], dtype=np.int32)      # sorted descending
    raw = init_params(kp)
    params = prepare_params(raw, F_in)

    out = encoder_forward(x, lengths, params)
    out = jax.block_until_ready(out)
    assert out.shape == (B, 3, 2 * NUM_HIDDEN_NODES), out.shape
    # pad_packed semantics: batch element 1 has newlength 2 -> frame 2 is zero
    assert float(jnp.max(jnp.abs(out[1, 2]))) == 0.0
    print("KERNEL_OK")
</pallas_src>

<mosaic_0001>
module attributes {stable_mosaic.version = 11 : i64} {
  func.func @conv3_kernel(%arg0: i32, %arg1: memref<56x246xbf16, #tpu.memory_space<vmem>>, %arg2: memref<56x246xbf16, #tpu.memory_space<vmem>>, %arg3: memref<56x246xbf16, #tpu.memory_space<vmem>>, %arg4: memref<246x1344xbf16, #tpu.memory_space<vmem>>, %arg5: memref<246x1344xbf16, #tpu.memory_space<vmem>>, %arg6: memref<246x1344xbf16, #tpu.memory_space<vmem>>, %arg7: memref<1x1344xf32, #tpu.memory_space<vmem>>, %arg8: memref<1x1344xf32, #tpu.memory_space<vmem>>, %arg9: memref<56x1344xbf16, #tpu.memory_space<vmem>>) attributes {dimension_semantics = [#tpu.dimension_semantics<parallel>], iteration_bounds = array<i64: 1>, scalar_prefetch = 0 : i64, scratch_operands = 0 : i64, tpu.core_type = #tpu.core_type<tc>, window_params = [{transform_indices = @transform_0, window_bounds = array<i64: 56, 246>}, {transform_indices = @transform_1, window_bounds = array<i64: 56, 246>}, {transform_indices = @transform_2, window_bounds = array<i64: 56, 246>}, {pipeline_mode = #tpu.pipeline_mode<synchronous>, transform_indices = @transform_3, window_bounds = array<i64: 246, 1344>}, {pipeline_mode = #tpu.pipeline_mode<synchronous>, transform_indices = @transform_4, window_bounds = array<i64: 246, 1344>}, {pipeline_mode = #tpu.pipeline_mode<synchronous>, transform_indices = @transform_5, window_bounds = array<i64: 246, 1344>}, {pipeline_mode = #tpu.pipeline_mode<synchronous>, transform_indices = @transform_6, window_bounds = array<i64: 1, 1344>}, {pipeline_mode = #tpu.pipeline_mode<synchronous>, transform_indices = @transform_7, window_bounds = array<i64: 1, 1344>}, {transform_indices = @transform_8, window_bounds = array<i64: 56, 1344>}]} {
    %c0 = arith.constant 0 : index
    %c0_0 = arith.constant 0 : index
    %0 = vector.load %arg1[%c0, %c0_0] : memref<56x246xbf16, #tpu.memory_space<vmem>>, vector<56x246xbf16>
    %c0_1 = arith.constant 0 : index
    %c0_2 = arith.constant 0 : index
    %1 = vector.load %arg4[%c0_1, %c0_2] : memref<246x1344xbf16, #tpu.memory_space<vmem>>, vector<246x1344xbf16>
    %cst = arith.constant dense<0.000000e+00> : vector<56x1344xf32>
    %2 = tpu.matmul %0, %1, %cst {dimension_numbers = #tpu.dot_dimension_numbers<[1], [0], [0], [1], [0, 0, 1, 1], [], []>} : vector<56x246xbf16>, vector<246x1344xbf16>, vector<56x1344xf32> -> vector<56x1344xf32>
    %c0_3 = arith.constant 0 : index
    %c0_4 = arith.constant 0 : index
    %3 = vector.load %arg2[%c0_3, %c0_4] : memref<56x246xbf16, #tpu.memory_space<vmem>>, vector<56x246xbf16>
    %c0_5 = arith.constant 0 : index
    %c0_6 = arith.constant 0 : index
    %4 = vector.load %arg5[%c0_5, %c0_6] : memref<246x1344xbf16, #tpu.memory_space<vmem>>, vector<246x1344xbf16>
    %cst_7 = arith.constant dense<0.000000e+00> : vector<56x1344xf32>
    %5 = tpu.matmul %3, %4, %cst_7 {dimension_numbers = #tpu.dot_dimension_numbers<[1], [0], [0], [1], [0, 0, 1, 1], [], []>} : vector<56x246xbf16>, vector<246x1344xbf16>, vector<56x1344xf32> -> vector<56x1344xf32>
    %6 = arith.addf %2, %5 : vector<56x1344xf32>
    %c0_8 = arith.constant 0 : index
    %c0_9 = arith.constant 0 : index
    %7 = vector.load %arg3[%c0_8, %c0_9] : memref<56x246xbf16, #tpu.memory_space<vmem>>, vector<56x246xbf16>
    %c0_10 = arith.constant 0 : index
    %c0_11 = arith.constant 0 : index
    %8 = vector.load %arg6[%c0_10, %c0_11] : memref<246x1344xbf16, #tpu.memory_space<vmem>>, vector<246x1344xbf16>
    %cst_12 = arith.constant dense<0.000000e+00> : vector<56x1344xf32>
    %9 = tpu.matmul %7, %8, %cst_12 {dimension_numbers = #tpu.dot_dimension_numbers<[1], [0], [0], [1], [0, 0, 1, 1], [], []>} : vector<56x246xbf16>, vector<246x1344xbf16>, vector<56x1344xf32> -> vector<56x1344xf32>
    %10 = arith.addf %6, %9 : vector<56x1344xf32>
    %c0_13 = arith.constant 0 : index
    %c0_14 = arith.constant 0 : index
    %11 = vector.load %arg7[%c0_13, %c0_14] : memref<1x1344xf32, #tpu.memory_space<vmem>>, vector<1x1344xf32>
    %12 = vector.broadcast %11 : vector<1x1344xf32> to vector<56x1344xf32>
    %13 = arith.mulf %10, %12 : vector<56x1344xf32>
    %c0_15 = arith.constant 0 : index
    %c0_16 = arith.constant 0 : index
    %14 = vector.load %arg8[%c0_15, %c0_16] : memref<1x1344xf32, #tpu.memory_space<vmem>>, vector<1x1344xf32>
    %15 = vector.broadcast %14 : vector<1x1344xf32> to vector<56x1344xf32>
    %16 = arith.addf %13, %15 : vector<56x1344xf32>
    %cst_17 = arith.constant 0.000000e+00 : f32
    %17 = vector.broadcast %cst_17 : f32 to vector<56x1344xf32>
    %18 = arith.maximumf %16, %17 : vector<56x1344xf32>
    %19 = arith.truncf %18 : vector<56x1344xf32> to vector<56x1344xbf16>
    %c0_18 = arith.constant 0 : index
    %c0_19 = arith.constant 0 : index
    %20 = vector.load %arg9[%c0_18, %c0_19] : memref<56x1344xbf16, #tpu.memory_space<vmem>>, vector<56x1344xbf16>
    tpu.vector_store %arg9[%c0_18, %c0_19], %19 {strides = array<i32>} : memref<56x1344xbf16, #tpu.memory_space<vmem>>, vector<56x1344xbf16>,
    return
  }
  func.func @transform_0(%arg0: i32) -> (i32, i32) {
    %c0_i32 = arith.constant 0 : i32
    %c0_i32_0 = arith.constant 0 : i32
    return %arg0, %c0_i32 : i32, i32
  }
  func.func @transform_1(%arg0: i32) -> (i32, i32) {
    %c0_i32 = arith.constant 0 : i32
    %c0_i32_0 = arith.constant 0 : i32
    return %arg0, %c0_i32 : i32, i32
  }
  func.func @transform_2(%arg0: i32) -> (i32, i32) {
    %c0_i32 = arith.constant 0 : i32
    %c0_i32_0 = arith.constant 0 : i32
    return %arg0, %c0_i32 : i32, i32
  }
  func.func @transform_3(%arg0: i32) -> (i32, i32) {
    %c0_i32 = arith.constant 0 : i32
    %c0_i32_0 = arith.constant 0 : i32
    %c0_i32_1 = arith.constant 0 : i32
    return %c0_i32, %c0_i32_0 : i32, i32
  }
  func.func @transform_4(%arg0: i32) -> (i32, i32) {
    %c0_i32 = arith.constant 0 : i32
    %c0_i32_0 = arith.constant 0 : i32
    %c0_i32_1 = arith.constant 0 : i32
    return %c0_i32, %c0_i32_0 : i32, i32
  }
  func.func @transform_5(%arg0: i32) -> (i32, i32) {
    %c0_i32 = arith.constant 0 : i32
    %c0_i32_0 = arith.constant 0 : i32
    %c0_i32_1 = arith.constant 0 : i32
    return %c0_i32, %c0_i32_0 : i32, i32
  }
  func.func @transform_6(%arg0: i32) -> (i32, i32) {
    %c0_i32 = arith.constant 0 : i32
    %c0_i32_0 = arith.constant 0 : i32
    %c0_i32_1 = arith.constant 0 : i32
    return %c0_i32, %c0_i32_0 : i32, i32
  }
  func.func @transform_7(%arg0: i32) -> (i32, i32) {
    %c0_i32 = arith.constant 0 : i32
    %c0_i32_0 = arith.constant 0 : i32
    %c0_i32_1 = arith.constant 0 : i32
    return %c0_i32, %c0_i32_0 : i32, i32
  }
  func.func @transform_8(%arg0: i32) -> (i32, i32) {
    %c0_i32 = arith.constant 0 : i32
    %c0_i32_0 = arith.constant 0 : i32
    return %arg0, %c0_i32 : i32, i32
  }
}

</mosaic_0001>

<bundles_post_ra>
// kernel: tpu_custom_call.1
= control target key start
LH: loop header
LB: loop body
LE: loop exit
PB: predicated region body
PF: predicated region fallthrough
CT: control target
= control target key end

     0   :  { %vm1330_vm0 = vcmask 1042432   ;;  %vm1317_vm1 = vcmask 965632   ;;  %s13019_s0 = inlined_call_operand.vmem [shape: bf16[56,246], index: 0, kind: input, shape index: {}]   ;;  %s13020_s1 = inlined_call_operand.vmem [shape: bf16[56,246], index: 1, kind: input, shape index: {}]   ;;  %s13021_s2 = inlined_call_operand.vmem [shape: bf16[56,246], index: 2, kind: input, shape index: {}]   ;;  %s13022_s3 = inlined_call_operand.vmem [shape: bf16[246,1344], index: 3, kind: input, shape index: {}]   ;;  %s13023_s4 = inlined_call_operand.vmem [shape: bf16[246,1344], index: 4, kind: input, shape index: {}]   ;;  %s13024_s5 = inlined_call_operand.vmem [shape: bf16[246,1344], index: 5, kind: input, shape index: {}]   ;;  %s13025_s6 = inlined_call_operand.vmem [shape: f32[1,1344], index: 6, kind: input, shape index: {}]   ;;  %s13026_s7 = inlined_call_operand.vmem [shape: f32[1,1344], index: 7, kind: input, shape index: {}]   ;;  %s13027_s8 = inlined_call_operand.hbm [shape: bf16[56,1344], index: 8, kind: output, shape index: {}]  }
   0x1   :  { %v6094_v0 = vld [vmem:[%s13023_s4 + $0x268] sm:$0xf]  ;;  %v8203_v1 = vld [vmem:[%s13023_s4 + $0x290] sm:$0xf0]  ;;  %v6050_v5 = vld [vmem:[%s13023_s4 + $0x210] sm:$0xf] }
   0x2   :  { %v8561_v2 = vld [vmem:[%s13023_s4 + $0x528] sm:$0x77]  ;;  %v6095_v3 = vor.u32 %v8203_v1, %v6094_v0  ;;  %v8192_v6 = vld [vmem:[%s13023_s4 + $0x238] sm:$0xf0]  ;;  %v6402_v9 = vld [vmem:[%s13023_s4 + $0x4d0] sm:$0xf] }
   0x3   :  { %v965_v4 = vunpack.c.l.b16 %v8561_v2  ;;  %v6051_v8 = vor.u32 %v8192_v6, %v6050_v5  ;;  %v8280_v10 = vld [vmem:[%s13023_s4 + $0x4f8] sm:$0xf0]  ;;  %v6006_v11 = vld [vmem:[%s13023_s4 + $0x1b8] sm:$0xf]  ;;  %v8181_v12 = vld [vmem:[%s13023_s4 + $0x1e0] sm:$0xf0]  ;;  %v966_v49 = vunpack.c.h.b16 %v8561_v2 }
   0x4   :  { %1364 = vmatpush.bf16.msra.mxu0 %v6095_v3  ;;  %8457 = vmatpush.bf16.msra.mxu2 %v6095_v3  ;;  %v6403_v14 = vor.u32 %v8280_v10, %v6402_v9  ;;  %v6007_v15 = vor.u32 %v8181_v12, %v6006_v11  ;;  %v6358_v16 = vld [vmem:[%s13023_s4 + $0x478] sm:$0xf]  ;;  %v8269_v17 = vld [vmem:[%s13023_s4 + $0x4a0] sm:$0xf0]  ;;  %v5962_v18 = vld [vmem:[%s13023_s4 + $0x160] sm:$0xf] }
   0x5   :  { %v1141_v7 = vpack.c.b16 %v965_v4, %v965_v4  ;;  %v8170_v19 = vld [vmem:[%s13023_s4 + $0x188] sm:$0xf0]  ;;  %v6359_v20 = vor.u32 %v8269_v17, %v6358_v16  ;;  %v6314_v22 = vld [vmem:[%s13023_s4 + $0x420] sm:$0xf]  ;;  %v5918_v24 = vld [vmem:[%s13023_s4 + $0x108] sm:$0xf]  ;;  %v1142_v62 = vpack.c.b16 %v966_v49, %v966_v49 }
   0x6   :  { %v5963_v21 = vor.u32 %v8170_v19, %v5962_v18  ;;  %v8258_v23 = vld [vmem:[%s13023_s4 + $0x448] sm:$0xf0]  ;;  %v8159_v25 = vld [vmem:[%s13023_s4 + $0x130] sm:$0xf0]  ;;  %v6270_v28 = vld [vmem:[%s13023_s4 + $0x3c8] sm:$0xf] }
   0x7   :  { %v1332_v13 = vsel %vm1330_vm0, %v1141_v7, 0  ;;  %v6315_v26 = vor.u32 %v8258_v23, %v6314_v22  ;;  %v5919_v27 = vor.u32 %v8159_v25, %v5918_v24  ;;  %v8247_v29 = vld [vmem:[%s13023_s4 + $0x3f0] sm:$0xf0]  ;;  %v5874_v30 = vld [vmem:[%s13023_s4 + $0xb0] sm:$0xf] }
   0x8   :  { %1392 = vmatpush.bf16.msra.mxu1 %v1332_v13  ;;  %8465 = vmatpush.bf16.msra.mxu3 %v1332_v13  ;;  %v8148_v31 = vld [vmem:[%s13023_s4 + $0xd8] sm:$0xf0]  ;;  %v6271_v32 = vor.u32 %v8247_v29, %v6270_v28  ;;  %v6226_v34 = vld [vmem:[%s13023_s4 + $0x370] sm:$0xf]  ;;  %v5830_v36 = vld [vmem:[%s13023_s4 + $0x58] sm:$0xf] }
   0x9   :  { %1365 = vmatpush.bf16.msra.mxu0 %v6051_v8  ;;  %8458 = vmatpush.bf16.msra.mxu2 %v6051_v8  ;;  %v5875_v33 = vor.u32 %v8148_v31, %v5874_v30  ;;  %v8236_v35 = vld [vmem:[%s13023_s4 + $0x398] sm:$0xf0]  ;;  %v8137_v37 = vld [vmem:[%s13023_s4 + $0x80] sm:$0xf0]  ;;  %v8634_v39 = vld [vmem:[%s13023_s4 + $0x530] sm:$0x77] }
   0xa   :  { %v6227_v38 = vor.u32 %v8236_v35, %v6226_v34  ;;  %v5831_v40 = vor.u32 %v8137_v37, %v5830_v36  ;;  %v6182_v41 = vld [vmem:[%s13023_s4 + $0x318] sm:$0xf]  ;;  %v8225_v42 = vld [vmem:[%s13023_s4 + $0x340] sm:$0xf0]  ;;  %v5786_v43 = vld [vmem:[%s13023_s4] sm:$0xf]  ;;  %v967_v50 = vunpack.c.l.b16 %v8634_v39 }
   0xb   :  { %v8126_v44 = vld [vmem:[%s13023_s4 + $0x28] sm:$0xf0]  ;;  %v6096_v46 = vld [vmem:[%s13023_s4 + $0x294] sm:$0xf0]  ;;  %v6102_v47 = vld [vmem:[%s13023_s4 + $0x270] sm:$0xf]  ;;  %v6183_v51 = vor.u32 %v8225_v42, %v6182_v41 }
   0xc   :  { %1393 = vmatpush.bf16.msra.mxu1 %v6403_v14  ;;  %8466 = vmatpush.bf16.msra.mxu3 %v6403_v14  ;;  %v8198_v45 = vld [vmem:[%s13023_s4 + $0x26c] sm:$0xf]  ;;  %v8204_v48 = vld [vmem:[%s13023_s4 + $0x298] sm:$0xf0]  ;;  %v5762_v52 = vld [vmem:[%s13020_s1] sm:$0xf]  ;;  %v5787_v53 = vor.u32 %v8126_v44, %v5786_v43  ;;  %v1143_v63 = vpack.c.b16 %v967_v50, %v967_v50 }
   0xd   :  { %1366 = vmatpush.bf16.msra.mxu0 %v6007_v15  ;;  %8459 = vmatpush.bf16.msra.mxu2 %v6007_v15  ;;  %v8116_v54 = vld [vmem:[%s13020_s1 + $0x4] sm:$0xf0]  ;;  %v5778_v55 = vld [vmem:[%s13020_s1 + $0x20] sm:$0xf]  ;;  %v8214_v58 = vld [vmem:[%s13023_s4 + $0x2e8] sm:$0xf0]  ;;  %v6099_v59 = vor.u32 %v8198_v45, %v6096_v46  ;;  %v6103_v60 = vor.u32 %v8204_v48, %v6102_v47 }
   0xe   :  { %v8120_v56 = vld [vmem:[%s13020_s1 + $0x24] sm:$0xf0]  ;;  %v6138_v57 = vld [vmem:[%s13023_s4 + $0x2c0] sm:$0xf]  ;;  %v8115_v61 = vld [vmem:[%s13020_s1 + $0x4] sm:$0xf]  ;;  %v8686_v1 = vor.u32 %v8116_v54, %v5762_v52 }
   0xf   :  { %v8187_v0 = vld [vmem:[%s13023_s4 + $0x214] sm:$0xf]  ;;  %v8688_v2 = vor.u32 %v8120_v56, %v5778_v55  ;;  %v6052_v3 = vld [vmem:[%s13023_s4 + $0x23c] sm:$0xf0]  ;;  %v6058_v4 = vld [vmem:[%s13023_s4 + $0x218] sm:$0xf]  ;;  %v6139_v6 = vor.u32 %v8214_v58, %v6138_v57 }
  0x10   :  { %1394 = vmatpush.bf16.msra.mxu1 %v6359_v20  ;;  %8467 = vmatpush.bf16.msra.mxu3 %v6359_v20  ;;  %v8193_v5 = vld [vmem:[%s13023_s4 + $0x240] sm:$0xf0]  ;;  %v5764_v7 = vld [vmem:[%s13020_s1 + $0x8] sm:$0xf0]  ;;  %v8275_v10 = vld [vmem:[%s13023_s4 + $0x4d4] sm:$0xf]  ;;  %v6055_v15 = vor.u32 %v8187_v0, %v6052_v3 }
  0x11   :  { %1367 = vmatpush.bf16.msra.mxu0 %v5963_v21  ;;  %8460 = vmatpush.bf16.msra.mxu2 %v5963_v21  ;;  %v8119_v8 = vld [vmem:[%s13020_s1 + $0x24] sm:$0xf]  ;;  %v5780_v9 = vld [vmem:[%s13020_s1 + $0x28] sm:$0xf0]  ;;  %v6404_v11 = vld [vmem:[%s13023_s4 + $0x4fc] sm:$0xf0]  ;;  %v6059_v16 = vor.u32 %v8193_v5, %v6058_v4  ;;  %v8727_v19 = vor.u32 %v8115_v61, %v5764_v7 }
  0x12   :  { %v6410_v12 = vld [vmem:[%s13023_s4 + $0x4d8] sm:$0xf]  ;;  %v1335_v13 = vsel %vm1330_vm0, %v1142_v62, 0  ;;  %v1338_v14 = vsel %vm1330_vm0, %v1143_v63, 0  ;;  %v8281_v17 = vld [vmem:[%s13023_s4 + $0x500] sm:$0xf0]  ;;  %v8729_v20 = vor.u32 %v8119_v8, %v5780_v9  ;;  %v6407_v24 = vor.u32 %v8275_v10, %v6404_v11 }
  0x13   :  { %v8176_v18 = vld [vmem:[%s13023_s4 + $0x1bc] sm:$0xf]  ;;  %v6008_v21 = vld [vmem:[%s13023_s4 + $0x1e4] sm:$0xf0]  ;;  %v6014_v22 = vld [vmem:[%s13023_s4 + $0x1c0] sm:$0xf]  ;;  %v6411_v25 = vor.u32 %v8281_v17, %v6410_v12 }
  0x14   :  { %1395 = vmatpush.bf16.msra.mxu1 %v6315_v26  ;;  %8468 = vmatpush.bf16.msra.mxu3 %v6315_v26  ;;  %v8182_v23 = vld [vmem:[%s13023_s4 + $0x1e8] sm:$0xf0]  ;;  %v8264_v26 = vld [vmem:[%s13023_s4 + $0x47c] sm:$0xf] }
  0x15   :  { %1368 = vmatpush.bf16.msra.mxu0 %v5919_v27  ;;  %8461 = vmatpush.bf16.msra.mxu2 %v5919_v27  ;;  %v6360_v27 = vld [vmem:[%s13023_s4 + $0x4a4] sm:$0xf0] }
  0x18   :  { %1396 = vmatpush.bf16.msra.mxu1 %v6271_v32  ;;  %8469 = vmatpush.bf16.msra.mxu3 %v6271_v32 }
  0x19   :  { %1369 = vmatpush.bf16.msra.mxu0 %v5875_v33  ;;  %8462 = vmatpush.bf16.msra.mxu2 %v5875_v33 }
  0x1c   :  { %1397 = vmatpush.bf16.msra.mxu1 %v6227_v38  ;;  %8470 = vmatpush.bf16.msra.mxu3 %v6227_v38 }
  0x1d   :  { %1370 = vmatpush.bf16.msra.mxu0 %v5831_v40  ;;  %8463 = vmatpush.bf16.msra.mxu2 %v5831_v40 }
  0x20   :  { %1398 = vmatpush.bf16.msra.mxu1 %v6183_v51  ;;  %8471 = vmatpush.bf16.msra.mxu3 %v6183_v51 }
  0x21   :  { %1371 = vmatpush.bf16.msra.mxu0 %v5787_v53  ;;  %8464 = vmatpush.bf16.msra.mxu2 %v5787_v53 }
  0x24   :  { %1372 = vmatmul.bf16.vlgmr.msra.gmra.mxu0 %v8686_v1  ;;  %1382 = vmatmul.bf16.vlgmr.msra.gmra.mxu2 %v8688_v2 }
  0x25   :  { %1420 = vmatpush.bf16.msrb.mxu2 %v6099_v59  ;;  %1476 = vmatpush.bf16.msrb.mxu0 %v6103_v60 }
  0x26   :  { %1399 = vmatpush.bf16.msra.mxu1 %v6139_v6  ;;  %8472 = vmatpush.bf16.msra.mxu3 %v6139_v6 }
  0x2a   :  { %1448 = vmatpush.bf16.msrb.mxu3 %v1335_v13  ;;  %1504 = vmatpush.bf16.msrb.mxu1 %v1338_v14 }
  0x2b   :  { %13 = vsyncpa [#allocation3], 0  ;;  %1421 = vmatpush.bf16.msrb.mxu2 %v6055_v15  ;;  %1477 = vmatpush.bf16.msrb.mxu0 %v6059_v16  ;;  %v6011_v28 = vor.u32 %v8176_v18, %v6008_v21  ;;  %v6015_v29 = vor.u32 %v8182_v23, %v6014_v22  ;;  %v6366_v30 = vld [vmem:[%s13023_s4 + $0x480] sm:$0xf]  ;;  %v8270_v31 = vld [vmem:[%s13023_s4 + $0x4a8] sm:$0xf0]  ;;  %v6363_v37 = vor.u32 %v8264_v26, %v6360_v27 }
  0x2c   :  { %v8165_v32 = vld [vmem:[%s13023_s4 + $0x164] sm:$0xf]  ;;  %6444 = vmatmul.msk.bf16.vlgmr.msra.gmra.mxu1 %vm1317_vm1, %v8727_v19  ;;  %6446 = vmatmul.msk.bf16.vlgmr.msra.gmra.mxu3 %vm1317_vm1, %v8729_v20  ;;  %v5964_v33 = vld [vmem:[%s13023_s4 + $0x18c] sm:$0xf0]  ;;  %v5970_v34 = vld [vmem:[%s13023_s4 + $0x168] sm:$0xf]  ;;  %v6367_v38 = vor.u32 %v8270_v31, %v6366_v30 }
  0x2d   :  { %v8171_v35 = vld [vmem:[%s13023_s4 + $0x190] sm:$0xf0]  ;;  %v8253_v40 = vld [vmem:[%s13023_s4 + $0x424] sm:$0xf]  ;;  %v6316_v41 = vld [vmem:[%s13023_s4 + $0x44c] sm:$0xf0]  ;;  %v5967_v42 = vor.u32 %v8165_v32, %v5964_v33 }
  0x2e   :  { %v229_v36 = vld [vmem:[%s13020_s1 + $0x30] sm:$0xff]  ;;  %1449 = vmatpush.bf16.msrb.mxu3 %v6407_v24  ;;  %1505 = vmatpush.bf16.msrb.mxu1 %v6411_v25  ;;  %v5971_v43 = vor.u32 %v8171_v35, %v5970_v34  ;;  %v6322_v44 = vld [vmem:[%s13023_s4 + $0x428] sm:$0xf]  ;;  %v8154_v46 = vld [vmem:[%s13023_s4 + $0x10c] sm:$0xf]  ;;  %v6319_v53 = vor.u32 %v8253_v40, %v6316_v41  ;;  %v968_v35 = vunpack.c.h.b16 %v8634_v39  ;;  %vm5704_vm2 = vcmask 519168  }
  0x2f   :  { %1422 = vmatpush.bf16.msrb.mxu2 %v6011_v28  ;;  %1478 = vmatpush.bf16.msrb.mxu0 %v6015_v29  ;;  %v8259_v45 = vld [vmem:[%s13023_s4 + $0x450] sm:$0xf0]  ;;  %v435_v47 = vunpack.c.l.b16 %v229_v36  ;;  %v5920_v48 = vld [vmem:[%s13023_s4 + $0x134] sm:$0xf0]  ;;  %v5926_v49 = vld [vmem:[%s13023_s4 + $0x110] sm:$0xf]  ;;  %v436_v0 = vunpack.c.h.b16 %v229_v36 }
  0x30   :  { %v8160_v50 = vld [vmem:[%s13023_s4 + $0x138] sm:$0xf0]  ;;  %v5770_v51 = vld [vmem:[%s13020_s1 + $0x10] sm:$0xf]  ;;  %v8118_v52 = vld [vmem:[%s13020_s1 + $0x14] sm:$0xf0]  ;;  %v6323_v54 = vor.u32 %v8259_v45, %v6322_v44  ;;  %v5923_v57 = vor.u32 %v8154_v46, %v5920_v48 }
  0x31   :  { %v8242_v55 = vld [vmem:[%s13023_s4 + $0x3cc] sm:$0xf]  ;;  %v6272_v56 = vld [vmem:[%s13023_s4 + $0x3f4] sm:$0xf0]  ;;  %v5927_v58 = vor.u32 %v8160_v50, %v5926_v49  ;;  %v6278_v59 = vld [vmem:[%s13023_s4 + $0x3d0] sm:$0xf]  ;;  %v8816_v62 = vor.u32 %v8118_v52, %v5770_v51  ;;  %v8818_v63 = vpack.c.b16 %v435_v47, %v435_v47  ;;  %v8854_v18 = vpack.c.b16 %v436_v0, %v436_v0 }
  0x32   :  { %1450 = vmatpush.bf16.msrb.mxu3 %v6363_v37  ;;  %1506 = vmatpush.bf16.msrb.mxu1 %v6367_v38  ;;  %v8248_v60 = vld [vmem:[%s13023_s4 + $0x3f8] sm:$0xf0]  ;;  %v8143_v61 = vld [vmem:[%s13023_s4 + $0xb4] sm:$0xf]  ;;  %v5876_v3 = vld [vmem:[%s13023_s4 + $0xdc] sm:$0xf0]  ;;  %v6275_v8 = vor.u32 %v8242_v55, %v6272_v56  ;;  %v1144_v52 = vpack.c.b16 %v968_v35, %v968_v35 }
  0x33   :  { %1423 = vmatpush.bf16.msrb.mxu2 %v5967_v42  ;;  %1479 = vmatpush.bf16.msrb.mxu0 %v5971_v43  ;;  %v5882_v4 = vld [vmem:[%s13023_s4 + $0xb8] sm:$0xf]  ;;  %v8149_v5 = vld [vmem:[%s13023_s4 + $0xe0] sm:$0xf0]  ;;  %v8117_v6 = vld [vmem:[%s13020_s1 + $0x14] sm:$0xf]  ;;  %v6279_v9 = vor.u32 %v8248_v60, %v6278_v59  ;;  %v5879_v12 = vor.u32 %v8143_v61, %v5876_v3 }
  0x34   :  { %v5772_v7 = vld [vmem:[%s13020_s1 + $0x18] sm:$0xf0]  ;;  %v8231_v10 = vld [vmem:[%s13023_s4 + $0x374] sm:$0xf]  ;;  %v6228_v11 = vld [vmem:[%s13023_s4 + $0x39c] sm:$0xf0]  ;;  %v5883_v13 = vor.u32 %v8149_v5, %v5882_v4  ;;  %1377 = vmatmul.bf16.gmra.mxu0 %v8816_v62  ;;  %1387 = vmatmul.bf16.gmra.mxu2 %v8818_v63 }
  0x35   :  { %v6234_v14 = vld [vmem:[%s13023_s4 + $0x378] sm:$0xf]  ;;  %v8237_v15 = vld [vmem:[%s13023_s4 + $0x3a0] sm:$0xf0]  ;;  %v8132_v16 = vld [vmem:[%s13023_s4 + $0x5c] sm:$0xf]  ;;  %v8852_v17 = vor.u32 %v8117_v6, %v5772_v7  ;;  %v6231_v25 = vor.u32 %v8231_v10, %v6228_v11 }
  0x36   :  { %1451 = vmatpush.bf16.msrb.mxu3 %v6319_v53  ;;  %1507 = vmatpush.bf16.msrb.mxu1 %v6323_v54  ;;  %v5832_v21 = vld [vmem:[%s13023_s4 + $0x84] sm:$0xf0]  ;;  %v5838_v22 = vld [vmem:[%s13023_s4 + $0x60] sm:$0xf]  ;;  %v8138_v23 = vld [vmem:[%s13023_s4 + $0x88] sm:$0xf0]  ;;  %v6235_v26 = vor.u32 %v8237_v15, %v6234_v14 }
  0x37   :  { %1424 = vmatpush.bf16.msrb.mxu2 %v5923_v57  ;;  %1480 = vmatpush.bf16.msrb.mxu0 %v5927_v58  ;;  %v8868_v24 = vld [vmem:[%s13023_s4 + $0x538] sm:$0x77]  ;;  %v6184_v28 = vld [vmem:[%s13023_s4 + $0x344] sm:$0xf0]  ;;  %v6190_v29 = vld [vmem:[%s13023_s4 + $0x320] sm:$0xf]  ;;  %v5835_v30 = vor.u32 %v8132_v16, %v5832_v21  ;;  %v5839_v31 = vor.u32 %v8138_v23, %v5838_v22 }
  0x38   :  { %v8220_v27 = vld [vmem:[%s13023_s4 + $0x31c] sm:$0xf]  ;;  %v8226_v32 = vld [vmem:[%s13023_s4 + $0x348] sm:$0xf0]  ;;  %v8121_v33 = vld [vmem:[%s13023_s4 + $0x4] sm:$0xf]  ;;  %v969_v39 = vunpack.c.l.b16 %v8868_v24 }
  0x39   :  { %v5788_v34 = vld [vmem:[%s13023_s4 + $0x2c] sm:$0xf0]  ;;  %v5794_v36 = vld [vmem:[%s13023_s4 + $0x8] sm:$0xf]  ;;  %v8127_v37 = vld [vmem:[%s13023_s4 + $0x30] sm:$0xf0]  ;;  %v6187_v43 = vor.u32 %v8220_v27, %v6184_v28  ;;  %v6191_v44 = vor.u32 %v8226_v32, %v6190_v29 }
  0x3a   :  { %1452 = vmatpush.bf16.msrb.mxu3 %v6275_v8  ;;  %1508 = vmatpush.bf16.msrb.mxu1 %v6279_v9  ;;  %v8199_v38 = vld [vmem:[%s13023_s4 + $0x274] sm:$0xf]  ;;  %v6104_v40 = vld [vmem:[%s13023_s4 + $0x29c] sm:$0xf0]  ;;  %v6110_v41 = vld [vmem:[%s13023_s4 + $0x278] sm:$0xf]  ;;  %v5791_v46 = vor.u32 %v8121_v33, %v5788_v34  ;;  %v5795_v47 = vor.u32 %v8127_v37, %v5794_v36  ;;  %v1145_v54 = vpack.c.b16 %v969_v39, %v969_v39 }
  0x3b   :  { %1425 = vmatpush.bf16.msrb.mxu2 %v5879_v12  ;;  %1481 = vmatpush.bf16.msrb.mxu0 %v5883_v13  ;;  %v8205_v42 = vld [vmem:[%s13023_s4 + $0x2a0] sm:$0xf0]  ;;  %v6140_v48 = vld [vmem:[%s13023_s4 + $0x2ec] sm:$0xf0]  ;;  %v6146_v49 = vld [vmem:[%s13023_s4 + $0x2c8] sm:$0xf]  ;;  %v6107_v51 = vor.u32 %v8199_v38, %v6104_v40 }
  0x3c   :  { %6445 = vmatmul.msk.bf16.gmra.mxu1 %vm1317_vm1, %v8852_v17  ;;  %6447 = vmatmul.msk.bf16.gmra.mxu3 %vm1317_vm1, %v8854_v18  ;;  %v8209_v45 = vld [vmem:[%s13023_s4 + $0x2c4] sm:$0xf]  ;;  %v8215_v50 = vld [vmem:[%s13023_s4 + $0x2f0] sm:$0xf0]  ;;  %v6111_v53 = vor.u32 %v8205_v42, %v6110_v41  ;;  %v8188_v55 = vld [vmem:[%s13023_s4 + $0x21c] sm:$0xf] }
  0x3d   :  { %v6143_v56 = vor.u32 %v8209_v45, %v6140_v48  ;;  %v6147_v57 = vor.u32 %v8215_v50, %v6146_v49  ;;  %v6060_v58 = vld [vmem:[%s13023_s4 + $0x244] sm:$0xf0]  ;;  %v6066_v59 = vld [vmem:[%s13023_s4 + $0x220] sm:$0xf]  ;;  %v8194_v60 = vld [vmem:[%s13023_s4 + $0x248] sm:$0xf0] }
  0x3e   :  { %1453 = vmatpush.bf16.msrb.mxu3 %v6231_v25  ;;  %1509 = vmatpush.bf16.msrb.mxu1 %v6235_v26  ;;  %v8276_v61 = vld [vmem:[%s13023_s4 + $0x4dc] sm:$0xf]  ;;  %v6412_v0 = vld [vmem:[%s13023_s4 + $0x504] sm:$0xf0]  ;;  %v1341_v3 = vsel %vm1330_vm0, %v1144_v52, 0  ;;  %v1344_v4 = vsel %vm1330_vm0, %v1145_v54, 0  ;;  %v6063_v7 = vor.u32 %v8188_v55, %v6060_v58  ;;  %v6067_v8 = vor.u32 %v8194_v60, %v6066_v59 }
  0x3f   :  { %1426 = vmatpush.bf16.msrb.mxu2 %v5835_v30  ;;  %1482 = vmatpush.bf16.msrb.mxu0 %v5839_v31  ;;  %v6418_v5 = vld [vmem:[%s13023_s4 + $0x4e0] sm:$0xf]  ;;  %v8282_v6 = vld [vmem:[%s13023_s4 + $0x508] sm:$0xf0]  ;;  %v8177_v9 = vld [vmem:[%s13023_s4 + $0x1c4] sm:$0xf]  ;;  %v6415_v13 = vor.u32 %v8276_v61, %v6412_v0 }
  0x40   :  { %v6016_v10 = vld [vmem:[%s13023_s4 + $0x1ec] sm:$0xf0]  ;;  %v6022_v11 = vld [vmem:[%s13023_s4 + $0x1c8] sm:$0xf]  ;;  %v8183_v12 = vld [vmem:[%s13023_s4 + $0x1f0] sm:$0xf0]  ;;  %v6419_v14 = vor.u32 %v8282_v6, %v6418_v5 }
  0x41   :  { %v8265_v15 = vld [vmem:[%s13023_s4 + $0x484] sm:$0xf]  ;;  %v6368_v16 = vld [vmem:[%s13023_s4 + $0x4ac] sm:$0xf0]  ;;  %v6374_v21 = vld [vmem:[%s13023_s4 + $0x488] sm:$0xf]  ;;  %v6019_v23 = vor.u32 %v8177_v9, %v6016_v10  ;;  %v6023_v25 = vor.u32 %v8183_v12, %v6022_v11 }
  0x42   :  { %1454 = vmatpush.bf16.msrb.mxu3 %v6187_v43  ;;  %1510 = vmatpush.bf16.msrb.mxu1 %v6191_v44  ;;  %v8271_v22 = vld [vmem:[%s13023_s4 + $0x4b0] sm:$0xf0]  ;;  %v8166_v26 = vld [vmem:[%s13023_s4 + $0x16c] sm:$0xf]  ;;  %v5972_v27 = vld [vmem:[%s13023_s4 + $0x194] sm:$0xf0]  ;;  %v6371_v30 = vor.u32 %v8265_v15, %v6368_v16 }
  0x43   :  { %1427 = vmatpush.bf16.msrb.mxu2 %v5791_v46  ;;  %1483 = vmatpush.bf16.msrb.mxu0 %v5795_v47  ;;  %v5978_v28 = vld [vmem:[%s13023_s4 + $0x170] sm:$0xf]  ;;  %v8172_v29 = vld [vmem:[%s13023_s4 + $0x198] sm:$0xf0]  ;;  %v6375_v31 = vor.u32 %v8271_v22, %v6374_v21  ;;  %v8254_v32 = vld [vmem:[%s13023_s4 + $0x42c] sm:$0xf]  ;;  %v5975_v36 = vor.u32 %v8166_v26, %v5972_v27 }
  0x44   :  { %v6324_v33 = vld [vmem:[%s13023_s4 + $0x454] sm:$0xf0]  ;;  %v6330_v34 = vld [vmem:[%s13023_s4 + $0x430] sm:$0xf]  ;;  %v8260_v35 = vld [vmem:[%s13023_s4 + $0x458] sm:$0xf0]  ;;  %v5979_v37 = vor.u32 %v8172_v29, %v5978_v28 }
  0x45   :  { %v8155_v38 = vld [vmem:[%s13023_s4 + $0x114] sm:$0xf]  ;;  %v5928_v39 = vld [vmem:[%s13023_s4 + $0x13c] sm:$0xf0]  ;;  %v5934_v40 = vld [vmem:[%s13023_s4 + $0x118] sm:$0xf]  ;;  %v6327_v42 = vor.u32 %v8254_v32, %v6324_v33  ;;  %v6331_v43 = vor.u32 %v8260_v35, %v6330_v34  ;;  %v970_v35 = vunpack.c.h.b16 %v8868_v24 }
  0x46   :  { %1455 = vmatpush.bf16.msrb.mxu3 %v6143_v56  ;;  %1511 = vmatpush.bf16.msrb.mxu1 %v6147_v57  ;;  %v8161_v41 = vld [vmem:[%s13023_s4 + $0x140] sm:$0xf0]  ;;  %v8243_v44 = vld [vmem:[%s13023_s4 + $0x3d4] sm:$0xf]  ;;  %v6280_v45 = vld [vmem:[%s13023_s4 + $0x3fc] sm:$0xf0]  ;;  %v5931_v48 = vor.u32 %v8155_v38, %v5928_v39 }
  0x47   :  { %1532 = vmatpush.bf16.msra.mxu2 %v6107_v51  ;;  %1588 = vmatpush.bf16.msra.mxu0 %v6111_v53  ;;  %v6286_v46 = vld [vmem:[%s13023_s4 + $0x3d8] sm:$0xf]  ;;  %v8249_v47 = vld [vmem:[%s13023_s4 + $0x400] sm:$0xf0]  ;;  %v5935_v49 = vor.u32 %v8161_v41, %v5934_v40  ;;  %v8144_v50 = vld [vmem:[%s13023_s4 + $0xbc] sm:$0xf]  ;;  %v6283_v52 = vor.u32 %v8243_v44, %v6280_v45  ;;  %v1146_v41 = vpack.c.b16 %v970_v35, %v970_v35 }
  0x48   :  { %1428 = vmatmul.bf16.vlgmr.msrb.gmra.mxu2 %v8686_v1  ;;  %1484 = vmatmul.bf16.vlgmr.msrb.gmra.mxu0 %v8686_v1  ;;  %v5884_v51 = vld [vmem:[%s13023_s4 + $0xe4] sm:$0xf0]  ;;  %v6287_v53 = vor.u32 %v8249_v47, %v6286_v46  ;;  %v8232_v54 = vld [vmem:[%s13023_s4 + $0x37c] sm:$0xf]  ;;  %v5890_v58 = vld [vmem:[%s13023_s4 + $0xc0] sm:$0xf] }
  0x49   :  { %v6236_v55 = vld [vmem:[%s13023_s4 + $0x3a4] sm:$0xf0]  ;;  %v5887_v56 = vor.u32 %v8144_v50, %v5884_v51  ;;  %v8150_v59 = vld [vmem:[%s13023_s4 + $0xe8] sm:$0xf0]  ;;  %v6242_v60 = vld [vmem:[%s13023_s4 + $0x380] sm:$0xf] }
  0x4a   :  { %1560 = vmatpush.bf16.msra.mxu3 %v1341_v3  ;;  %1616 = vmatpush.bf16.msra.mxu1 %v1344_v4  ;;  %v6239_v57 = vor.u32 %v8232_v54, %v6236_v55  ;;  %v5891_v61 = vor.u32 %v8150_v59, %v5890_v58  ;;  %v8238_v0 = vld [vmem:[%s13023_s4 + $0x3a8] sm:$0xf0]  ;;  %v8133_v4 = vld [vmem:[%s13023_s4 + $0x64] sm:$0xf]  ;;  %v5840_v5 = vld [vmem:[%s13023_s4 + $0x8c] sm:$0xf0] }
  0x4b   :  { %1533 = vmatpush.bf16.msra.mxu2 %v6063_v7  ;;  %1589 = vmatpush.bf16.msra.mxu0 %v6067_v8  ;;  %v6243_v3 = vor.u32 %v8238_v0, %v6242_v60  ;;  %v8221_v6 = vld [vmem:[%s13023_s4 + $0x324] sm:$0xf]  ;;  %v5843_v7 = vor.u32 %v8133_v4, %v5840_v5  ;;  %v6192_v8 = vld [vmem:[%s13023_s4 + $0x34c] sm:$0xf0]  ;;  %v5846_v9 = vld [vmem:[%s13023_s4 + $0x68] sm:$0xf] }
  0x4c   :  { %6448 = vmatmul.msk.bf16.vlgmr.msrb.gmra.mxu3 %vm1317_vm1, %v8727_v19  ;;  %6452 = vmatmul.msk.bf16.vlgmr.msrb.gmra.mxu1 %vm1317_vm1, %v8727_v19  ;;  %v8139_v10 = vld [vmem:[%s13023_s4 + $0x90] sm:$0xf0]  ;;  %v6195_v11 = vor.u32 %v8221_v6, %v6192_v8  ;;  %v8122_v15 = vld [vmem:[%s13023_s4 + $0xc] sm:$0xf]  ;;  %v5796_v21 = vld [vmem:[%s13023_s4 + $0x34] sm:$0xf0] }
  0x4d   :  { %v5847_v12 = vor.u32 %v8139_v10, %v5846_v9  ;;  %v8210_v22 = vld [vmem:[%s13023_s4 + $0x2cc] sm:$0xf]  ;;  %v5802_v27 = vld [vmem:[%s13023_s4 + $0x10] sm:$0xf]  ;;  %v8128_v28 = vld [vmem:[%s13023_s4 + $0x38] sm:$0xf0] }
  0x4e   :  { %1561 = vmatpush.bf16.msra.mxu3 %v6415_v13  ;;  %1617 = vmatpush.bf16.msra.mxu1 %v6419_v14  ;;  %v6198_v13 = vld [vmem:[%s13023_s4 + $0x328] sm:$0xf]  ;;  %v8227_v14 = vld [vmem:[%s13023_s4 + $0x350] sm:$0xf0]  ;;  %v5803_v29 = vor.u32 %v8128_v28, %v5802_v27  ;;  %v8200_v33 = vld [vmem:[%s13023_s4 + $0x27c] sm:$0xf] }
  0x4f   :  { %1534 = vmatpush.bf16.msra.mxu2 %v6019_v23  ;;  %1590 = vmatpush.bf16.msra.mxu0 %v6023_v25  ;;  %v6199_v16 = vor.u32 %v8227_v14, %v6198_v13  ;;  %v6148_v23 = vld [vmem:[%s13023_s4 + $0x2f4] sm:$0xf0]  ;;  %v5799_v25 = vor.u32 %v8122_v15, %v5796_v21  ;;  %v6112_v34 = vld [vmem:[%s13023_s4 + $0x2a4] sm:$0xf0]  ;;  %v8206_v38 = vld [vmem:[%s13023_s4 + $0x2a8] sm:$0xf0] }
  0x50   :  { %v6151_v26 = vor.u32 %v8210_v22, %v6148_v23  ;;  %v9128_v39 = vld [vmem:[%s13023_s4 + $0x540] sm:$0x77]  ;;  %v6420_v45 = vld [vmem:[%s13023_s4 + $0x50c] sm:$0xf0]  ;;  %v1347_v47 = vsel %vm1330_vm0, %v1146_v41, 0  ;;  %s5748_s20 = sshll.u32 %s13027_s8, 4  ;;  %s5749_s20 = int_to_ptr.hbm [resolvable:$true] %s5748_s20 }
  0x51   :  { %v8189_v40 = vld [vmem:[%s13023_s4 + $0x224] sm:$0xf]  ;;  %v6074_v51 = vld [vmem:[%s13023_s4 + $0x228] sm:$0xf]  ;;  %v8283_v55 = vld [vmem:[%s13023_s4 + $0x510] sm:$0xf0] }
  0x52   :  { %1562 = vmatpush.bf16.msra.mxu3 %v6371_v30  ;;  %1618 = vmatpush.bf16.msra.mxu1 %v6375_v31  ;;  %v6154_v30 = vld [vmem:[%s13023_s4 + $0x2d0] sm:$0xf]  ;;  %v8216_v31 = vld [vmem:[%s13023_s4 + $0x2f8] sm:$0xf0]  ;;  %v8277_v44 = vld [vmem:[%s13023_s4 + $0x4e4] sm:$0xf] }
  0x53   :  { %1535 = vmatpush.bf16.msra.mxu2 %v5975_v36  ;;  %1591 = vmatpush.bf16.msra.mxu0 %v5979_v37  ;;  %v6155_v32 = vor.u32 %v8216_v31, %v6154_v30  ;;  %v6118_v36 = vld [vmem:[%s13023_s4 + $0x280] sm:$0xf]  ;;  %v6115_v37 = vor.u32 %v8200_v33, %v6112_v34  ;;  %v6024_v58 = vld [vmem:[%s13023_s4 + $0x1f4] sm:$0xf0]  ;;  %v8266_v59 = vld [vmem:[%s13023_s4 + $0x48c] sm:$0xf] }
  0x54   :  { %v6119_v24 = vor.u32 %v8206_v38, %v6118_v36  ;;  %v6030_v0 = vld [vmem:[%s13023_s4 + $0x1d0] sm:$0xf]  ;;  %v8167_v8 = vld [vmem:[%s13023_s4 + $0x174] sm:$0xf]  ;;  %v5980_v10 = vld [vmem:[%s13023_s4 + $0x19c] sm:$0xf0] }
  0x55   :  { %v6382_v6 = vld [vmem:[%s13023_s4 + $0x490] sm:$0xf]  ;;  %v5983_v13 = vor.u32 %v8167_v8, %v5980_v10  ;;  %v5986_v15 = vld [vmem:[%s13023_s4 + $0x178] sm:$0xf]  ;;  %v8261_v23 = vld [vmem:[%s13023_s4 + $0x460] sm:$0xf0] }
  0x56   :  { %1563 = vmatpush.bf16.msra.mxu3 %v6327_v42  ;;  %1619 = vmatpush.bf16.msra.mxu1 %v6331_v43  ;;  %v971_v42 = vunpack.c.l.b16 %v9128_v39  ;;  %v6068_v43 = vld [vmem:[%s13023_s4 + $0x24c] sm:$0xf0]  ;;  %v6338_v21 = vld [vmem:[%s13023_s4 + $0x438] sm:$0xf]  ;;  %v5936_v27 = vld [vmem:[%s13023_s4 + $0x144] sm:$0xf0] }
  0x57   :  { %1536 = vmatpush.bf16.msra.mxu2 %v5931_v48  ;;  %1592 = vmatpush.bf16.msra.mxu0 %v5935_v49  ;;  %v6071_v46 = vor.u32 %v8189_v40, %v6068_v43  ;;  %v6423_v49 = vor.u32 %v8277_v44, %v6420_v45  ;;  %v8244_v28 = vld [vmem:[%s13023_s4 + $0x3dc] sm:$0xf]  ;;  %v6288_v30 = vld [vmem:[%s13023_s4 + $0x404] sm:$0xf0]  ;;  %v8162_v33 = vld [vmem:[%s13023_s4 + $0x148] sm:$0xf0] }
  0x58   :  { %1433 = vmatmul.bf16.gmra.mxu2 %v8816_v62  ;;  %1489 = vmatmul.bf16.gmra.mxu0 %v8816_v62  ;;  %v1147_v48 = vpack.c.b16 %v971_v42, %v971_v42  ;;  %v6291_v31 = vor.u32 %v8244_v28, %v6288_v30  ;;  %v6294_v34 = vld [vmem:[%s13023_s4 + $0x3e0] sm:$0xf]  ;;  %v8250_v36 = vld [vmem:[%s13023_s4 + $0x408] sm:$0xf0]  ;;  %v5892_v38 = vld [vmem:[%s13023_s4 + $0xec] sm:$0xf0] }
  0x59   :  { %v6295_v40 = vor.u32 %v8250_v36, %v6294_v34  ;;  %v6244_v42 = vld [vmem:[%s13023_s4 + $0x3ac] sm:$0xf0]  ;;  %v5898_v44 = vld [vmem:[%s13023_s4 + $0xc8] sm:$0xf]  ;;  %v8151_v45 = vld [vmem:[%s13023_s4 + $0xf0] sm:$0xf0] }
  0x5a   :  { %1564 = vmatpush.bf16.msra.mxu3 %v6283_v52  ;;  %1620 = vmatpush.bf16.msra.mxu1 %v6287_v53  ;;  %v1350_v50 = vsel %vm1330_vm0, %v1147_v48, 0  ;;  %v8195_v52 = vld [vmem:[%s13023_s4 + $0x250] sm:$0xf0]  ;;  %v6426_v53 = vld [vmem:[%s13023_s4 + $0x4e8] sm:$0xf]  ;;  %s8505_s21 = smov 704  }
  0x5b   :  { %1537 = vmatpush.bf16.msra.mxu2 %v5887_v56  ;;  %1593 = vmatpush.bf16.msra.mxu0 %v5891_v61  ;;  %v6075_v54 = vor.u32 %v8195_v52, %v6074_v51  ;;  %v6427_v56 = vor.u32 %v8283_v55, %v6426_v53  ;;  %v6376_v61 = vld [vmem:[%s13023_s4 + $0x4b4] sm:$0xf0]  ;;  %v8239_v48 = vld [vmem:[%s13023_s4 + $0x3b0] sm:$0xf0]  ;;  %v8222_v52 = vld [vmem:[%s13023_s4 + $0x32c] sm:$0xf] }
  0x5c   :  { %6449 = vmatmul.msk.bf16.gmra.mxu3 %vm1317_vm1, %v8852_v17  ;;  %6453 = vmatmul.msk.bf16.gmra.mxu1 %vm1317_vm1, %v8852_v17  ;;  %v6379_v4 = vor.u32 %v8266_v59, %v6376_v61  ;;  %v5848_v51 = vld [vmem:[%s13023_s4 + $0x94] sm:$0xf0]  ;;  %v6206_v59 = vld [vmem:[%s13023_s4 + $0x330] sm:$0xf]  ;;  %v8129_v8 = vld [vmem:[%s13023_s4 + $0x40] sm:$0xf0] }
  0x5d   :  { %v6126_v34 = vld [vmem:[%s13023_s4 + $0x288] sm:$0xf]  ;;  %s8506_s22 = smov 44  }
  0x5e   :  { %1565 = vmatpush.bf16.msra.mxu3 %v6239_v57  ;;  %1621 = vmatpush.bf16.msra.mxu1 %v6243_v3  ;;  %v8178_v57 = vld [vmem:[%s13023_s4 + $0x1cc] sm:$0xf]  ;;  %v8184_v3 = vld [vmem:[%s13023_s4 + $0x1f8] sm:$0xf0] }
  0x5f   :  { %1538 = vmatpush.bf16.msra.mxu2 %v5843_v7  ;;  %1594 = vmatpush.bf16.msra.mxu0 %v5847_v12  ;;  %v6027_v60 = vor.u32 %v8178_v57, %v6024_v58  ;;  %v6031_v5 = vor.u32 %v8184_v3, %v6030_v0  ;;  %v8272_v7 = vld [vmem:[%s13023_s4 + $0x4b8] sm:$0xf0]  ;;  %v6332_v12 = vld [vmem:[%s13023_s4 + $0x45c] sm:$0xf0]  ;;  %v8123_v0 = vld [vmem:[%s13023_s4 + $0x14] sm:$0xf] }
  0x60   :  { %v6383_v9 = vor.u32 %v8272_v7, %v6382_v6  ;;  %v8140_v57 = vld [vmem:[%s13023_s4 + $0x98] sm:$0xf0]  ;;  %v5804_v3 = vld [vmem:[%s13023_s4 + $0x3c] sm:$0xf0]  ;;  %v5810_v7 = vld [vmem:[%s13023_s4 + $0x18] sm:$0xf] }
  0x61   :  { %v6156_v6 = vld [vmem:[%s13023_s4 + $0x2fc] sm:$0xf0] }
  0x62   :  { %1566 = vmatpush.bf16.msra.mxu3 %v6195_v11  ;;  %1622 = vmatpush.bf16.msra.mxu1 %v6199_v16  ;;  %v8255_v11 = vld [vmem:[%s13023_s4 + $0x434] sm:$0xf]  ;;  %v8173_v16 = vld [vmem:[%s13023_s4 + $0x1a0] sm:$0xf0] }
  0x63   :  { %1539 = vmatpush.bf16.msra.mxu2 %v5799_v25  ;;  %1595 = vmatpush.bf16.msra.mxu0 %v5803_v29  ;;  %v6335_v14 = vor.u32 %v8255_v11, %v6332_v12  ;;  %v5987_v22 = vor.u32 %v8173_v16, %v5986_v15  ;;  %v6339_v25 = vor.u32 %v8261_v23, %v6338_v21  ;;  %v6162_v12 = vld [vmem:[%s13023_s4 + $0x2d8] sm:$0xf]  ;;  %v6120_v23 = vld [vmem:[%s13023_s4 + $0x2ac] sm:$0xf0] }
  0x64   :  { %v5811_v11 = vor.u32 %v8129_v8, %v5810_v7 }
  0x66   :  { %1567 = vmatpush.bf16.msra.mxu3 %v6151_v26  ;;  %1623 = vmatpush.bf16.msra.mxu1 %v6155_v32  ;;  %v8156_v26 = vld [vmem:[%s13023_s4 + $0x11c] sm:$0xf]  ;;  %v5942_v32 = vld [vmem:[%s13023_s4 + $0x120] sm:$0xf] }
  0x67   :  { %1644 = vmatpush.bf16.msrb.mxu2 %v6115_v37  ;;  %1700 = vmatpush.bf16.msrb.mxu0 %v6119_v24  ;;  %v5939_v29 = vor.u32 %v8156_v26, %v5936_v27  ;;  %v5943_v35 = vor.u32 %v8162_v33, %v5942_v32  ;;  %v8145_v37 = vld [vmem:[%s13023_s4 + $0xc4] sm:$0xf] }
  0x68   :  { %1438 = vmatmul.bf16.gmra.mxu2 %v8688_v2  ;;  %1494 = vmatmul.bf16.gmra.mxu0 %v8688_v2  ;;  %v5895_v41 = vor.u32 %v8145_v37, %v5892_v38  ;;  %v8233_v24 = vld [vmem:[%s13023_s4 + $0x384] sm:$0xf] }
  0x69   :  { %v6247_v43 = vor.u32 %v8233_v24, %v6244_v42  ;;  %v8278_v24 = vld [vmem:[%s13023_s4 + $0x4ec] sm:$0xf] }
  0x6a   :  { %1672 = vmatpush.bf16.msrb.mxu3 %v1347_v47  ;;  %1728 = vmatpush.bf16.msrb.mxu1 %v1350_v50  ;;  %v5899_v47 = vor.u32 %v8151_v45, %v5898_v44  ;;  %v8134_v50 = vld [vmem:[%s13023_s4 + $0x6c] sm:$0xf] }
  0x6b   :  { %1645 = vmatpush.bf16.msrb.mxu2 %v6071_v46  ;;  %1701 = vmatpush.bf16.msrb.mxu0 %v6075_v54  ;;  %v6250_v46 = vld [vmem:[%s13023_s4 + $0x388] sm:$0xf]  ;;  %v5851_v53 = vor.u32 %v8134_v50, %v5848_v51  ;;  %v6200_v54 = vld [vmem:[%s13023_s4 + $0x354] sm:$0xf0] }
  0x6c   :  { %6450 = vmatmul.msk.bf16.gmra.mxu3 %vm1317_vm1, %v8729_v20  ;;  %6454 = vmatmul.msk.bf16.gmra.mxu1 %vm1317_vm1, %v8729_v20  ;;  %v6203_v55 = vor.u32 %v8222_v52, %v6200_v54  ;;  %v6082_v52 = vld [vmem:[%s13023_s4 + $0x230] sm:$0xf] }
  0x6d   :  { %v6434_v54 = vld [vmem:[%s13023_s4 + $0x4f0] sm:$0xf] }
  0x6e   :  { %1673 = vmatpush.bf16.msrb.mxu3 %v6423_v49  ;;  %1729 = vmatpush.bf16.msrb.mxu1 %v6427_v56  ;;  %v6251_v49 = vor.u32 %v8239_v48, %v6250_v46  ;;  %v5854_v56 = vld [vmem:[%s13023_s4 + $0x70] sm:$0xf] }
  0x6f   :  { %1646 = vmatpush.bf16.msrb.mxu2 %v6027_v60  ;;  %1702 = vmatpush.bf16.msrb.mxu0 %v6031_v5  ;;  %v5855_v58 = vor.u32 %v8140_v57, %v5854_v56  ;;  %v8228_v60 = vld [vmem:[%s13023_s4 + $0x358] sm:$0xf0]  ;;  %v5807_v5 = vor.u32 %v8123_v0, %v5804_v3 }
  0x70   :  { %v6207_v61 = vor.u32 %v8228_v60, %v6206_v59  ;;  %v8284_v57 = vld [vmem:[%s13023_s4 + $0x518] sm:$0xf0]  ;;  %v8179_v59 = vld [vmem:[%s13023_s4 + $0x1d4] sm:$0xf]  ;;  %v6032_v60 = vld [vmem:[%s13023_s4 + $0x1fc] sm:$0xf0] }
  0x71   :  { %v6035_v3 = vor.u32 %v8179_v59, %v6032_v60  ;;  %v8251_v60 = vld [vmem:[%s13023_s4 + $0x410] sm:$0xf0] }
  0x72   :  { %1674 = vmatpush.bf16.msrb.mxu3 %v6379_v4  ;;  %1730 = vmatpush.bf16.msrb.mxu1 %v6383_v9  ;;  %v8211_v4 = vld [vmem:[%s13023_s4 + $0x2d4] sm:$0xf] }
  0x73   :  { %1647 = vmatpush.bf16.msrb.mxu2 %v5983_v13  ;;  %1703 = vmatpush.bf16.msrb.mxu0 %v5987_v22  ;;  %v6159_v10 = vor.u32 %v8211_v4, %v6156_v6  ;;  %v8217_v13 = vld [vmem:[%s13023_s4 + $0x300] sm:$0xf0]  ;;  %v6384_v4 = vld [vmem:[%s13023_s4 + $0x4bc] sm:$0xf0] }
  0x74   :  { %v8201_v22 = vld [vmem:[%s13023_s4 + $0x284] sm:$0xf] }
  0x75   :  { %v6123_v27 = vor.u32 %v8201_v22, %v6120_v23  ;;  %v5988_v22 = vld [vmem:[%s13023_s4 + $0x1a4] sm:$0xf0] }
  0x76   :  { %1675 = vmatpush.bf16.msrb.mxu3 %v6335_v14  ;;  %1731 = vmatpush.bf16.msrb.mxu1 %v6339_v25  ;;  %v6163_v14 = vor.u32 %v8217_v13, %v6162_v12  ;;  %v972_v25 = vunpack.c.h.b16 %v9128_v39  ;;  %v8207_v39 = vld [vmem:[%s13023_s4 + $0x2b0] sm:$0xf0]  ;;  %v6390_v12 = vld [vmem:[%s13023_s4 + $0x498] sm:$0xf] }
  0x77   :  { %1648 = vmatpush.bf16.msrb.mxu2 %v5939_v29  ;;  %1704 = vmatpush.bf16.msrb.mxu0 %v5943_v35  ;;  %v9348_v35 = vld [vmem:[%s13023_s4 + $0x548] sm:$0x77]  ;;  %v6127_v37 = vor.u32 %v8207_v39, %v6126_v34  ;;  %v5994_v39 = vld [vmem:[%s13023_s4 + $0x180] sm:$0xf] }
  0x78   :  { %1443 = vmatmul.bf16.gmra.mxu2 %v8818_v63  ;;  %1499 = vmatmul.bf16.gmra.mxu0 %v8818_v63  ;;  %v1148_v28 = vpack.c.b16 %v972_v25, %v972_v25  ;;  %v973_v38 = vunpack.c.l.b16 %v9348_v35 }
  0x7a   :  { %1676 = vmatpush.bf16.msrb.mxu3 %v6291_v31  ;;  %1732 = vmatpush.bf16.msrb.mxu1 %v6295_v40  ;;  %v1353_v31 = vsel %vm1330_vm0, %v1148_v28, 0  ;;  %v8190_v40 = vld [vmem:[%s13023_s4 + $0x22c] sm:$0xf]  ;;  %v1149_v45 = vpack.c.b16 %v973_v38, %v973_v38 }
  0x7b   :  { %1649 = vmatpush.bf16.msrb.mxu2 %v5895_v41  ;;  %1705 = vmatpush.bf16.msrb.mxu0 %v5899_v47  ;;  %v6076_v41 = vld [vmem:[%s13023_s4 + $0x254] sm:$0xf0] }
  0x7c   :  { %6451 = vmatmul.msk.bf16.gmra.mxu3 %vm1317_vm1, %v8854_v18  ;;  %6455 = vmatmul.msk.bf16.gmra.mxu1 %vm1317_vm1, %v8854_v18  ;;  %v6079_v42 = vor.u32 %v8190_v40, %v6076_v41  ;;  %v1356_v48 = vsel %vm1330_vm0, %v1149_v45, 0  ;;  %v8262_v41 = vld [vmem:[%s13023_s4 + $0x468] sm:$0xf0] }
  0x7e   :  { %1677 = vmatpush.bf16.msrb.mxu3 %v6247_v43  ;;  %1733 = vmatpush.bf16.msrb.mxu1 %v6251_v49  ;;  %v6428_v43 = vld [vmem:[%s13023_s4 + $0x514] sm:$0xf0] }
  0x7f   :  { %1650 = vmatpush.bf16.msrb.mxu2 %v5851_v53  ;;  %1706 = vmatpush.bf16.msrb.mxu0 %v5855_v58  ;;  %v6431_v46 = vor.u32 %v8278_v24, %v6428_v43  ;;  %v8196_v53 = vld [vmem:[%s13023_s4 + $0x258] sm:$0xf0]  ;;  %v6435_v58 = vor.u32 %v8284_v57, %v6434_v54  ;;  %v5944_v43 = vld [vmem:[%s13023_s4 + $0x14c] sm:$0xf0]  ;;  %v6302_v57 = vld [vmem:[%s13023_s4 + $0x3e8] sm:$0xf] }
  0x80   :  { %v6083_v56 = vor.u32 %v8196_v53, %v6082_v52 }
  0x82   :  { %1678 = vmatpush.bf16.msrb.mxu3 %v6203_v55  ;;  %1734 = vmatpush.bf16.msrb.mxu1 %v6207_v61  ;;  %v8267_v61 = vld [vmem:[%s13023_s4 + $0x494] sm:$0xf] }
  0x83   :  { %1651 = vmatpush.bf16.msrb.mxu2 %v5807_v5  ;;  %1707 = vmatpush.bf16.msrb.mxu0 %v5811_v11  ;;  %v6387_v5 = vor.u32 %v8267_v61, %v6384_v4  ;;  %v8185_v11 = vld [vmem:[%s13023_s4 + $0x200] sm:$0xf0]  ;;  %v8146_v61 = vld [vmem:[%s13023_s4 + $0xcc] sm:$0xf] }
  0x86   :  { %1679 = vmatpush.bf16.msrb.mxu3 %v6159_v10  ;;  %1735 = vmatpush.bf16.msrb.mxu1 %v6163_v14  ;;  %v6038_v10 = vld [vmem:[%s13023_s4 + $0x1d8] sm:$0xf] }
  0x87   :  { %v6039_v14 = vor.u32 %v8185_v11, %v6038_v10 }
  0x88   :  { %1540 = vmatmul.bf16.vlgmr.msra.gmra.mxu2 %v8686_v1  ;;  %1596 = vmatmul.bf16.vlgmr.msra.gmra.mxu0 %v8686_v1 }
  0x89   :  { %1756 = vmatpush.bf16.msra.mxu2 %v6123_v27  ;;  %1812 = vmatpush.bf16.msra.mxu0 %v6127_v37  ;;  %v6340_v27 = vld [vmem:[%s13023_s4 + $0x464] sm:$0xf0]  ;;  %v6346_v37 = vld [vmem:[%s13023_s4 + $0x440] sm:$0xf] }
  0x8a   :  { %v6347_v24 = vor.u32 %v8262_v41, %v6346_v37  ;;  %v8141_v41 = vld [vmem:[%s13023_s4 + $0xa0] sm:$0xf0] }
  0x8c   :  { %6456 = vmatmul.msk.bf16.vlgmr.msra.gmra.mxu3 %vm1317_vm1, %v8727_v19  ;;  %6460 = vmatmul.msk.bf16.vlgmr.msra.gmra.mxu1 %vm1317_vm1, %v8727_v19 }
  0x8d   :  { %1784 = vmatpush.bf16.msra.mxu3 %v1353_v31  ;;  %1757 = vmatpush.bf16.msra.mxu2 %v6079_v42  ;;  %v8157_v42 = vld [vmem:[%s13023_s4 + $0x124] sm:$0xf] }
  0x8e   :  { %1840 = vmatpush.bf16.msra.mxu1 %v1356_v48  ;;  %1813 = vmatpush.bf16.msra.mxu0 %v6083_v56  ;;  %v8163_v56 = vld [vmem:[%s13023_s4 + $0x150] sm:$0xf0] }
  0x91   :  { %1785 = vmatpush.bf16.msra.mxu3 %v6431_v46  ;;  %1758 = vmatpush.bf16.msra.mxu2 %v6035_v3  ;;  %v5947_v46 = vor.u32 %v8157_v42, %v5944_v43  ;;  %v6303_v3 = vor.u32 %v8251_v60, %v6302_v57  ;;  %v6164_v57 = vld [vmem:[%s13023_s4 + $0x304] sm:$0xf0] }
  0x92   :  { %1841 = vmatpush.bf16.msra.mxu1 %v6435_v58  ;;  %1814 = vmatpush.bf16.msra.mxu0 %v6039_v14 }
  0x95   :  { %1786 = vmatpush.bf16.msra.mxu3 %v6387_v5  ;;  %v8234_v5 = vld [vmem:[%s13023_s4 + $0x38c] sm:$0xf] }
  0x98   :  { %1545 = vmatmul.bf16.gmra.mxu2 %v8816_v62  ;;  %1601 = vmatmul.bf16.gmra.mxu0 %v8816_v62 }
  0x9c   :  { %6457 = vmatmul.msk.bf16.gmra.mxu3 %vm1317_vm1, %v8852_v17  ;;  %6461 = vmatmul.msk.bf16.gmra.mxu1 %vm1317_vm1, %v8852_v17 }
  0xa1   :  { %v1373_v9 = vpop.f32.mrf.mxu0 }
  0xa7   :  { %v1383_v21 = vpop.f32.mrf.mxu2 }
  0xa8   :  { %1550 = vmatmul.bf16.gmra.mxu2 %v8688_v2  ;;  %1606 = vmatmul.bf16.gmra.mxu0 %v8688_v2 }
  0xa9   :  { %v1401_v15 = vpop.f32.mrf.mxu1  ;;  %v1375_v26 = vpop.f32.mrf.mxu0 }
  0xaa   :  { %v9321_v16 = vadd.f32 %v1401_v15, %v1373_v9  ;;  %v8273_v15 = vld [vmem:[%s13023_s4 + $0x4c0] sm:$0xf0] }
  0xab   :  { %v6391_v23 = vor.u32 %v8273_v15, %v6390_v12  ;;  %v5906_v15 = vld [vmem:[%s13023_s4 + $0xd0] sm:$0xf] }
  0xac   :  { %6458 = vmatmul.msk.bf16.gmra.mxu3 %vm1317_vm1, %v8729_v20  ;;  %6462 = vmatmul.msk.bf16.gmra.mxu1 %vm1317_vm1, %v8729_v20 }
  0xad   :  { %1842 = vmatpush.bf16.msra.mxu1 %v6391_v23 }
  0xaf   :  { %v1411_v29 = vpop.f32.mrf.mxu3  ;;  %v1385_v36 = vpop.f32.mrf.mxu2 }
  0xb0   :  { %v9334_v30 = vadd.f32 %v1411_v29, %v1383_v21  ;;  %v8168_v21 = vld [vmem:[%s13023_s4 + $0x17c] sm:$0xf] }
  0xb1   :  { %v1403_v32 = vpop.f32.mrf.mxu1  ;;  %v1378_v44 = vpop.f32.mrf.mxu0  ;;  %v5991_v25 = vor.u32 %v8168_v21, %v5988_v22  ;;  %1843 = vmatpush.bf16.msra.mxu1 %v6347_v24  ;;  %v8152_v21 = vld [vmem:[%s13023_s4 + $0xf8] sm:$0xf0]  ;;  %v6258_v22 = vld [vmem:[%s13023_s4 + $0x390] sm:$0xf] }
  0xb2   :  { %v9337_v33 = vadd.f32 %v1403_v32, %v1375_v26  ;;  %v8256_v26 = vld [vmem:[%s13023_s4 + $0x43c] sm:$0xf] }
  0xb3   :  { %v6343_v29 = vor.u32 %v8256_v26, %v6340_v27  ;;  %1759 = vmatpush.bf16.msra.mxu2 %v5991_v25  ;;  %v5907_v25 = vor.u32 %v8152_v21, %v5906_v15  ;;  %v8240_v26 = vld [vmem:[%s13023_s4 + $0x3b8] sm:$0xf0]  ;;  %v8202_v15 = vld [vmem:[%s13023_s4 + $0x28c] sm:$0xf]  ;;  %v6128_v21 = vld [vmem:[%s13023_s4 + $0x2b4] sm:$0xf0] }
  0xb4   :  { %v6259_v27 = vor.u32 %v8240_v26, %v6258_v22  ;;  %v974_v22 = vunpack.c.h.b16 %v9348_v35  ;;  %v8208_v35 = vld [vmem:[%s13023_s4 + $0x2b8] sm:$0xf0] }
  0xb5   :  { %1787 = vmatpush.bf16.msra.mxu3 %v6343_v29  ;;  %1844 = vmatpush.bf16.msra.mxu1 %v6303_v3  ;;  %v5856_v29 = vld [vmem:[%s13023_s4 + $0x9c] sm:$0xf0] }
  0xb6   :  { %v6170_v3 = vld [vmem:[%s13023_s4 + $0x2e0] sm:$0xf]  ;;  %v1150_v26 = vpack.c.b16 %v974_v22, %v974_v22  ;;  %v6392_v22 = vld [vmem:[%s13023_s4 + $0x4c4] sm:$0xf0] }
  0xb7   :  { %v1413_v47 = vpop.f32.mrf.mxu3  ;;  %v1388_v55 = vpop.f32.mrf.mxu2  ;;  %1760 = vmatpush.bf16.msra.mxu2 %v5947_v46 }
  0xb8   :  { %v9364_v49 = vadd.f32 %v1413_v47, %v1385_v36  ;;  %1555 = vmatmul.bf16.gmra.mxu2 %v8818_v63  ;;  %1611 = vmatmul.bf16.gmra.mxu0 %v8818_v63  ;;  %v8174_v36 = vld [vmem:[%s13023_s4 + $0x1a8] sm:$0xf0]  ;;  %v6296_v47 = vld [vmem:[%s13023_s4 + $0x40c] sm:$0xf0] }
  0xb9   :  { %v1406_v50 = vpop.f32.mrf.mxu1  ;;  %v1380_v0 = vpop.f32.mrf.mxu0  ;;  %v5995_v40 = vor.u32 %v8174_v36, %v5994_v39  ;;  %v6208_v36 = vld [vmem:[%s13023_s4 + $0x35c] sm:$0xf0]  ;;  %1845 = vmatpush.bf16.msra.mxu1 %v6259_v27 }
  0xba   :  { %v9368_v51 = vadd.f32 %v1406_v50, %v1378_v44  ;;  %v8245_v44 = vld [vmem:[%s13023_s4 + $0x3e4] sm:$0xf] }
  0xbb   :  { %1815 = vmatpush.bf16.msra.mxu0 %v5995_v40  ;;  %v6299_v48 = vor.u32 %v8245_v44, %v6296_v47  ;;  %v5862_v40 = vld [vmem:[%s13023_s4 + $0x78] sm:$0xf] }
  0xbc   :  { %6459 = vmatmul.msk.bf16.gmra.mxu3 %vm1317_vm1, %v8854_v18  ;;  %6463 = vmatmul.msk.bf16.gmra.mxu1 %vm1317_vm1, %v8854_v18  ;;  %v5863_v42 = vor.u32 %v8141_v41, %v5862_v40  ;;  %v6214_v44 = vld [vmem:[%s13023_s4 + $0x338] sm:$0xf]  ;;  %v8191_v41 = vld [vmem:[%s13023_s4 + $0x234] sm:$0xf] }
  0xbd   :  { %1788 = vmatpush.bf16.msra.mxu3 %v6299_v48 }
  0xbf   :  { %v1416_v6 = vpop.f32.mrf.mxu3  ;;  %v1390_v13 = vpop.f32.mrf.mxu2 }
  0xc0   :  { %v9398_v7 = vadd.f32 %v1416_v6, %v1388_v55  ;;  %v5950_v55 = vld [vmem:[%s13023_s4 + $0x128] sm:$0xf]  ;;  %v6252_v6 = vld [vmem:[%s13023_s4 + $0x3b4] sm:$0xf0] }
  0xc1   :  { %v1408_v8 = vpop.f32.mrf.mxu1  ;;  %v5951_v59 = vor.u32 %v8163_v56, %v5950_v55  ;;  %v6255_v10 = vor.u32 %v8234_v5, %v6252_v6  ;;  %v8212_v55 = vld [vmem:[%s13023_s4 + $0x2dc] sm:$0xf] }
  0xc2   :  { %v9400_v9 = vadd.f32 %v1408_v8, %v1380_v0  ;;  %v5900_v0 = vld [vmem:[%s13023_s4 + $0xf4] sm:$0xf0] }
  0xc3   :  { %v5903_v4 = vor.u32 %v8146_v61, %v5900_v0  ;;  %1816 = vmatpush.bf16.msra.mxu0 %v5951_v59  ;;  %1789 = vmatpush.bf16.msra.mxu3 %v6255_v10  ;;  %v8130_v59 = vld [vmem:[%s13023_s4 + $0x48] sm:$0xf0]  ;;  %v6167_v61 = vor.u32 %v8212_v55, %v6164_v57 }
  0xc5   :  { %v1485_v28 = vpop.f32.mrf.mxu0  ;;  %1761 = vmatpush.bf16.msra.mxu2 %v5903_v4  ;;  %v8218_v4 = vld [vmem:[%s13023_s4 + $0x308] sm:$0xf0] }
  0xc6   :  { %v6171_v6 = vor.u32 %v8218_v4, %v6170_v3  ;;  %v8285_v4 = vld [vmem:[%s13023_s4 + $0x520] sm:$0xf0] }
  0xc7   :  { %v1418_v31 = vpop.f32.mrf.mxu3  ;;  %1817 = vmatpush.bf16.msra.mxu0 %v5907_v25  ;;  %v6131_v25 = vor.u32 %v8202_v15, %v6128_v21 }
  0xc8   :  { %1652 = vmatmul.bf16.vlgmr.msrb.gmra.mxu2 %v8686_v1  ;;  %1708 = vmatmul.bf16.vlgmr.msrb.gmra.mxu0 %v8686_v1  ;;  %v8223_v31 = vld [vmem:[%s13023_s4 + $0x334] sm:$0xf] }
  0xc9   :  { %v1513_v32 = vpop.f32.mrf.mxu1  ;;  %v6211_v37 = vor.u32 %v8223_v31, %v6208_v36  ;;  %v415_v36 = vld [vmem:[%s13023_s4 + $0x550] sm:$0x7] }
  0xca   :  { %v9428_v34 = vadd.f32 %v1513_v32, %v1485_v28  ;;  %v8135_v28 = vld [vmem:[%s13023_s4 + $0x74] sm:$0xf]  ;;  %v975_v40 = vunpack.c.l.b16 %v415_v36 }
  0xcb   :  { %v1429_v38 = vpop.f32.mrf.mxu2  ;;  %v5859_v39 = vor.u32 %v8135_v28, %v5856_v29  ;;  %1790 = vmatpush.bf16.msra.mxu3 %v6211_v37  ;;  %1818 = vmatpush.bf16.msra.mxu0 %v5863_v42  ;;  %v1359_v29 = vsel %vm1330_vm0, %v1150_v26, 0  ;;  %v6084_v42 = vld [vmem:[%s13023_s4 + $0x25c] sm:$0xf0] }
  0xcc   :  { %6464 = vmatmul.msk.bf16.vlgmr.msrb.gmra.mxu3 %vm1317_vm1, %v8727_v19  ;;  %6468 = vmatmul.msk.bf16.vlgmr.msrb.gmra.mxu1 %vm1317_vm1, %v8727_v19 }
  0xcd   :  { %v1487_v45 = vpop.f32.mrf.mxu0  ;;  %1762 = vmatpush.bf16.msra.mxu2 %v5859_v39  ;;  %v6134_v39 = vld [vmem:[%s13023_s4 + $0x290] sm:$0xf] }
  0xcf   :  { %v1457_v50 = vpop.f32.mrf.mxu3  ;;  %1791 = vmatpush.bf16.msra.mxu3 %v6167_v61  ;;  %v6442_v61 = vld [vmem:[%s13023_s4 + $0x4f8] sm:$0xf] }
  0xd0   :  { %v9458_v52 = vadd.f32 %v1457_v50, %v1429_v38  ;;  %v8124_v50 = vld [vmem:[%s13023_s4 + $0x1c] sm:$0xf] }
  0xd1   :  { %v1515_v53 = vpop.f32.mrf.mxu1 }
  0xd2   :  { %v9460_v54 = vadd.f32 %v1515_v53, %v1487_v45  ;;  %v8229_v45 = vld [vmem:[%s13023_s4 + $0x360] sm:$0xf0]  ;;  %v5812_v53 = vld [vmem:[%s13023_s4 + $0x44] sm:$0xf0] }
  0xd3   :  { %v1431_v58 = vpop.f32.mrf.mxu2  ;;  %v6215_v47 = vor.u32 %v8229_v45, %v6214_v44  ;;  %v5815_v56 = vor.u32 %v8124_v50, %v5812_v53  ;;  %1896 = vmatpush.bf16.msrb.mxu3 %v1359_v29  ;;  %v6087_v44 = vor.u32 %v8191_v41, %v6084_v42  ;;  %v6436_v45 = vld [vmem:[%s13023_s4 + $0x51c] sm:$0xf0] }
  0xd4   :  { %v6046_v29 = vld [vmem:[%s13023_s4 + $0x1e0] sm:$0xf] }
  0xd5   :  { %v1490_v8 = vpop.f32.mrf.mxu0  ;;  %1846 = vmatpush.bf16.msra.mxu1 %v6215_v47  ;;  %1763 = vmatpush.bf16.msra.mxu2 %v5815_v56 }
  0xd7   :  { %v1459_v11 = vpop.f32.mrf.mxu3 }
  0xd8   :  { %v9486_v12 = vadd.f32 %v1459_v11, %v1431_v58  ;;  %1657 = vmatmul.bf16.gmra.mxu2 %v8816_v62  ;;  %1713 = vmatmul.bf16.gmra.mxu0 %v8816_v62  ;;  %v5818_v58 = vld [vmem:[%s13023_s4 + $0x20] sm:$0xf] }
  0xd9   :  { %v1518_v13 = vpop.f32.mrf.mxu1  ;;  %v5819_v0 = vor.u32 %v8130_v59, %v5818_v58  ;;  %1847 = vmatpush.bf16.msra.mxu1 %v6171_v6  ;;  %1868 = vmatpush.bf16.msrb.mxu2 %v6131_v25  ;;  %v6090_v59 = vld [vmem:[%s13023_s4 + $0x238] sm:$0xf]  ;;  %v8180_v6 = vld [vmem:[%s13023_s4 + $0x1dc] sm:$0xf] }
  0xda   :  { %v9490_v14 = vadd.f32 %v1518_v13, %v1490_v8 }
  0xdb   :  { %v1434_v23 = vpop.f32.mrf.mxu2  ;;  %1819 = vmatpush.bf16.msra.mxu0 %v5819_v0 }
  0xdc   :  { %6465 = vmatmul.msk.bf16.gmra.mxu3 %vm1317_vm1, %v8852_v17  ;;  %6469 = vmatmul.msk.bf16.gmra.mxu1 %vm1317_vm1, %v8852_v17 }
  0xdd   :  { %v1492_v32 = vpop.f32.mrf.mxu0  ;;  %1869 = vmatpush.bf16.msrb.mxu2 %v6087_v44  ;;  %v6348_v44 = vld [vmem:[%s13023_s4 + $0x46c] sm:$0xf0] }
  0xdf   :  { %v1462_v38 = vpop.f32.mrf.mxu3 }
  0xe0   :  { %v9526_v24 = vadd.f32 %v1462_v38, %v1434_v23  ;;  %v6135_v38 = vor.u32 %v8208_v35, %v6134_v39  ;;  %v6398_v39 = vld [vmem:[%s13023_s4 + $0x4a0] sm:$0xf] }
  0xe1   :  { %v1520_v43 = vpop.f32.mrf.mxu1 }
  0xe2   :  { %v9534_v46 = vadd.f32 %v1520_v43, %v1492_v32  ;;  %v8279_v43 = vld [vmem:[%s13023_s4 + $0x4f4] sm:$0xf]  ;;  %1924 = vmatpush.bf16.msrb.mxu0 %v6135_v38  ;;  %v8169_v38 = vld [vmem:[%s13023_s4 + $0x184] sm:$0xf] }
  0xe3   :  { %v1436_v48 = vpop.f32.mrf.mxu2  ;;  %v6439_v50 = vor.u32 %v8279_v43, %v6436_v45  ;;  %v8257_v43 = vld [vmem:[%s13023_s4 + $0x444] sm:$0xf] }
  0xe5   :  { %v1495_v60 = vpop.f32.mrf.mxu0  ;;  %1897 = vmatpush.bf16.msrb.mxu3 %v6439_v50 }
  0xe7   :  { %v1464_v5 = vpop.f32.mrf.mxu3 }
  0xe8   :  { %v9560_v8 = vadd.f32 %v1464_v5, %v1436_v48  ;;  %1662 = vmatmul.bf16.gmra.mxu2 %v8688_v2  ;;  %1718 = vmatmul.bf16.gmra.mxu0 %v8688_v2  ;;  %v1151_v48 = vpack.c.b16 %v975_v40, %v975_v40  ;;  %v6443_v5 = vor.u32 %v8285_v4, %v6442_v61  ;;  %v5996_v40 = vld [vmem:[%s13023_s4 + $0x1ac] sm:$0xf0]  ;;  %v8158_v4 = vld [vmem:[%s13023_s4 + $0x12c] sm:$0xf] }
  0xe9   :  { %v1523_v10 = vpop.f32.mrf.mxu1  ;;  %v5999_v42 = vor.u32 %v8169_v38, %v5996_v40  ;;  %v8147_v38 = vld [vmem:[%s13023_s4 + $0xd4] sm:$0xf]  ;;  %v5908_v40 = vld [vmem:[%s13023_s4 + $0xfc] sm:$0xf0] }
  0xea   :  { %v9564_v11 = vadd.f32 %v1523_v10, %v1495_v60  ;;  %v1362_v55 = vsel %vm1330_vm0, %v1151_v48, 0  ;;  %v8197_v60 = vld [vmem:[%s13023_s4 + $0x260] sm:$0xf0]  ;;  %v6040_v10 = vld [vmem:[%s13023_s4 + $0x204] sm:$0xf0] }
  0xeb   :  { %v1439_v13 = vpop.f32.mrf.mxu2  ;;  %1952 = vmatpush.bf16.msrb.mxu1 %v1362_v55  ;;  %v6091_v3 = vor.u32 %v8197_v60, %v6090_v59  ;;  %v6043_v21 = vor.u32 %v8180_v6, %v6040_v10  ;;  %v6002_v55 = vld [vmem:[%s13023_s4 + $0x188] sm:$0xf]  ;;  %v8246_v6 = vld [vmem:[%s13023_s4 + $0x3ec] sm:$0xf] }
  0xec   :  { %6466 = vmatmul.msk.bf16.gmra.mxu3 %vm1317_vm1, %v8729_v20  ;;  %6470 = vmatmul.msk.bf16.gmra.mxu1 %vm1317_vm1, %v8729_v20  ;;  %v6354_v59 = vld [vmem:[%s13023_s4 + $0x448] sm:$0xf] }
  0xed   :  { %v1497_v23 = vpop.f32.mrf.mxu0  ;;  %1925 = vmatpush.bf16.msrb.mxu0 %v6091_v3  ;;  %1870 = vmatpush.bf16.msrb.mxu2 %v6043_v21 }
  0xef   :  { %v1467_v27 = vpop.f32.mrf.mxu3  ;;  %1953 = vmatpush.bf16.msrb.mxu1 %v6443_v5  ;;  %v5952_v5 = vld [vmem:[%s13023_s4 + $0x154] sm:$0xf0] }
  0xf0   :  { %v9577_v28 = vadd.f32 %v1467_v27, %v1439_v13  ;;  %v8268_v13 = vld [vmem:[%s13023_s4 + $0x49c] sm:$0xf] }
  0xf1   :  { %v1525_v31 = vpop.f32.mrf.mxu1  ;;  %1871 = vmatpush.bf16.msrb.mxu2 %v5999_v42  ;;  %v5911_v42 = vor.u32 %v8147_v38, %v5908_v40  ;;  %v6222_v38 = vld [vmem:[%s13023_s4 + $0x340] sm:$0xf]  ;;  %v8230_v40 = vld [vmem:[%s13023_s4 + $0x368] sm:$0xf0] }
  0xf2   :  { %v9580_v32 = vadd.f32 %v1525_v31, %v1497_v23  ;;  %v6395_v23 = vor.u32 %v8268_v13, %v6392_v22  ;;  %v8186_v31 = vld [vmem:[%s13023_s4 + $0x208] sm:$0xf0]  ;;  %v5955_v13 = vor.u32 %v8158_v4, %v5952_v5  ;;  %v8241_v4 = vld [vmem:[%s13023_s4 + $0x3c0] sm:$0xf0] }
  0xf3   :  { %v1441_v37 = vpop.f32.mrf.mxu2  ;;  %v6047_v36 = vor.u32 %v8186_v31, %v6046_v29  ;;  %v5958_v29 = vld [vmem:[%s13023_s4 + $0x130] sm:$0xf]  ;;  %v8164_v31 = vld [vmem:[%s13023_s4 + $0x158] sm:$0xf0] }
  0xf4   :  { %1898 = vmatpush.bf16.msrb.mxu3 %v6395_v23 }
  0xf5   :  { %v1500_v47 = vpop.f32.mrf.mxu0  ;;  %1926 = vmatpush.bf16.msrb.mxu0 %v6047_v36  ;;  %1872 = vmatpush.bf16.msrb.mxu2 %v5955_v13  ;;  %v5959_v36 = vor.u32 %v8164_v31, %v5958_v29  ;;  %v8224_v13 = vld [vmem:[%s13023_s4 + $0x33c] sm:$0xf]  ;;  %v5870_v31 = vld [vmem:[%s13023_s4 + $0x80] sm:$0xf] }
  0xf7   :  { %v1469_v53 = vpop.f32.mrf.mxu3 }
  0xf8   :  { %v9604_v56 = vadd.f32 %v1469_v53, %v1441_v37  ;;  %1667 = vmatmul.bf16.gmra.mxu2 %v8818_v63  ;;  %1723 = vmatmul.bf16.gmra.mxu0 %v8818_v63  ;;  %v8274_v37 = vld [vmem:[%s13023_s4 + $0x4c8] sm:$0xf0] }
  0xf9   :  { %v1528_v57 = vpop.f32.mrf.mxu1  ;;  %v6399_v41 = vor.u32 %v8274_v37, %v6398_v39  ;;  %v6310_v39 = vld [vmem:[%s13023_s4 + $0x3f0] sm:$0xf]  ;;  %v8252_v37 = vld [vmem:[%s13023_s4 + $0x418] sm:$0xf0]  ;;  %1873 = vmatpush.bf16.msrb.mxu2 %v5911_v42  ;;  %v6223_v42 = vor.u32 %v8230_v40, %v6222_v38 }
  0xfa   :  { %v9608_v58 = vadd.f32 %v1528_v57, %v1500_v47  ;;  %v6351_v47 = vor.u32 %v8257_v43, %v6348_v44  ;;  %v8175_v57 = vld [vmem:[%s13023_s4 + $0x1b0] sm:$0xf0]  ;;  %v6260_v44 = vld [vmem:[%s13023_s4 + $0x3bc] sm:$0xf0] }
  0xfb   :  { %v1444_v0 = vpop.f32.mrf.mxu2  ;;  %1954 = vmatpush.bf16.msrb.mxu1 %v6399_v41  ;;  %v6003_v61 = vor.u32 %v8175_v57, %v6002_v55  ;;  %v6311_v41 = vor.u32 %v8252_v37, %v6310_v39  ;;  %v8235_v43 = vld [vmem:[%s13023_s4 + $0x394] sm:$0xf]  ;;  %v8142_v39 = vld [vmem:[%s13023_s4 + $0xa8] sm:$0xf0] }
  0xfc   :  { %6467 = vmatmul.msk.bf16.gmra.mxu3 %vm1317_vm1, %v8854_v18  ;;  %6471 = vmatmul.msk.bf16.gmra.mxu1 %vm1317_vm1, %v8854_v18 }
  0xfd   :  { %v1502_v15 = vpop.f32.mrf.mxu0  ;;  %1899 = vmatpush.bf16.msrb.mxu3 %v6351_v47  ;;  %1927 = vmatpush.bf16.msrb.mxu0 %v6003_v61  ;;  %v6263_v47 = vor.u32 %v8235_v43, %v6260_v44  ;;  %v6266_v61 = vld [vmem:[%s13023_s4 + $0x398] sm:$0xf]  ;;  %v8125_v44 = vld [vmem:[%s13023_s4 + $0x24] sm:$0xf] }
  0xfe   :  { %v6304_v15 = vld [vmem:[%s13023_s4 + $0x414] sm:$0xf0]  ;;  %v6267_v5 = vor.u32 %v8241_v4, %v6266_v61  ;;  %v6178_v4 = vld [vmem:[%s13023_s4 + $0x2e8] sm:$0xf] }
  0xff   :  { %v1472_v25 = vpop.f32.mrf.mxu3  ;;  %v6307_v21 = vor.u32 %v8246_v6, %v6304_v15  ;;  %v8136_v6 = vld [vmem:[%s13023_s4 + $0x7c] sm:$0xf] }
 0x100   :  { %v9638_v26 = vadd.f32 %v1472_v25, %v1444_v0  ;;  %v8263_v0 = vld [vmem:[%s13023_s4 + $0x470] sm:$0xf0] }
 0x101   :  { %v1530_v27 = vpop.f32.mrf.mxu1  ;;  %v6355_v3 = vor.u32 %v8263_v0, %v6354_v59  ;;  %1900 = vmatpush.bf16.msrb.mxu3 %v6307_v21  ;;  %1928 = vmatpush.bf16.msrb.mxu0 %v5959_v36  ;;  %v5914_v59 = vld [vmem:[%s13023_s4 + $0xd8] sm:$0xf]  ;;  %v5871_v36 = vor.u32 %v8142_v39, %v5870_v31  ;;  %v217_v31 = vld [vmem:[%s13022_s3 + $0x528] sm:$0x77] }
 0x103   :  { %v1446_v35 = vpop.f32.mrf.mxu2  ;;  %1955 = vmatpush.bf16.msrb.mxu1 %v6355_v3 }
 0x105   :  { %v1597_v45 = vpop.f32.mrf.mxu0  ;;  %1901 = vmatpush.bf16.msrb.mxu3 %v6263_v47  ;;  %v8213_v47 = vld [vmem:[%s13023_s4 + $0x2e4] sm:$0xf] }
 0x107   :  { %v1474_v48 = vpop.f32.mrf.mxu3  ;;  %1956 = vmatpush.bf16.msrb.mxu1 %v6311_v41 }
 0x108   :  { %1764 = vmatmul.bf16.vlgmr.msra.gmra.mxu2 %v8686_v1  ;;  %1820 = vmatmul.bf16.vlgmr.msra.gmra.mxu0 %v8686_v1 }
 0x109   :  { %v1625_v50 = vpop.f32.mrf.mxu1 }
 0x10a   :  { %v9666_v53 = vadd.f32 %v1625_v50, %v1597_v45 }
 0x10b   :  { %v1541_v60 = vpop.f32.mrf.mxu2  ;;  %1957 = vmatpush.bf16.msrb.mxu1 %v6267_v5  ;;  %v8219_v5 = vld [vmem:[%s13023_s4 + $0x310] sm:$0xf0] }
 0x10c   :  { %6472 = vmatmul.msk.bf16.vlgmr.msra.gmra.mxu3 %vm1317_vm1, %v8727_v19  ;;  %6476 = vmatmul.msk.bf16.vlgmr.msra.gmra.mxu1 %vm1317_vm1, %v8727_v19 }
 0x10d   :  { %v1599_v10 = vpop.f32.mrf.mxu0 }
 0x10f   :  { %v1569_v22 = vpop.f32.mrf.mxu3  ;;  %1958 = vmatpush.bf16.msrb.mxu1 %v6223_v42 }
 0x110   :  { %v9696_v23 = vadd.f32 %v1569_v22, %v1541_v60  ;;  %v8153_v60 = vld [vmem:[%s13023_s4 + $0x100] sm:$0xf0]  ;;  %v6216_v22 = vld [vmem:[%s13023_s4 + $0x364] sm:$0xf0] }
 0x111   :  { %v1627_v25 = vpop.f32.mrf.mxu1  ;;  %v5915_v3 = vor.u32 %v8153_v60, %v5914_v59  ;;  %v5826_v59 = vld [vmem:[%s13023_s4 + $0x28] sm:$0xf]  ;;  %v8131_v60 = vld [vmem:[%s13023_s4 + $0x50] sm:$0xf0] }
 0x112   :  { %v9698_v27 = vadd.f32 %v1627_v25, %v1599_v10  ;;  %v5864_v10 = vld [vmem:[%s13023_s4 + $0xa4] sm:$0xf0]  ;;  %v6219_v25 = vor.u32 %v8224_v13, %v6216_v22 }
 0x113   :  { %v1543_v35 = vpop.f32.mrf.mxu2  ;;  %1929 = vmatpush.bf16.msrb.mxu0 %v5915_v3  ;;  %v5867_v21 = vor.u32 %v8136_v6, %v5864_v10  ;;  %v5827_v3 = vor.u32 %v8131_v60, %v5826_v59  ;;  %v6179_v10 = vor.u32 %v8219_v5, %v6178_v4 }
 0x114   :  { %1902 = vmatpush.bf16.msrb.mxu3 %v6219_v25  ;;  %v6822_v25 = vld [vmem:[%s13022_s3 + $0x268] sm:$0xf] }
 0x115   :  { %v1602_v45 = vpop.f32.mrf.mxu0  ;;  %1874 = vmatpush.bf16.msrb.mxu2 %v5867_v21  ;;  %1959 = vmatpush.bf16.msrb.mxu1 %v6179_v10 }
 0x117   :  { %v1571_v48 = vpop.f32.mrf.mxu3  ;;  %1930 = vmatpush.bf16.msrb.mxu0 %v5871_v36 }
 0x118   :  { %v9724_v50 = vadd.f32 %v1571_v48, %v1543_v35  ;;  %1769 = vmatmul.bf16.gmra.mxu2 %v8816_v62  ;;  %1825 = vmatmul.bf16.gmra.mxu0 %v8816_v62 }
 0x119   :  { %v1630_v55 = vpop.f32.mrf.mxu1 }
 0x11a   :  { %v9728_v57 = vadd.f32 %v1630_v55, %v1602_v45  ;;  %v5820_v45 = vld [vmem:[%s13023_s4 + $0x4c] sm:$0xf0] }
 0x11b   :  { %v1546_v0 = vpop.f32.mrf.mxu2  ;;  %v5823_v48 = vor.u32 %v8125_v44, %v5820_v45  ;;  %v6172_v55 = vld [vmem:[%s13023_s4 + $0x30c] sm:$0xf0]  ;;  %1931 = vmatpush.bf16.msrb.mxu0 %v5827_v3 }
 0x11c   :  { %6473 = vmatmul.msk.bf16.gmra.mxu3 %vm1317_vm1, %v8852_v17  ;;  %6477 = vmatmul.msk.bf16.gmra.mxu1 %vm1317_vm1, %v8852_v17  ;;  %v7130_v3 = vld [vmem:[%s13022_s3 + $0x4d0] sm:$0xf] }
 0x11d   :  { %v1604_v15 = vpop.f32.mrf.mxu0  ;;  %1875 = vmatpush.bf16.msrb.mxu2 %v5823_v48  ;;  %v6824_v48 = vld [vmem:[%s13022_s3 + $0x294] sm:$0xf0] }
 0x11f   :  { %v1574_v29 = vpop.f32.mrf.mxu3 }
 0x120   :  { %v9764_v35 = vadd.f32 %v1574_v29, %v1546_v0  ;;  %v6175_v0 = vor.u32 %v8213_v47, %v6172_v55  ;;  %v8032_v29 = vld [vmem:[%s13022_s3 + $0x290] sm:$0xf0]  ;;  %v8027_v47 = vld [vmem:[%s13022_s3 + $0x26c] sm:$0xf]  ;;  %v2530_v55 = vunpack.c.h.b16 %v217_v31 }
 0x121   :  { %v1632_v37 = vpop.f32.mrf.mxu1  ;;  %v6823_v36 = vor.u32 %v8032_v29, %v6822_v25  ;;  %v6827_v60 = vor.u32 %v8027_v47, %v6824_v48  ;;  %v6734_v48 = vld [vmem:[%s13022_s3 + $0x1b8] sm:$0xf] }
 0x122   :  { %v9772_v41 = vadd.f32 %v1632_v37, %v1604_v15  ;;  %1903 = vmatpush.bf16.msrb.mxu3 %v6175_v0  ;;  %v2529_v37 = vunpack.c.l.b16 %v217_v31  ;;  %v8021_v0 = vld [vmem:[%s13022_s3 + $0x238] sm:$0xf0]  ;;  %v2706_v4 = vpack.c.b16 %v2530_v55, %v2530_v55  ;;  %v8010_v55 = vld [vmem:[%s13022_s3 + $0x1e0] sm:$0xf0] }
 0x123   :  { %v1548_v43 = vpop.f32.mrf.mxu2  ;;  %2926 = vmatpush.bf16.msra.mxu2 %v6823_v36  ;;  %2982 = vmatpush.bf16.msra.mxu0 %v6827_v60  ;;  %v8016_v36 = vld [vmem:[%s13022_s3 + $0x214] sm:$0xf] }
 0x124   :  { %v2705_v40 = vpack.c.b16 %v2529_v37, %v2529_v37  ;;  %v6780_v37 = vld [vmem:[%s13022_s3 + $0x23c] sm:$0xf0] }
 0x125   :  { %v1607_v61 = vpop.f32.mrf.mxu0 }
 0x126   :  { %v2894_v44 = vsel %vm1330_vm0, %v2705_v40, 0 }
 0x127   :  { %v1576_v6 = vpop.f32.mrf.mxu3  ;;  %2954 = vmatpush.bf16.msra.mxu3 %v2894_v44  ;;  %v7132_v44 = vld [vmem:[%s13022_s3 + $0x4fc] sm:$0xf0] }
 0x128   :  { %v9798_v13 = vadd.f32 %v1576_v6, %v1548_v43  ;;  %1774 = vmatmul.bf16.gmra.mxu2 %v8688_v2  ;;  %1830 = vmatmul.bf16.gmra.mxu0 %v8688_v2  ;;  %v8109_v6 = vld [vmem:[%s13022_s3 + $0x4f8] sm:$0xf0] }
 0x129   :  { %v1635_v15 = vpop.f32.mrf.mxu1 }
 0x12a   :  { %v9802_v21 = vadd.f32 %v1635_v15, %v1607_v61  ;;  %v6778_v61 = vld [vmem:[%s13022_s3 + $0x210] sm:$0xf]  ;;  %v7131_v15 = vor.u32 %v8109_v6, %v7130_v3 }
 0x12b   :  { %v1551_v22 = vpop.f32.mrf.mxu2  ;;  %v6779_v5 = vor.u32 %v8021_v0, %v6778_v61  ;;  %v6735_v61 = vor.u32 %v8010_v55, %v6734_v48  ;;  %v8098_v0 = vld [vmem:[%s13022_s3 + $0x4a0] sm:$0xf0] }
 0x12c   :  { %6474 = vmatmul.msk.bf16.gmra.mxu3 %vm1317_vm1, %v8729_v20  ;;  %6478 = vmatmul.msk.bf16.gmra.mxu1 %vm1317_vm1, %v8729_v20 }
 0x12d   :  { %v1609_v39 = vpop.f32.mrf.mxu0  ;;  %2927 = vmatpush.bf16.msra.mxu2 %v6779_v5  ;;  %2955 = vmatpush.bf16.msra.mxu3 %v7131_v15  ;;  %v6736_v15 = vld [vmem:[%s13022_s3 + $0x1e4] sm:$0xf0] }
 0x12f   :  { %v1579_v38 = vpop.f32.mrf.mxu3 }
 0x130   :  { %v9817_v42 = vadd.f32 %v1579_v38, %v1551_v22  ;;  %v2897_v22 = vsel %vm1330_vm0, %v2706_v4, 0  ;;  %v8104_v38 = vld [vmem:[%s13022_s3 + $0x4d4] sm:$0xf] }
 0x131   :  { %v1637_v43 = vpop.f32.mrf.mxu1  ;;  %3010 = vmatpush.bf16.msra.mxu1 %v2897_v22  ;;  %v7135_v47 = vor.u32 %v8104_v38, %v7132_v44  ;;  %2928 = vmatpush.bf16.msra.mxu2 %v6735_v61  ;;  %v8093_v22 = vld [vmem:[%s13022_s3 + $0x47c] sm:$0xf]  ;;  %v7999_v38 = vld [vmem:[%s13022_s3 + $0x188] sm:$0xf0]  ;;  %v7042_v44 = vld [vmem:[%s13022_s3 + $0x420] sm:$0xf] }
 0x132   :  { %v9820_v45 = vadd.f32 %v1637_v43, %v1609_v39  ;;  %v6783_v43 = vor.u32 %v8016_v36, %v6780_v37  ;;  %v7088_v36 = vld [vmem:[%s13022_s3 + $0x4a4] sm:$0xf0]  ;;  %v6690_v37 = vld [vmem:[%s13022_s3 + $0x160] sm:$0xf] }
 0x133   :  { %v1553_v59 = vpop.f32.mrf.mxu2 }
 0x134   :  { %2983 = vmatpush.bf16.msra.mxu0 %v6783_v43  ;;  %v6691_v43 = vor.u32 %v7999_v38, %v6690_v37 }
 0x135   :  { %v1612_v10 = vpop.f32.mrf.mxu0  ;;  %3011 = vmatpush.bf16.msra.mxu1 %v7135_v47  ;;  %v8087_v47 = vld [vmem:[%s13022_s3 + $0x448] sm:$0xf0] }
 0x136   :  { %v7043_v55 = vor.u32 %v8087_v47, %v7042_v44  ;;  %2929 = vmatpush.bf16.msra.mxu2 %v6691_v43 }
 0x137   :  { %v1581_v25 = vpop.f32.mrf.mxu3 }
 0x138   :  { %v9841_v29 = vadd.f32 %v1581_v25, %v1553_v59  ;;  %1779 = vmatmul.bf16.gmra.mxu2 %v8818_v63  ;;  %1835 = vmatmul.bf16.gmra.mxu0 %v8818_v63  ;;  %v7086_v59 = vld [vmem:[%s13022_s3 + $0x478] sm:$0xf] }
 0x139   :  { %v1640_v31 = vpop.f32.mrf.mxu1  ;;  %v7087_v3 = vor.u32 %v8098_v0, %v7086_v59  ;;  %v7994_v0 = vld [vmem:[%s13022_s3 + $0x164] sm:$0xf] }
 0x13a   :  { %v9845_v39 = vadd.f32 %v1640_v31, %v1612_v10  ;;  %v8005_v10 = vld [vmem:[%s13022_s3 + $0x1bc] sm:$0xf] }
 0x13b   :  { %v1556_v40 = vpop.f32.mrf.mxu2  ;;  %2956 = vmatpush.bf16.msra.mxu3 %v7087_v3  ;;  %v6739_v31 = vor.u32 %v8005_v10, %v6736_v15  ;;  %v6692_v3 = vld [vmem:[%s13022_s3 + $0x18c] sm:$0xf0] }
 0x13c   :  { %13028 = vst [vmem:[#allocation5_spill] sm:$0xff] %v9845_v39  ;;  %6475 = vmatmul.msk.bf16.gmra.mxu3 %vm1317_vm1, %v8854_v18  ;;  %6479 = vmatmul.msk.bf16.gmra.mxu1 %vm1317_vm1, %v8854_v18  ;;  %v6695_v10 = vor.u32 %v7994_v0, %v6692_v3  ;;  %v7000_v3 = vld [vmem:[%s13022_s3 + $0x3f4] sm:$0xf0] }
 0x13d   :  { %v1614_v60 = vpop.f32.mrf.mxu0  ;;  %2984 = vmatpush.bf16.msra.mxu0 %v6739_v31  ;;  %v6998_v31 = vld [vmem:[%s13022_s3 + $0x3c8] sm:$0xf] }
 0x13f   :  { %v1584_v4 = vpop.f32.mrf.mxu3  ;;  %2957 = vmatpush.bf16.msra.mxu3 %v7043_v55  ;;  %v6648_v55 = vld [vmem:[%s13022_s3 + $0x134] sm:$0xf0] }
 0x140   :  { %v9875_v5 = vadd.f32 %v1584_v4, %v1556_v40  ;;  %v7091_v40 = vor.u32 %v8093_v22, %v7088_v36  ;;  %v8082_v4 = vld [vmem:[%s13022_s3 + $0x424] sm:$0xf]  ;;  %v6646_v22 = vld [vmem:[%s13022_s3 + $0x108] sm:$0xf] }
 0x141   :  { %v1642_v6 = vpop.f32.mrf.mxu1  ;;  %2985 = vmatpush.bf16.msra.mxu0 %v6695_v10 }
 0x142   :  { %3012 = vmatpush.bf16.msra.mxu1 %v7091_v40 }
 0x143   :  { %v1558_v25 = vpop.f32.mrf.mxu2 }
 0x144   :  { %v7988_v25 = vld [vmem:[%s13022_s3 + $0x130] sm:$0xf0] }
 0x145   :  { %v1709_v48 = vpop.f32.mrf.mxu0  ;;  %v6647_v37 = vor.u32 %v7988_v25, %v6646_v22  ;;  %v8065_v22 = vld [vmem:[%s13022_s3 + $0x398] sm:$0xf0] }
 0x147   :  { %v1586_v59 = vpop.f32.mrf.mxu3  ;;  %2930 = vmatpush.bf16.msra.mxu2 %v6647_v37 }
 0x148   :  { %1876 = vmatmul.bf16.vlgmr.msrb.gmra.mxu2 %v8686_v1  ;;  %1932 = vmatmul.bf16.vlgmr.msrb.gmra.mxu0 %v8686_v1  ;;  %v7044_v1 = vld [vmem:[%s13022_s3 + $0x44c] sm:$0xf0]  ;;  %v8071_v59 = vld [vmem:[%s13022_s3 + $0x3cc] sm:$0xf] }
 0x149   :  { %v1737_v60 = vpop.f32.mrf.mxu1  ;;  %v7047_v15 = vor.u32 %v8082_v4, %v7044_v1  ;;  %v6602_v4 = vld [vmem:[%s13022_s3 + $0xb0] sm:$0xf]  ;;  %v7003_v10 = vor.u32 %v8071_v59, %v7000_v3  ;;  %v7966_v3 = vld [vmem:[%s13022_s3 + $0x80] sm:$0xf0] }
 0x14a   :  { %v9903_v61 = vadd.f32 %v1737_v60, %v1709_v48  ;;  %v7983_v48 = vld [vmem:[%s13022_s3 + $0x10c] sm:$0xf] }
 0x14b   :  { %v1653_v6 = vpop.f32.mrf.mxu2  ;;  %3013 = vmatpush.bf16.msra.mxu1 %v7047_v15  ;;  %v6651_v0 = vor.u32 %v7983_v48, %v6648_v55  ;;  %v6954_v15 = vld [vmem:[%s13022_s3 + $0x370] sm:$0xf]  ;;  %v8060_v48 = vld [vmem:[%s13022_s3 + $0x374] sm:$0xf] }
 0x14c   :  { %13029 = vst [vmem:[#allocation6_spill] sm:$0xff] %v9903_v61  ;;  %6480 = vmatmul.msk.bf16.vlgmr.msrb.gmra.mxu3 %vm1317_vm1, %v8727_v19  ;;  %6484 = vmatmul.msk.bf16.vlgmr.msrb.gmra.mxu1 %vm1317_vm1, %v8727_v19  ;;  %v8076_v19 = vld [vmem:[%s13022_s3 + $0x3f0] sm:$0xf0] }
 0x14d   :  { %v1711_v36 = vpop.f32.mrf.mxu0  ;;  %v6999_v38 = vor.u32 %v8076_v19, %v6998_v31  ;;  %2986 = vmatpush.bf16.msra.mxu0 %v6651_v0  ;;  %v6955_v31 = vor.u32 %v8065_v22, %v6954_v15  ;;  %v6558_v0 = vld [vmem:[%s13022_s3 + $0x58] sm:$0xf]  ;;  %v7961_v22 = vld [vmem:[%s13022_s3 + $0x5c] sm:$0xf] }
 0x14f   :  { %v1681_v40 = vpop.f32.mrf.mxu3  ;;  %2958 = vmatpush.bf16.msra.mxu3 %v6999_v38  ;;  %3014 = vmatpush.bf16.msra.mxu1 %v7003_v10  ;;  %v6559_v10 = vor.u32 %v7966_v3, %v6558_v0  ;;  %v6866_v0 = vld [vmem:[%s13022_s3 + $0x2c0] sm:$0xf] }
 0x150   :  { %v9933_v43 = vadd.f32 %v1681_v40, %v1653_v6  ;;  %v7977_v6 = vld [vmem:[%s13022_s3 + $0xd8] sm:$0xf0]  ;;  %v7972_v40 = vld [vmem:[%s13022_s3 + $0xb4] sm:$0xf] }
 0x151   :  { %v1739_v44 = vpop.f32.mrf.mxu1  ;;  %v6603_v1 = vor.u32 %v7977_v6, %v6602_v4  ;;  %v6910_v4 = vld [vmem:[%s13022_s3 + $0x318] sm:$0xf] }
 0x152   :  { %v9935_v47 = vadd.f32 %v1739_v44, %v1711_v36  ;;  %v6604_v44 = vld [vmem:[%s13022_s3 + $0xdc] sm:$0xf0] }
 0x153   :  { %v1655_v60 = vpop.f32.mrf.mxu2  ;;  %2931 = vmatpush.bf16.msra.mxu2 %v6603_v1  ;;  %2959 = vmatpush.bf16.msra.mxu3 %v6955_v31  ;;  %v6607_v59 = vor.u32 %v7972_v40, %v6604_v44  ;;  %v8049_v40 = vld [vmem:[%s13022_s3 + $0x31c] sm:$0xf]  ;;  %v6912_v44 = vld [vmem:[%s13022_s3 + $0x344] sm:$0xf0] }
 0x154   :  { %13030 = vst [vmem:[#allocation7_spill] sm:$0xff] %v9935_v47 }
 0x155   :  { %v1714_v25 = vpop.f32.mrf.mxu0  ;;  %2987 = vmatpush.bf16.msra.mxu0 %v6607_v59  ;;  %v6915_v59 = vor.u32 %v8049_v40, %v6912_v44 }
 0x157   :  { %v1683_v36 = vpop.f32.mrf.mxu3  ;;  %2932 = vmatpush.bf16.msra.mxu2 %v6559_v10  ;;  %v6516_v10 = vld [vmem:[%s13022_s3 + $0x2c] sm:$0xf0] }
 0x158   :  { %v9961_v37 = vadd.f32 %v1683_v36, %v1655_v60  ;;  %1881 = vmatmul.bf16.gmra.mxu2 %v8816_v62  ;;  %1937 = vmatmul.bf16.gmra.mxu0 %v8816_v62  ;;  %v6956_v62 = vld [vmem:[%s13022_s3 + $0x39c] sm:$0xf0] }
 0x159   :  { %v1742_v19 = vpop.f32.mrf.mxu1  ;;  %v6959_v60 = vor.u32 %v8060_v48, %v6956_v62 }
 0x15a   :  { %v9965_v38 = vadd.f32 %v1742_v19, %v1714_v25  ;;  %v6560_v25 = vld [vmem:[%s13022_s3 + $0x84] sm:$0xf0] }
 0x15b   :  { %v1658_v55 = vpop.f32.mrf.mxu2  ;;  %3015 = vmatpush.bf16.msra.mxu1 %v6959_v60  ;;  %v6563_v36 = vor.u32 %v7961_v22, %v6560_v25  ;;  %v7955_v60 = vld [vmem:[%s13022_s3 + $0x28] sm:$0xf0]  ;;  %v8038_v22 = vld [vmem:[%s13022_s3 + $0x2c4] sm:$0xf] }
 0x15c   :  { %13031 = vst [vmem:[#allocation8_spill] sm:$0xff] %v9965_v38  ;;  %6481 = vmatmul.msk.bf16.gmra.mxu3 %vm1317_vm1, %v8852_v17  ;;  %6485 = vmatmul.msk.bf16.gmra.mxu1 %vm1317_vm1, %v8852_v17  ;;  %v8054_v17 = vld [vmem:[%s13022_s3 + $0x340] sm:$0xf0] }
 0x15d   :  { %v1716_v6 = vpop.f32.mrf.mxu0  ;;  %v6911_v1 = vor.u32 %v8054_v17, %v6910_v4  ;;  %2988 = vmatpush.bf16.msra.mxu0 %v6563_v36  ;;  %v8043_v4 = vld [vmem:[%s13022_s3 + $0x2e8] sm:$0xf0]  ;;  %v6868_v36 = vld [vmem:[%s13022_s3 + $0x2ec] sm:$0xf0] }
 0x15e   :  { %v6871_v40 = vor.u32 %v8038_v22, %v6868_v36  ;;  %v8028_v22 = vld [vmem:[%s13022_s3 + $0x274] sm:$0xf] }
 0x15f   :  { %v1686_v15 = vpop.f32.mrf.mxu3  ;;  %2960 = vmatpush.bf16.msra.mxu3 %v6911_v1  ;;  %3016 = vmatpush.bf16.msra.mxu1 %v6915_v59  ;;  %v6867_v1 = vor.u32 %v8043_v4, %v6866_v0 }
 0x160   :  { %v10001_v31 = vadd.f32 %v1686_v15, %v1658_v55  ;;  %v6514_v55 = vld [vmem:[%s13022_s3] sm:$0xf] }
 0x161   :  { %v1744_v19 = vpop.f32.mrf.mxu1  ;;  %v6515_v3 = vor.u32 %v7955_v60, %v6514_v55  ;;  %v218_v60 = vld [vmem:[%s13022_s3 + $0x530] sm:$0x77] }
 0x162   :  { %v10009_v48 = vadd.f32 %v1744_v19, %v1716_v6  ;;  %v7950_v6 = vld [vmem:[%s13022_s3 + $0x4] sm:$0xf]  ;;  %v2531_v4 = vunpack.c.l.b16 %v218_v60  ;;  %v2532_v36 = vunpack.c.h.b16 %v218_v60 }
 0x163   :  { %v1660_v62 = vpop.f32.mrf.mxu2  ;;  %v6519_v15 = vor.u32 %v7950_v6, %v6516_v10  ;;  %2933 = vmatpush.bf16.msra.mxu2 %v6515_v3  ;;  %2961 = vmatpush.bf16.msra.mxu3 %v6867_v1  ;;  %v8110_v60 = vld [vmem:[%s13022_s3 + $0x500] sm:$0xf0] }
 0x164   :  { %13032 = vst [vmem:[#allocation9_spill] sm:$0xff] %v10009_v48  ;;  %3017 = vmatpush.bf16.msra.mxu1 %v6871_v40  ;;  %v2707_v10 = vpack.c.b16 %v2531_v4, %v2531_v4 }
 0x165   :  { %v1719_v17 = vpop.f32.mrf.mxu0  ;;  %2989 = vmatpush.bf16.msra.mxu0 %v6519_v15 }
 0x166   :  { %v2900_v1 = vsel %vm1330_vm0, %v2707_v10, 0 }
 0x167   :  { %v1688_v25 = vpop.f32.mrf.mxu3  ;;  %3066 = vmatpush.bf16.msrb.mxu3 %v2900_v1 }
 0x168   :  { %v10035_v19 = vadd.f32 %v1688_v25, %v1660_v62  ;;  %1886 = vmatmul.bf16.gmra.mxu2 %v8688_v2  ;;  %1942 = vmatmul.bf16.gmra.mxu0 %v8688_v2  ;;  %v6830_v62 = vld [vmem:[%s13022_s3 + $0x270] sm:$0xf]  ;;  %v8033_v2 = vld [vmem:[%s13022_s3 + $0x298] sm:$0xf0]  ;;  %v6832_v25 = vld [vmem:[%s13022_s3 + $0x29c] sm:$0xf0] }
 0x169   :  { %v1747_v44 = vpop.f32.mrf.mxu1  ;;  %v6831_v3 = vor.u32 %v8033_v2, %v6830_v62  ;;  %v8022_v62 = vld [vmem:[%s13022_s3 + $0x240] sm:$0xf0]  ;;  %v7138_v2 = vld [vmem:[%s13022_s3 + $0x4d8] sm:$0xf] }
 0x16a   :  { %v10039_v59 = vadd.f32 %v1747_v44, %v1719_v17  ;;  %v6835_v44 = vor.u32 %v8028_v22, %v6832_v25 }
 0x16b   :  { %v1663_v55 = vpop.f32.mrf.mxu2  ;;  %3038 = vmatpush.bf16.msrb.mxu2 %v6831_v3 }
 0x16c   :  { %13033 = vst [vmem:[#allocation10_spill] sm:$0xff] %v10039_v59  ;;  %6482 = vmatmul.msk.bf16.gmra.mxu3 %vm1317_vm1, %v8729_v20  ;;  %6486 = vmatmul.msk.bf16.gmra.mxu1 %vm1317_vm1, %v8729_v20  ;;  %v7946_v59 = vld [vmem:[%s13019_s0 + $0x14] sm:$0xf] }
 0x16d   :  { %v1721_v0 = vpop.f32.mrf.mxu0  ;;  %3094 = vmatpush.bf16.msrb.mxu0 %v6835_v44  ;;  %v6788_v44 = vld [vmem:[%s13022_s3 + $0x244] sm:$0xf0] }
 0x16f   :  { %v1691_v6 = vpop.f32.mrf.mxu3 }
 0x170   :  { %v10054_v17 = vadd.f32 %v1691_v6, %v1663_v55  ;;  %v6786_v55 = vld [vmem:[%s13022_s3 + $0x218] sm:$0xf]  ;;  %v7139_v6 = vor.u32 %v8110_v60, %v7138_v2  ;;  %v7094_v60 = vld [vmem:[%s13022_s3 + $0x480] sm:$0xf] }
 0x171   :  { %v1749_v20 = vpop.f32.mrf.mxu1  ;;  %v6787_v3 = vor.u32 %v8022_v62, %v6786_v55 }
 0x172   :  { %v10057_v15 = vadd.f32 %v1749_v20, %v1721_v0  ;;  %v2708_v0 = vpack.c.b16 %v2532_v36, %v2532_v36  ;;  %3067 = vmatpush.bf16.msrb.mxu3 %v7139_v6  ;;  %v8017_v36 = vld [vmem:[%s13022_s3 + $0x21c] sm:$0xf] }
 0x173   :  { %v1665_v40 = vpop.f32.mrf.mxu2  ;;  %3039 = vmatpush.bf16.msrb.mxu2 %v6787_v3  ;;  %v6791_v62 = vor.u32 %v8017_v36, %v6788_v44  ;;  %v8011_v3 = vld [vmem:[%s13022_s3 + $0x1e8] sm:$0xf0]  ;;  %v6490_v44 = vld [vmem:[%s13019_s0] sm:$0xf] }
 0x174   :  { %13034 = vst [vmem:[#allocation11_spill] sm:$0xff] %v10057_v15  ;;  %v2903_v10 = vsel %vm1330_vm0, %v2708_v0, 0  ;;  %v6742_v0 = vld [vmem:[%s13022_s3 + $0x1c0] sm:$0xf] }
 0x175   :  { %v1724_v4 = vpop.f32.mrf.mxu0  ;;  %3122 = vmatpush.bf16.msrb.mxu1 %v2903_v10  ;;  %3095 = vmatpush.bf16.msrb.mxu0 %v6791_v62  ;;  %v6743_v6 = vor.u32 %v8011_v3, %v6742_v0  ;;  %v8006_v62 = vld [vmem:[%s13022_s3 + $0x1c4] sm:$0xf]  ;;  %v7096_v3 = vld [vmem:[%s13022_s3 + $0x4ac] sm:$0xf0] }
 0x177   :  { %v1693_v20 = vpop.f32.mrf.mxu3  ;;  %3040 = vmatpush.bf16.msrb.mxu2 %v6743_v6 }
 0x178   :  { %v10078_v1 = vadd.f32 %v1693_v20, %v1665_v40  ;;  %1891 = vmatmul.bf16.gmra.mxu2 %v8818_v63  ;;  %1947 = vmatmul.bf16.gmra.mxu0 %v8818_v63  ;;  %v8105_v40 = vld [vmem:[%s13022_s3 + $0x4dc] sm:$0xf]  ;;  %v7140_v63 = vld [vmem:[%s13022_s3 + $0x504] sm:$0xf0] }
 0x179   :  { %v1752_v22 = vpop.f32.mrf.mxu1  ;;  %v7143_v2 = vor.u32 %v8105_v40, %v7140_v63  ;;  %v7945_v40 = vld [vmem:[%s13019_s0 + $0x4] sm:$0xf0]  ;;  %v6744_v63 = vld [vmem:[%s13022_s3 + $0x1ec] sm:$0xf0] }
 0x17a   :  { %v10082_v25 = vadd.f32 %v1752_v22, %v1724_v4  ;;  %v6747_v0 = vor.u32 %v8006_v62, %v6744_v63  ;;  %v10138_v6 = vor.u32 %v7945_v40, %v6490_v44  ;;  %v7944_v63 = vld [vmem:[%s13019_s0 + $0x4] sm:$0xf]  ;;  %v6492_v44 = vld [vmem:[%s13019_s0 + $0x8] sm:$0xf0] }
 0x17b   :  { %v1668_v55 = vpop.f32.mrf.mxu2  ;;  %3123 = vmatpush.bf16.msrb.mxu1 %v7143_v2 }
 0x17c   :  { %13035 = vst [vmem:[#allocation12_spill] sm:$0xff] %v10082_v25  ;;  %6483 = vmatmul.msk.bf16.gmra.mxu3 %vm1317_vm1, %v8854_v18  ;;  %6487 = vmatmul.msk.bf16.gmra.mxu1 %vm1317_vm1, %v8854_v18  ;;  %v8099_v18 = vld [vmem:[%s13022_s3 + $0x4a8] sm:$0xf0]  ;;  %v6498_v25 = vld [vmem:[%s13019_s0 + $0x10] sm:$0xf] }
 0x17d   :  { %v1726_v4 = vpop.f32.mrf.mxu0  ;;  %v7095_v10 = vor.u32 %v8099_v18, %v7094_v60  ;;  %v6698_v60 = vld [vmem:[%s13022_s3 + $0x168] sm:$0xf]  ;;  %3096 = vmatpush.bf16.msrb.mxu0 %v6747_v0  ;;  %v6700_v0 = vld [vmem:[%s13022_s3 + $0x194] sm:$0xf0] }
 0x17e   :  { %v8000_v4 = vld [vmem:[%s13022_s3 + $0x190] sm:$0xf0] }
 0x17f   :  { %v1696_v20 = vpop.f32.mrf.mxu3  ;;  %3068 = vmatpush.bf16.msrb.mxu3 %v7095_v10  ;;  %v6699_v10 = vor.u32 %v8000_v4, %v6698_v60  ;;  %v7995_v4 = vld [vmem:[%s13022_s3 + $0x16c] sm:$0xf] }
 0x180   :  { %v10112_v22 = vadd.f32 %v1696_v20, %v1668_v55  ;;  %v8094_v55 = vld [vmem:[%s13022_s3 + $0x484] sm:$0xf]  ;;  %v7050_v20 = vld [vmem:[%s13022_s3 + $0x428] sm:$0xf] }
 0x181   :  { %v1754_v36 = vpop.f32.mrf.mxu1  ;;  %v7099_v18 = vor.u32 %v8094_v55, %v7096_v3  ;;  %3041 = vmatpush.bf16.msrb.mxu2 %v6699_v10 }
 0x182   :  { %13036 = vst [vmem:[#allocation13_spill] sm:$0xff] %v10112_v22  ;;  %v8088_v36 = vld [vmem:[%s13022_s3 + $0x450] sm:$0xf0] }
 0x183   :  { %v1670_v2 = vpop.f32.mrf.mxu2  ;;  %v7051_v40 = vor.u32 %v8088_v36, %v7050_v20  ;;  %3124 = vmatpush.bf16.msrb.mxu1 %v7099_v18  ;;  %v8083_v18 = vld [vmem:[%s13022_s3 + $0x42c] sm:$0xf]  ;;  %v6703_v20 = vor.u32 %v7995_v4, %v6700_v0  ;;  %v7052_v36 = vld [vmem:[%s13022_s3 + $0x454] sm:$0xf0]  ;;  %v8077_v4 = vld [vmem:[%s13022_s3 + $0x3f8] sm:$0xf0] }
 0x184   :  { %v10154_v2 = vor.u32 %v7944_v63, %v6492_v44  ;;  %v6654_v63 = vld [vmem:[%s13022_s3 + $0x110] sm:$0xf]  ;;  %v7989_v44 = vld [vmem:[%s13022_s3 + $0x138] sm:$0xf0] }
 0x185   :  { %v1821_v62 = vpop.f32.mrf.mxu0  ;;  %3069 = vmatpush.bf16.msrb.mxu3 %v7051_v40  ;;  %v7006_v40 = vld [vmem:[%s13022_s3 + $0x3d0] sm:$0xf]  ;;  %3097 = vmatpush.bf16.msrb.mxu0 %v6703_v20  ;;  %v7947_v20 = vld [vmem:[%s13019_s0 + $0x14] sm:$0xf0] }
 0x186   :  { %v7007_v0 = vor.u32 %v8077_v4, %v7006_v40  ;;  %v7008_v4 = vld [vmem:[%s13022_s3 + $0x3fc] sm:$0xf0] }
 0x187   :  { %v1698_v55 = vpop.f32.mrf.mxu3 }
 0x188   :  { %2934 = vmatmul.bf16.vlgmr.msra.gmra.mxu2 %v10138_v6  ;;  %2990 = vmatmul.bf16.vlgmr.msra.gmra.mxu0 %v10138_v6 }
 0x189   :  { %v1849_v3 = vpop.f32.mrf.mxu1  ;;  %3070 = vmatpush.bf16.msrb.mxu3 %v7007_v0  ;;  %v10214_v0 = vor.u32 %v7947_v20, %v6498_v25  ;;  %v6500_v25 = vld [vmem:[%s13019_s0 + $0x18] sm:$0xf0] }
 0x18a   :  { %v10156_v60 = vadd.f32 %v1849_v3, %v1821_v62  ;;  %v7055_v62 = vor.u32 %v8083_v18, %v7052_v36  ;;  %v6655_v3 = vor.u32 %v7989_v44, %v6654_v63  ;;  %v8072_v44 = vld [vmem:[%s13022_s3 + $0x3d4] sm:$0xf] }
 0x18b   :  { %v1765_v10 = vpop.f32.mrf.mxu2 }
 0x18c   :  { %13037 = vst [vmem:[#allocation14_spill] sm:$0xff] %v10156_v60  ;;  %7172 = vmatmul.msk.bf16.vlgmr.msra.gmra.mxu3 %vm1317_vm1, %v10154_v2  ;;  %7176 = vmatmul.msk.bf16.vlgmr.msra.gmra.mxu1 %vm1317_vm1, %v10154_v2 }
 0x18d   :  { %v1823_v55 = vpop.f32.mrf.mxu0  ;;  %3125 = vmatpush.bf16.msrb.mxu1 %v7055_v62  ;;  %3042 = vmatpush.bf16.msrb.mxu2 %v6655_v3  ;;  %v7984_v62 = vld [vmem:[%s13022_s3 + $0x114] sm:$0xf] }
 0x18f   :  { %v1793_v18 = vpop.f32.mrf.mxu3 }
 0x190   :  { %v10186_v36 = vadd.f32 %v1793_v18, %v1765_v10  ;;  %v6656_v10 = vld [vmem:[%s13022_s3 + $0x13c] sm:$0xf0]  ;;  %v7011_v18 = vor.u32 %v8072_v44, %v7008_v4 }
 0x191   :  { %v1851_v60 = vpop.f32.mrf.mxu1  ;;  %v6659_v3 = vor.u32 %v7984_v62, %v6656_v10  ;;  %v6962_v62 = vld [vmem:[%s13022_s3 + $0x378] sm:$0xf]  ;;  %v8066_v10 = vld [vmem:[%s13022_s3 + $0x3a0] sm:$0xf0] }
 0x192   :  { %13038 = vst [vmem:[#allocation15_spill] sm:$0xff] %v10186_v36  ;;  %v10194_v63 = vadd.f32 %v1851_v60, %v1823_v55  ;;  %v6610_v60 = vld [vmem:[%s13022_s3 + $0xb8] sm:$0xf]  ;;  %v7978_v55 = vld [vmem:[%s13022_s3 + $0xe0] sm:$0xf0]  ;;  %v6963_v20 = vor.u32 %v8066_v10, %v6962_v62  ;;  %3126 = vmatpush.bf16.msrb.mxu1 %v7011_v18 }
 0x193   :  { %v1767_v40 = vpop.f32.mrf.mxu2  ;;  %3098 = vmatpush.bf16.msrb.mxu0 %v6659_v3  ;;  %v7973_v3 = vld [vmem:[%s13022_s3 + $0xbc] sm:$0xf]  ;;  %v6566_v10 = vld [vmem:[%s13022_s3 + $0x60] sm:$0xf] }
 0x194   :  { %13039 = vst [vmem:[#allocation16_spill] sm:$0xff] %v10194_v63  ;;  %v6611_v63 = vor.u32 %v7978_v55, %v6610_v60  ;;  %3071 = vmatpush.bf16.msrb.mxu3 %v6963_v20  ;;  %v10232_v60 = vor.u32 %v7946_v59, %v6500_v25  ;;  %v6964_v59 = vld [vmem:[%s13022_s3 + $0x3a4] sm:$0xf0]  ;;  %v7967_v25 = vld [vmem:[%s13022_s3 + $0x88] sm:$0xf0] }
 0x195   :  { %v1826_v15 = vpop.f32.mrf.mxu0  ;;  %v6918_v20 = vld [vmem:[%s13022_s3 + $0x320] sm:$0xf]  ;;  %v8029_v36 = vld [vmem:[%s13022_s3 + $0x27c] sm:$0xf] }
 0x196   :  { %3043 = vmatpush.bf16.msrb.mxu2 %v6611_v63  ;;  %v6612_v63 = vld [vmem:[%s13022_s3 + $0xe4] sm:$0xf0] }
 0x197   :  { %v1795_v44 = vpop.f32.mrf.mxu3  ;;  %v6615_v62 = vor.u32 %v7973_v3, %v6612_v63  ;;  %v8055_v3 = vld [vmem:[%s13022_s3 + $0x348] sm:$0xf0] }
 0x198   :  { %v10228_v4 = vadd.f32 %v1795_v44, %v1767_v40  ;;  %2939 = vmatmul.bf16.gmra.mxu2 %v10214_v0  ;;  %2995 = vmatmul.bf16.gmra.mxu0 %v10214_v0  ;;  %v8061_v40 = vld [vmem:[%s13022_s3 + $0x37c] sm:$0xf]  ;;  %v6919_v63 = vor.u32 %v8055_v3, %v6918_v20  ;;  %v8050_v20 = vld [vmem:[%s13022_s3 + $0x324] sm:$0xf] }
 0x199   :  { %v1854_v55 = vpop.f32.mrf.mxu1  ;;  %3099 = vmatpush.bf16.msrb.mxu0 %v6615_v62  ;;  %v6506_v62 = vld [vmem:[%s13019_s0 + $0x20] sm:$0xf] }
 0x19a   :  { %13040 = vst [vmem:[#allocation17_spill] sm:$0xff] %v10228_v4  ;;  %v10234_v48 = vadd.f32 %v1854_v55, %v1826_v15  ;;  %v6967_v15 = vor.u32 %v8061_v40, %v6964_v59  ;;  %v6567_v55 = vor.u32 %v7967_v25, %v6566_v10  ;;  %v7962_v59 = vld [vmem:[%s13022_s3 + $0x64] sm:$0xf]  ;;  %3072 = vmatpush.bf16.msrb.mxu3 %v6919_v63  ;;  %v7949_v25 = vld [vmem:[%s13019_s0 + $0x24] sm:$0xf0] }
 0x19b   :  { %v1770_v18 = vpop.f32.mrf.mxu2  ;;  %v7956_v63 = vld [vmem:[%s13022_s3 + $0x30] sm:$0xf0] }
 0x19c   :  { %13041 = vst [vmem:[#allocation18_spill] sm:$0xff] %v10234_v48  ;;  %7173 = vmatmul.msk.bf16.gmra.mxu3 %vm1317_vm1, %v10232_v60  ;;  %7177 = vmatmul.msk.bf16.gmra.mxu1 %vm1317_vm1, %v10232_v60  ;;  %v6568_v48 = vld [vmem:[%s13022_s3 + $0x8c] sm:$0xf0] }
 0x19d   :  { %v1828_v44 = vpop.f32.mrf.mxu0  ;;  %3127 = vmatpush.bf16.msrb.mxu1 %v6967_v15  ;;  %3044 = vmatpush.bf16.msrb.mxu2 %v6567_v55  ;;  %v6571_v10 = vor.u32 %v7962_v59, %v6568_v48  ;;  %v6522_v48 = vld [vmem:[%s13022_s3 + $0x8] sm:$0xf] }
 0x19e   :  { %v6874_v59 = vld [vmem:[%s13022_s3 + $0x2c8] sm:$0xf] }
 0x19f   :  { %v1798_v40 = vpop.f32.mrf.mxu3  ;;  %3100 = vmatpush.bf16.msrb.mxu0 %v6571_v10  ;;  %v8044_v10 = vld [vmem:[%s13022_s3 + $0x2f0] sm:$0xf0] }
 0x1a0   :  { %v10270_v38 = vadd.f32 %v1798_v40, %v1770_v18  ;;  %v6920_v18 = vld [vmem:[%s13022_s3 + $0x34c] sm:$0xf0] }
 0x1a1   :  { %v1856_v15 = vpop.f32.mrf.mxu1  ;;  %v6923_v3 = vor.u32 %v8050_v20, %v6920_v18  ;;  %v6524_v20 = vld [vmem:[%s13022_s3 + $0x34] sm:$0xf0] }
 0x1a2   :  { %13042 = vst [vmem:[#allocation19_spill] sm:$0xff] %v10270_v38  ;;  %v10284_v55 = vadd.f32 %v1856_v15, %v1828_v44  ;;  %v10295_v38 = vor.u32 %v7949_v25, %v6506_v62  ;;  %v6523_v44 = vor.u32 %v7956_v63, %v6522_v48  ;;  %v7951_v15 = vld [vmem:[%s13022_s3 + $0xc] sm:$0xf]  ;;  %v7948_v62 = vld [vmem:[%s13019_s0 + $0x24] sm:$0xf] }
 0x1a3   :  { %v1772_v40 = vpop.f32.mrf.mxu2  ;;  %3128 = vmatpush.bf16.msrb.mxu1 %v6923_v3  ;;  %v6508_v25 = vld [vmem:[%s13019_s0 + $0x28] sm:$0xf0]  ;;  %v6875_v3 = vor.u32 %v8044_v10, %v6874_v59  ;;  %v6527_v48 = vor.u32 %v7951_v15, %v6524_v20  ;;  %v36_v20 = vld [vmem:[%s13019_s0 + $0x30] sm:$0xff] }
 0x1a4   :  { %13043 = vst [vmem:[#allocation20_spill] sm:$0xff] %v10284_v55  ;;  %3045 = vmatpush.bf16.msrb.mxu2 %v6523_v44  ;;  %v8039_v63 = vld [vmem:[%s13022_s3 + $0x2cc] sm:$0xf]  ;;  %v6876_v55 = vld [vmem:[%s13022_s3 + $0x2f4] sm:$0xf0]  ;;  %v10322_v59 = vor.u32 %v7948_v62, %v6508_v25 }
 0x1a5   :  { %v1831_v18 = vpop.f32.mrf.mxu0  ;;  %3073 = vmatpush.bf16.msrb.mxu3 %v6875_v3  ;;  %3101 = vmatpush.bf16.msrb.mxu0 %v6527_v48  ;;  %v6879_v4 = vor.u32 %v8039_v63, %v6876_v55  ;;  %v8034_v55 = vld [vmem:[%s13022_s3 + $0x2a0] sm:$0xf0]  ;;  %v1999_v63 = vunpack.c.l.b16 %v36_v20 }
 0x1a7   :  { %v1800_v47 = vpop.f32.mrf.mxu3  ;;  %3129 = vmatpush.bf16.msrb.mxu1 %v6879_v4  ;;  %v219_v4 = vld [vmem:[%s13022_s3 + $0x538] sm:$0x77] }
 0x1a8   :  { %v10318_v61 = vadd.f32 %v1800_v47, %v1772_v40  ;;  %2944 = vmatmul.bf16.gmra.mxu2 %v10295_v38  ;;  %3000 = vmatmul.bf16.gmra.mxu0 %v10295_v38  ;;  %v6838_v47 = vld [vmem:[%s13022_s3 + $0x278] sm:$0xf]  ;;  %v2533_v62 = vunpack.c.l.b16 %v219_v4 }
 0x1a9   :  { %v1859_v44 = vpop.f32.mrf.mxu1 }
 0x1aa   :  { %13044 = vst [vmem:[#allocation21_spill] sm:$0xff] %v10318_v61  ;;  %v10324_v10 = vadd.f32 %v1859_v44, %v1831_v18  ;;  %v6839_v18 = vor.u32 %v8034_v55, %v6838_v47  ;;  %v2709_v3 = vpack.c.b16 %v2533_v62, %v2533_v62  ;;  %v6840_v47 = vld [vmem:[%s13022_s3 + $0x2a4] sm:$0xf0]  ;;  %v2534_v55 = vunpack.c.h.b16 %v219_v4 }
 0x1ab   :  { %v1775_v15 = vpop.f32.mrf.mxu2  ;;  %v6843_v62 = vor.u32 %v8029_v36, %v6840_v47  ;;  %v8111_v36 = vld [vmem:[%s13022_s3 + $0x508] sm:$0xf0] }
 0x1ac   :  { %13045 = vst [vmem:[#allocation22_spill] sm:$0xff] %v10324_v10  ;;  %7174 = vmatmul.msk.bf16.gmra.mxu3 %vm1317_vm1, %v10322_v59  ;;  %7178 = vmatmul.msk.bf16.gmra.mxu1 %vm1317_vm1, %v10322_v59  ;;  %v2906_v10 = vsel %vm1330_vm0, %v2709_v3, 0  ;;  %v2000_v3 = vunpack.c.h.b16 %v36_v20 }
 0x1ad   :  { %v1833_v40 = vpop.f32.mrf.mxu0  ;;  %3150 = vmatpush.bf16.msra.mxu2 %v6839_v18  ;;  %3178 = vmatpush.bf16.msra.mxu3 %v2906_v10  ;;  %v7146_v10 = vld [vmem:[%s13022_s3 + $0x4e0] sm:$0xf] }
 0x1ae   :  { %3206 = vmatpush.bf16.msra.mxu0 %v6843_v62  ;;  %v7147_v47 = vor.u32 %v8111_v36, %v7146_v10  ;;  %v10372_v20 = vpack.c.b16 %v2000_v3, %v2000_v3  ;;  %v8018_v62 = vld [vmem:[%s13022_s3 + $0x224] sm:$0xf]  ;;  %v6750_v10 = vld [vmem:[%s13022_s3 + $0x1c8] sm:$0xf]  ;;  %v8012_v3 = vld [vmem:[%s13022_s3 + $0x1f0] sm:$0xf0] }
 0x1af   :  { %v1803_v25 = vpop.f32.mrf.mxu3 }
 0x1b0   :  { %v10342_v48 = vadd.f32 %v1803_v25, %v1775_v15  ;;  %v6794_v15 = vld [vmem:[%s13022_s3 + $0x220] sm:$0xf]  ;;  %v10362_v25 = vpack.c.b16 %v1999_v63, %v1999_v63 }
 0x1b1   :  { %v1861_v44 = vpop.f32.mrf.mxu1  ;;  %3179 = vmatpush.bf16.msra.mxu3 %v7147_v47  ;;  %v8100_v47 = vld [vmem:[%s13022_s3 + $0x4b0] sm:$0xf0] }
 0x1b2   :  { %13046 = vst [vmem:[#allocation23_spill] sm:$0xff] %v10342_v48  ;;  %v10345_v61 = vadd.f32 %v1861_v44, %v1833_v40  ;;  %v8023_v40 = vld [vmem:[%s13022_s3 + $0x248] sm:$0xf0]  ;;  %v2710_v44 = vpack.c.b16 %v2534_v55, %v2534_v55 }
 0x1b3   :  { %v1777_v18 = vpop.f32.mrf.mxu2 }
 0x1b4   :  { %13047 = vst [vmem:[#allocation24_spill] sm:$0xff] %v10345_v61  ;;  %v6795_v61 = vor.u32 %v8023_v40, %v6794_v15  ;;  %v2909_v48 = vsel %vm1330_vm0, %v2710_v44, 0  ;;  %v7148_v15 = vld [vmem:[%s13022_s3 + $0x50c] sm:$0xf0]  ;;  %v7102_v44 = vld [vmem:[%s13022_s3 + $0x488] sm:$0xf] }
 0x1b5   :  { %v1836_v4 = vpop.f32.mrf.mxu0  ;;  %3234 = vmatpush.bf16.msra.mxu1 %v2909_v48 }
 0x1b6   :  { %3151 = vmatpush.bf16.msra.mxu2 %v6795_v61  ;;  %v6796_v61 = vld [vmem:[%s13022_s3 + $0x24c] sm:$0xf0] }
 0x1b7   :  { %v1805_v39 = vpop.f32.mrf.mxu3 }
 0x1b8   :  { %v10368_v22 = vadd.f32 %v1805_v39, %v1777_v18  ;;  %2949 = vmatmul.bf16.gmra.mxu2 %v10362_v25  ;;  %3005 = vmatmul.bf16.gmra.mxu0 %v10362_v25  ;;  %v8106_v39 = vld [vmem:[%s13022_s3 + $0x4e4] sm:$0xf]  ;;  %v6799_v18 = vor.u32 %v8018_v62, %v6796_v61 }
 0x1b9   :  { %v1864_v63 = vpop.f32.mrf.mxu1  ;;  %v7151_v40 = vor.u32 %v8106_v39, %v7148_v15  ;;  %v8007_v15 = vld [vmem:[%s13022_s3 + $0x1cc] sm:$0xf] }
 0x1ba   :  { %v10374_v55 = vadd.f32 %v1864_v63, %v1836_v4  ;;  %3207 = vmatpush.bf16.msra.mxu0 %v6799_v18  ;;  %v6751_v4 = vor.u32 %v8012_v3, %v6750_v10  ;;  %v7103_v63 = vor.u32 %v8100_v47, %v7102_v44  ;;  %v6752_v18 = vld [vmem:[%s13022_s3 + $0x1f4] sm:$0xf0]  ;;  %v8095_v10 = vld [vmem:[%s13022_s3 + $0x48c] sm:$0xf]  ;;  %v6706_v44 = vld [vmem:[%s13022_s3 + $0x170] sm:$0xf] }
 0x1bb   :  { %v1780_v48 = vpop.f32.mrf.mxu2  ;;  %3235 = vmatpush.bf16.msra.mxu1 %v7151_v40  ;;  %v6755_v3 = vor.u32 %v8007_v15, %v6752_v18 }
 0x1bc   :  { %13048 = vst [vmem:[#allocation25_spill] sm:$0xff] %v10374_v55  ;;  %7175 = vmatmul.msk.bf16.gmra.mxu3 %vm1317_vm1, %v10372_v20  ;;  %7179 = vmatmul.msk.bf16.gmra.mxu1 %vm1317_vm1, %v10372_v20 }
 0x1bd   :  { %v1838_v36 = vpop.f32.mrf.mxu0  ;;  %3152 = vmatpush.bf16.msra.mxu2 %v6751_v4  ;;  %3180 = vmatpush.bf16.msra.mxu3 %v7103_v63  ;;  %v7058_v63 = vld [vmem:[%s13022_s3 + $0x430] sm:$0xf] }
 0x1be   :  { %v8001_v36 = vld [vmem:[%s13022_s3 + $0x198] sm:$0xf0]  ;;  %3208 = vmatpush.bf16.msra.mxu0 %v6755_v3  ;;  %v6708_v3 = vld [vmem:[%s13022_s3 + $0x19c] sm:$0xf0] }
 0x1bf   :  { %v1808_v62 = vpop.f32.mrf.mxu3  ;;  %v6707_v47 = vor.u32 %v8001_v36, %v6706_v44  ;;  %v8084_v44 = vld [vmem:[%s13022_s3 + $0x434] sm:$0xf] }
 0x1c0   :  { %v10404_v61 = vadd.f32 %v1808_v62, %v1780_v48  ;;  %v7104_v48 = vld [vmem:[%s13022_s3 + $0x4b4] sm:$0xf0]  ;;  %v8089_v62 = vld [vmem:[%s13022_s3 + $0x458] sm:$0xf0] }
 0x1c1   :  { %v1866_v39 = vpop.f32.mrf.mxu1  ;;  %v7107_v4 = vor.u32 %v8095_v10, %v7104_v48  ;;  %v7059_v15 = vor.u32 %v8089_v62, %v7058_v63  ;;  %3153 = vmatpush.bf16.msra.mxu2 %v6707_v47  ;;  %v7996_v48 = vld [vmem:[%s13022_s3 + $0x174] sm:$0xf]  ;;  %v7060_v47 = vld [vmem:[%s13022_s3 + $0x45c] sm:$0xf0]  ;;  %v6662_v62 = vld [vmem:[%s13022_s3 + $0x118] sm:$0xf] }
 0x1c2   :  { %13049 = vst [vmem:[#allocation26_spill] sm:$0xff] %v10404_v61  ;;  %v7063_v63 = vor.u32 %v8084_v44, %v7060_v47  ;;  %v7985_v61 = vld [vmem:[%s13022_s3 + $0x11c] sm:$0xf] }
 0x1c3   :  { %v1782_v40 = vpop.f32.mrf.mxu2  ;;  %3236 = vmatpush.bf16.msra.mxu1 %v7107_v4  ;;  %3181 = vmatpush.bf16.msra.mxu3 %v7059_v15  ;;  %v6711_v4 = vor.u32 %v7996_v48, %v6708_v3  ;;  %v7014_v15 = vld [vmem:[%s13022_s3 + $0x3d8] sm:$0xf]  ;;  %v8078_v48 = vld [vmem:[%s13022_s3 + $0x400] sm:$0xf0] }
 0x1c4   :  { %v7015_v3 = vor.u32 %v8078_v48, %v7014_v15  ;;  %v7979_v15 = vld [vmem:[%s13022_s3 + $0xe8] sm:$0xf0]  ;;  %v6970_v48 = vld [vmem:[%s13022_s3 + $0x380] sm:$0xf] }
 0x1c5   :  { %v1933_v39 = vpop.f32.mrf.mxu0  ;;  %3209 = vmatpush.bf16.msra.mxu0 %v6711_v4  ;;  %v6664_v4 = vld [vmem:[%s13022_s3 + $0x144] sm:$0xf0] }
 0x1c7   :  { %v1810_v18 = vpop.f32.mrf.mxu3  ;;  %3237 = vmatpush.bf16.msra.mxu1 %v7063_v63  ;;  %3182 = vmatpush.bf16.msra.mxu3 %v7015_v3  ;;  %v8073_v63 = vld [vmem:[%s13022_s3 + $0x3dc] sm:$0xf] }
 0x1c8   :  { %3046 = vmatmul.bf16.vlgmr.msrb.gmra.mxu2 %v10138_v6  ;;  %3102 = vmatmul.bf16.vlgmr.msrb.gmra.mxu0 %v10138_v6 }
 0x1c9   :  { %v1961_v10 = vpop.f32.mrf.mxu1 }
 0x1ca   :  { %v10432_v40 = vadd.f32 %v1961_v10, %v1933_v39  ;;  %v7990_v39 = vld [vmem:[%s13022_s3 + $0x140] sm:$0xf0] }
 0x1cb   :  { %v1877_v36 = vpop.f32.mrf.mxu2  ;;  %v6663_v10 = vor.u32 %v7990_v39, %v6662_v62  ;;  %v6667_v39 = vor.u32 %v7985_v61, %v6664_v4  ;;  %v8067_v61 = vld [vmem:[%s13022_s3 + $0x3a8] sm:$0xf0] }
 0x1cc   :  { %13050 = vst [vmem:[#allocation27_spill] sm:$0xff] %v10432_v40  ;;  %7180 = vmatmul.msk.bf16.vlgmr.msrb.gmra.mxu3 %vm1317_vm1, %v10154_v2  ;;  %7184 = vmatmul.msk.bf16.vlgmr.msrb.gmra.mxu1 %vm1317_vm1, %v10154_v2 }
 0x1cd   :  { %v1935_v18 = vpop.f32.mrf.mxu0  ;;  %3154 = vmatpush.bf16.msra.mxu2 %v6663_v10  ;;  %3210 = vmatpush.bf16.msra.mxu0 %v6667_v39  ;;  %v6620_v39 = vld [vmem:[%s13022_s3 + $0xec] sm:$0xf0] }
 0x1cf   :  { %v1905_v44 = vpop.f32.mrf.mxu3 }
 0x1d0   :  { %v10462_v47 = vadd.f32 %v1905_v44, %v1877_v36  ;;  %v7016_v36 = vld [vmem:[%s13022_s3 + $0x404] sm:$0xf0]  ;;  %v6971_v44 = vor.u32 %v8067_v61, %v6970_v48 }
 0x1d1   :  { %v1963_v40 = vpop.f32.mrf.mxu1  ;;  %v6574_v61 = vld [vmem:[%s13022_s3 + $0x68] sm:$0xf] }
 0x1d2   :  { %13051 = vst [vmem:[#allocation28_spill] sm:$0xff] %v10462_v47  ;;  %v10464_v55 = vadd.f32 %v1963_v40, %v1935_v18  ;;  %v6618_v40 = vld [vmem:[%s13022_s3 + $0xc0] sm:$0xf]  ;;  %v7019_v18 = vor.u32 %v8073_v63, %v7016_v36  ;;  %3183 = vmatpush.bf16.msra.mxu3 %v6971_v44  ;;  %v6926_v44 = vld [vmem:[%s13022_s3 + $0x328] sm:$0xf] }
 0x1d3   :  { %v1879_v62 = vpop.f32.mrf.mxu2  ;;  %v6619_v10 = vor.u32 %v7979_v15, %v6618_v40  ;;  %v7974_v40 = vld [vmem:[%s13022_s3 + $0xc4] sm:$0xf] }
 0x1d4   :  { %13052 = vst [vmem:[#allocation29_spill] sm:$0xff] %v10464_v55  ;;  %3238 = vmatpush.bf16.msra.mxu1 %v7019_v18  ;;  %v6623_v18 = vor.u32 %v7974_v40, %v6620_v39  ;;  %v8056_v40 = vld [vmem:[%s13022_s3 + $0x350] sm:$0xf0] }
 0x1d5   :  { %v1938_v3 = vpop.f32.mrf.mxu0  ;;  %3155 = vmatpush.bf16.msra.mxu2 %v6619_v10  ;;  %v6972_v10 = vld [vmem:[%s13022_s3 + $0x3ac] sm:$0xf0]  ;;  %v6927_v39 = vor.u32 %v8056_v40, %v6926_v44 }
 0x1d6   :  { %3211 = vmatpush.bf16.msra.mxu0 %v6623_v18 }
 0x1d7   :  { %v1907_v4 = vpop.f32.mrf.mxu3  ;;  %3184 = vmatpush.bf16.msra.mxu3 %v6927_v39  ;;  %v6882_v39 = vld [vmem:[%s13022_s3 + $0x2d0] sm:$0xf] }
 0x1d8   :  { %v10490_v55 = vadd.f32 %v1907_v4, %v1879_v62  ;;  %3051 = vmatmul.bf16.gmra.mxu2 %v10214_v0  ;;  %3107 = vmatmul.bf16.gmra.mxu0 %v10214_v0  ;;  %v8062_v62 = vld [vmem:[%s13022_s3 + $0x384] sm:$0xf] }
 0x1d9   :  { %v1966_v63 = vpop.f32.mrf.mxu1  ;;  %v6975_v48 = vor.u32 %v8062_v62, %v6972_v10  ;;  %v7963_v10 = vld [vmem:[%s13022_s3 + $0x6c] sm:$0xf] }
 0x1da   :  { %13053 = vst [vmem:[#allocation30_spill] sm:$0xff] %v10490_v55  ;;  %v10494_v36 = vadd.f32 %v1966_v63, %v1938_v3  ;;  %v7968_v3 = vld [vmem:[%s13022_s3 + $0x90] sm:$0xf0] }
 0x1db   :  { %v1882_v15 = vpop.f32.mrf.mxu2  ;;  %v6575_v63 = vor.u32 %v7968_v3, %v6574_v61  ;;  %3239 = vmatpush.bf16.msra.mxu1 %v6975_v48  ;;  %v8051_v48 = vld [vmem:[%s13022_s3 + $0x32c] sm:$0xf]  ;;  %v6928_v3 = vld [vmem:[%s13022_s3 + $0x354] sm:$0xf0] }
 0x1dc   :  { %13054 = vst [vmem:[#allocation31_spill] sm:$0xff] %v10494_v36  ;;  %7181 = vmatmul.msk.bf16.gmra.mxu3 %vm1317_vm1, %v10232_v60  ;;  %7185 = vmatmul.msk.bf16.gmra.mxu1 %vm1317_vm1, %v10232_v60  ;;  %v6576_v36 = vld [vmem:[%s13022_s3 + $0x94] sm:$0xf0] }
 0x1dd   :  { %v1940_v4 = vpop.f32.mrf.mxu0  ;;  %3156 = vmatpush.bf16.msra.mxu2 %v6575_v63  ;;  %v6579_v18 = vor.u32 %v7963_v10, %v6576_v36  ;;  %v6931_v63 = vor.u32 %v8051_v48, %v6928_v3  ;;  %v7957_v36 = vld [vmem:[%s13022_s3 + $0x38] sm:$0xf0]  ;;  %v7952_v10 = vld [vmem:[%s13022_s3 + $0x14] sm:$0xf] }
 0x1df   :  { %v1910_v62 = vpop.f32.mrf.mxu3  ;;  %3212 = vmatpush.bf16.msra.mxu0 %v6579_v18  ;;  %3240 = vmatpush.bf16.msra.mxu1 %v6931_v63  ;;  %v6532_v18 = vld [vmem:[%s13022_s3 + $0x3c] sm:$0xf0]  ;;  %v8040_v63 = vld [vmem:[%s13022_s3 + $0x2d4] sm:$0xf] }
 0x1e0   :  { %v10530_v55 = vadd.f32 %v1910_v62, %v1882_v15  ;;  %v6530_v15 = vld [vmem:[%s13022_s3 + $0x10] sm:$0xf]  ;;  %v6535_v3 = vor.u32 %v7952_v10, %v6532_v18  ;;  %v8035_v10 = vld [vmem:[%s13022_s3 + $0x2a8] sm:$0xf0] }
 0x1e1   :  { %v1968_v61 = vpop.f32.mrf.mxu1  ;;  %v6531_v62 = vor.u32 %v7957_v36, %v6530_v15  ;;  %v6884_v15 = vld [vmem:[%s13022_s3 + $0x2fc] sm:$0xf0] }
 0x1e2   :  { %13055 = vst [vmem:[#allocation32_spill] sm:$0xff] %v10530_v55  ;;  %v10538_v44 = vadd.f32 %v1968_v61, %v1940_v4  ;;  %v8045_v4 = vld [vmem:[%s13022_s3 + $0x2f8] sm:$0xf0] }
 0x1e3   :  { %v1884_v40 = vpop.f32.mrf.mxu2  ;;  %v6883_v48 = vor.u32 %v8045_v4, %v6882_v39  ;;  %3157 = vmatpush.bf16.msra.mxu2 %v6531_v62  ;;  %3213 = vmatpush.bf16.msra.mxu0 %v6535_v3 }
 0x1e4   :  { %13056 = vst [vmem:[#allocation33_spill] sm:$0xff] %v10538_v44  ;;  %v6887_v44 = vor.u32 %v8040_v63, %v6884_v15 }
 0x1e5   :  { %v1943_v61 = vpop.f32.mrf.mxu0  ;;  %3185 = vmatpush.bf16.msra.mxu3 %v6883_v48 }
 0x1e6   :  { %3241 = vmatpush.bf16.msra.mxu1 %v6887_v44  ;;  %v220_v44 = vld [vmem:[%s13022_s3 + $0x540] sm:$0x77] }
 0x1e7   :  { %v1912_v36 = vpop.f32.mrf.mxu3  ;;  %v2535_v48 = vunpack.c.l.b16 %v220_v44 }
 0x1e8   :  { %v10564_v55 = vadd.f32 %v1912_v36, %v1884_v40  ;;  %3056 = vmatmul.bf16.gmra.mxu2 %v10295_v38  ;;  %3112 = vmatmul.bf16.gmra.mxu0 %v10295_v38  ;;  %v6846_v40 = vld [vmem:[%s13022_s3 + $0x280] sm:$0xf] }
 0x1e9   :  { %v1971_v39 = vpop.f32.mrf.mxu1  ;;  %v2711_v63 = vpack.c.b16 %v2535_v48, %v2535_v48 }
 0x1ea   :  { %13057 = vst [vmem:[#allocation34_spill] sm:$0xff] %v10564_v55  ;;  %v10568_v62 = vadd.f32 %v1971_v39, %v1943_v61  ;;  %v6847_v61 = vor.u32 %v8035_v10, %v6846_v40  ;;  %v8030_v55 = vld [vmem:[%s13022_s3 + $0x284] sm:$0xf]  ;;  %v6848_v40 = vld [vmem:[%s13022_s3 + $0x2ac] sm:$0xf0]  ;;  %v2536_v10 = vunpack.c.h.b16 %v220_v44 }
 0x1eb   :  { %v1887_v4 = vpop.f32.mrf.mxu2  ;;  %v2912_v39 = vsel %vm1330_vm0, %v2711_v63, 0 }
 0x1ec   :  { %13058 = vst [vmem:[#allocation35_spill] sm:$0xff] %v10568_v62  ;;  %7182 = vmatmul.msk.bf16.gmra.mxu3 %vm1317_vm1, %v10322_v59  ;;  %7186 = vmatmul.msk.bf16.gmra.mxu1 %vm1317_vm1, %v10322_v59  ;;  %v2712_v48 = vpack.c.b16 %v2536_v10, %v2536_v10 }
 0x1ed   :  { %v1945_v18 = vpop.f32.mrf.mxu0  ;;  %3262 = vmatpush.bf16.msrb.mxu2 %v6847_v61  ;;  %3290 = vmatpush.bf16.msrb.mxu3 %v2912_v39  ;;  %v6851_v61 = vor.u32 %v8030_v55, %v6848_v40  ;;  %v8112_v55 = vld [vmem:[%s13022_s3 + $0x510] sm:$0xf0] }
 0x1ee   :  { %v2915_v44 = vsel %vm1330_vm0, %v2712_v48, 0  ;;  %v6804_v48 = vld [vmem:[%s13022_s3 + $0x254] sm:$0xf0] }
 0x1ef   :  { %v1915_v3 = vpop.f32.mrf.mxu3  ;;  %3318 = vmatpush.bf16.msrb.mxu0 %v6851_v61  ;;  %3346 = vmatpush.bf16.msrb.mxu1 %v2915_v44  ;;  %v7110_v44 = vld [vmem:[%s13022_s3 + $0x490] sm:$0xf] }
 0x1f0   :  { %v10583_v15 = vadd.f32 %v1915_v3, %v1887_v4  ;;  %v6802_v4 = vld [vmem:[%s13022_s3 + $0x228] sm:$0xf] }
 0x1f1   :  { %v1973_v36 = vpop.f32.mrf.mxu1  ;;  %v7154_v3 = vld [vmem:[%s13022_s3 + $0x4e8] sm:$0xf] }
 0x1f2   :  { %v10586_v62 = vadd.f32 %v1973_v36, %v1945_v18  ;;  %v8024_v18 = vld [vmem:[%s13022_s3 + $0x250] sm:$0xf0]  ;;  %v7155_v39 = vor.u32 %v8112_v55, %v7154_v3  ;;  %v8013_v55 = vld [vmem:[%s13022_s3 + $0x1f8] sm:$0xf0] }
 0x1f3   :  { %v1889_v47 = vpop.f32.mrf.mxu2  ;;  %v6803_v36 = vor.u32 %v8024_v18, %v6802_v4  ;;  %v8019_v4 = vld [vmem:[%s13022_s3 + $0x22c] sm:$0xf] }
 0x1f4   :  { %13059 = vst [vmem:[#allocation36_spill] sm:$0xff] %v10586_v62  ;;  %3291 = vmatpush.bf16.msrb.mxu3 %v7155_v39  ;;  %v6807_v3 = vor.u32 %v8019_v4, %v6804_v48  ;;  %v8101_v4 = vld [vmem:[%s13022_s3 + $0x4b8] sm:$0xf0] }
 0x1f5   :  { %v1948_v63 = vpop.f32.mrf.mxu0  ;;  %3263 = vmatpush.bf16.msrb.mxu2 %v6803_v36  ;;  %v7156_v36 = vld [vmem:[%s13022_s3 + $0x514] sm:$0xf0]  ;;  %v7111_v48 = vor.u32 %v8101_v4, %v7110_v44 }
 0x1f6   :  { %3319 = vmatpush.bf16.msrb.mxu0 %v6807_v3  ;;  %v6760_v3 = vld [vmem:[%s13022_s3 + $0x1fc] sm:$0xf0] }
 0x1f7   :  { %v1917_v40 = vpop.f32.mrf.mxu3 }
 0x1f8   :  { %v10607_v10 = vadd.f32 %v1917_v40, %v1889_v47  ;;  %3061 = vmatmul.bf16.gmra.mxu2 %v10362_v25  ;;  %3117 = vmatmul.bf16.gmra.mxu0 %v10362_v25  ;;  %v8107_v47 = vld [vmem:[%s13022_s3 + $0x4ec] sm:$0xf] }
 0x1f9   :  { %v1976_v62 = vpop.f32.mrf.mxu1  ;;  %3292 = vmatpush.bf16.msrb.mxu3 %v7111_v48  ;;  %v8090_v48 = vld [vmem:[%s13022_s3 + $0x460] sm:$0xf0] }
 0x1fa   :  { %13060 = vst [vmem:[#allocation37_spill] sm:$0xff] %v10607_v10  ;;  %v10611_v61 = vadd.f32 %v1976_v62, %v1948_v63  ;;  %v7159_v62 = vor.u32 %v8107_v47, %v7156_v36  ;;  %v6758_v63 = vld [vmem:[%s13022_s3 + $0x1d0] sm:$0xf]  ;;  %v8008_v10 = vld [vmem:[%s13022_s3 + $0x1d4] sm:$0xf] }
 0x1fb   :  { %v1892_v18 = vpop.f32.mrf.mxu2  ;;  %v6759_v40 = vor.u32 %v8013_v55, %v6758_v63  ;;  %v8096_v63 = vld [vmem:[%s13022_s3 + $0x494] sm:$0xf]  ;;  %v6763_v55 = vor.u32 %v8008_v10, %v6760_v3 }
 0x1fc   :  { %13061 = vst [vmem:[#allocation38_spill] sm:$0xff] %v10611_v61  ;;  %7183 = vmatmul.msk.bf16.gmra.mxu3 %vm1317_vm1, %v10372_v20  ;;  %7187 = vmatmul.msk.bf16.gmra.mxu1 %vm1317_vm1, %v10372_v20 }
 0x1fd   :  { %v1950_v39 = vpop.f32.mrf.mxu0  ;;  %3347 = vmatpush.bf16.msrb.mxu1 %v7159_v62  ;;  %3264 = vmatpush.bf16.msrb.mxu2 %v6759_v40  ;;  %v7066_v40 = vld [vmem:[%s13022_s3 + $0x438] sm:$0xf] }
 0x1fe   :  { %v8002_v39 = vld [vmem:[%s13022_s3 + $0x1a0] sm:$0xf0]  ;;  %3320 = vmatpush.bf16.msrb.mxu0 %v6763_v55  ;;  %v7067_v3 = vor.u32 %v8090_v48, %v7066_v40  ;;  %v7997_v55 = vld [vmem:[%s13022_s3 + $0x17c] sm:$0xf]  ;;  %v7068_v40 = vld [vmem:[%s13022_s3 + $0x464] sm:$0xf0] }
 0x1ff   :  { %v1920_v47 = vpop.f32.mrf.mxu3  ;;  %v6670_v48 = vld [vmem:[%s13022_s3 + $0x120] sm:$0xf] }
 0x200   :  { %v10641_v36 = vadd.f32 %v1920_v47, %v1892_v18  ;;  %v7112_v18 = vld [vmem:[%s13022_s3 + $0x4bc] sm:$0xf0]  ;;  %3293 = vmatpush.bf16.msrb.mxu3 %v7067_v3 }
 0x201   :  { %v1978_v61 = vpop.f32.mrf.mxu1  ;;  %v7115_v44 = vor.u32 %v8096_v63, %v7112_v18  ;;  %v7022_v3 = vld [vmem:[%s13022_s3 + $0x3e0] sm:$0xf] }
 0x202   :  { %v6714_v61 = vld [vmem:[%s13022_s3 + $0x178] sm:$0xf] }
 0x203   :  { %v1894_v62 = vpop.f32.mrf.mxu2  ;;  %v6715_v10 = vor.u32 %v8002_v39, %v6714_v61  ;;  %3348 = vmatpush.bf16.msrb.mxu1 %v7115_v44  ;;  %v8085_v44 = vld [vmem:[%s13022_s3 + $0x43c] sm:$0xf] }
 0x205   :  { %v2991_v4 = vpop.f32.mrf.mxu0  ;;  %3265 = vmatpush.bf16.msrb.mxu2 %v6715_v10  ;;  %v7071_v10 = vor.u32 %v8085_v44, %v7068_v40 }
 0x206   :  { %v2992_v47 = vadd.f32 %v2991_v4, %v9458_v52  ;;  %v6716_v52 = vld [vmem:[%s13022_s3 + $0x1a4] sm:$0xf0] }
 0x207   :  { %v1922_v63 = vpop.f32.mrf.mxu3  ;;  %v6719_v39 = vor.u32 %v7997_v55, %v6716_v52  ;;  %3349 = vmatpush.bf16.msrb.mxu1 %v7071_v10 }
 0x208   :  { %3158 = vmatmul.bf16.vlgmr.msra.gmra.mxu2 %v10138_v6  ;;  %3214 = vmatmul.bf16.vlgmr.msra.gmra.mxu0 %v10138_v6 }
 0x209   :  { %v3019_v62 = vpop.f32.mrf.mxu1  ;;  %3321 = vmatpush.bf16.msrb.mxu0 %v6719_v39  ;;  %v7986_v39 = vld [vmem:[%s13022_s3 + $0x124] sm:$0xf] }
 0x20a   :  { %v10670_v18 = vadd.f32 %v3019_v62, %v2992_v47  ;;  %v7991_v47 = vld [vmem:[%s13022_s3 + $0x148] sm:$0xf0] }
 0x20b   :  { %v2935_v61 = vpop.f32.mrf.mxu2  ;;  %v6671_v63 = vor.u32 %v7991_v47, %v6670_v48  ;;  %v8079_v62 = vld [vmem:[%s13022_s3 + $0x408] sm:$0xf0]  ;;  %v6672_v48 = vld [vmem:[%s13022_s3 + $0x14c] sm:$0xf0] }
 0x20c   :  { %13062 = vst [vmem:[#allocation39_spill] sm:$0xff] %v10670_v18  ;;  %v2936_v4 = vadd.f32 %v2935_v61, %v9321_v16  ;;  %7188 = vmatmul.msk.bf16.vlgmr.msra.gmra.mxu3 %vm1317_vm1, %v10154_v2  ;;  %7192 = vmatmul.msk.bf16.vlgmr.msra.gmra.mxu1 %vm1317_vm1, %v10154_v2  ;;  %v7023_v52 = vor.u32 %v8079_v62, %v7022_v3  ;;  %v7980_v62 = vld [vmem:[%s13022_s3 + $0xf0] sm:$0xf0] }
 0x20d   :  { %v2993_v16 = vpop.f32.mrf.mxu0  ;;  %3266 = vmatpush.bf16.msrb.mxu2 %v6671_v63  ;;  %v6675_v47 = vor.u32 %v7986_v39, %v6672_v48  ;;  %v6626_v63 = vld [vmem:[%s13022_s3 + $0xc8] sm:$0xf] }
 0x20e   :  { %v2994_v55 = vadd.f32 %v2993_v16, %v9486_v12  ;;  %3294 = vmatpush.bf16.msrb.mxu3 %v7023_v52  ;;  %v8074_v12 = vld [vmem:[%s13022_s3 + $0x3e4] sm:$0xf] }
 0x20f   :  { %v2963_v44 = vpop.f32.mrf.mxu3  ;;  %3322 = vmatpush.bf16.msrb.mxu0 %v6675_v47 }
 0x210   :  { %v10702_v61 = vadd.f32 %v2963_v44, %v2936_v4  ;;  %v7024_v4 = vld [vmem:[%s13022_s3 + $0x40c] sm:$0xf0]  ;;  %v6627_v44 = vor.u32 %v7980_v62, %v6626_v63  ;;  %v6980_v62 = vld [vmem:[%s13022_s3 + $0x3b4] sm:$0xf0] }
 0x211   :  { %v3021_v40 = vpop.f32.mrf.mxu1  ;;  %v7027_v16 = vor.u32 %v8074_v12, %v7024_v4  ;;  %v7975_v4 = vld [vmem:[%s13022_s3 + $0xcc] sm:$0xf] }
 0x212   :  { %v10704_v18 = vadd.f32 %v3021_v40, %v2994_v55  ;;  %v6978_v55 = vld [vmem:[%s13022_s3 + $0x388] sm:$0xf]  ;;  %3267 = vmatpush.bf16.msrb.mxu2 %v6627_v44  ;;  %v6582_v44 = vld [vmem:[%s13022_s3 + $0x70] sm:$0xf] }
 0x213   :  { %v2937_v10 = vpop.f32.mrf.mxu2  ;;  %3350 = vmatpush.bf16.msrb.mxu1 %v7027_v16 }
 0x214   :  { %v2938_v3 = vadd.f32 %v2937_v10, %v9337_v33  ;;  %v8068_v33 = vld [vmem:[%s13022_s3 + $0x3b0] sm:$0xf0] }
 0x215   :  { %v2996_v52 = vpop.f32.mrf.mxu0  ;;  %v6979_v39 = vor.u32 %v8068_v33, %v6978_v55  ;;  %v7969_v33 = vld [vmem:[%s13022_s3 + $0x98] sm:$0xf0] }
 0x216   :  { %v2997_v40 = vadd.f32 %v2996_v52, %v9526_v24  ;;  %v6628_v24 = vld [vmem:[%s13022_s3 + $0xf4] sm:$0xf0] }
 0x217   :  { %v2965_v48 = vpop.f32.mrf.mxu3  ;;  %3295 = vmatpush.bf16.msrb.mxu3 %v6979_v39  ;;  %v6631_v63 = vor.u32 %v7975_v4, %v6628_v24  ;;  %v6583_v39 = vor.u32 %v7969_v33, %v6582_v44 }
 0x218   :  { %v10732_v12 = vadd.f32 %v2965_v48, %v2938_v3  ;;  %3163 = vmatmul.bf16.gmra.mxu2 %v10214_v0  ;;  %3219 = vmatmul.bf16.gmra.mxu0 %v10214_v0  ;;  %v8063_v3 = vld [vmem:[%s13022_s3 + $0x38c] sm:$0xf]  ;;  %v8057_v48 = vld [vmem:[%s13022_s3 + $0x358] sm:$0xf0] }
 0x219   :  { %v3024_v10 = vpop.f32.mrf.mxu1  ;;  %v6983_v52 = vor.u32 %v8063_v3, %v6980_v62  ;;  %3323 = vmatpush.bf16.msrb.mxu0 %v6631_v63  ;;  %3268 = vmatpush.bf16.msrb.mxu2 %v6583_v39  ;;  %v7964_v3 = vld [vmem:[%s13022_s3 + $0x74] sm:$0xf]  ;;  %v7958_v39 = vld [vmem:[%s13022_s3 + $0x40] sm:$0xf0] }
 0x21a   :  { %v10736_v47 = vadd.f32 %v3024_v10, %v2997_v40  ;;  %v6934_v40 = vld [vmem:[%s13022_s3 + $0x330] sm:$0xf] }
 0x21b   :  { %v2940_v16 = vpop.f32.mrf.mxu2  ;;  %3351 = vmatpush.bf16.msrb.mxu1 %v6983_v52  ;;  %v6935_v4 = vor.u32 %v8057_v48, %v6934_v40  ;;  %v6936_v52 = vld [vmem:[%s13022_s3 + $0x35c] sm:$0xf0]  ;;  %v6890_v48 = vld [vmem:[%s13022_s3 + $0x2d8] sm:$0xf] }
 0x21c   :  { %v2941_v55 = vadd.f32 %v2940_v16, %v9368_v51  ;;  %7189 = vmatmul.msk.bf16.gmra.mxu3 %vm1317_vm1, %v10232_v60  ;;  %7193 = vmatmul.msk.bf16.gmra.mxu1 %vm1317_vm1, %v10232_v60  ;;  %v6584_v16 = vld [vmem:[%s13022_s3 + $0x9c] sm:$0xf0] }
 0x21d   :  { %v2998_v51 = vpop.f32.mrf.mxu0  ;;  %3296 = vmatpush.bf16.msrb.mxu3 %v6935_v4  ;;  %v6587_v62 = vor.u32 %v7964_v3, %v6584_v16  ;;  %v7953_v3 = vld [vmem:[%s13022_s3 + $0x1c] sm:$0xf]  ;;  %v6540_v16 = vld [vmem:[%s13022_s3 + $0x44] sm:$0xf0] }
 0x21e   :  { %v2999_v10 = vadd.f32 %v2998_v51, %v9560_v8  ;;  %v8052_v8 = vld [vmem:[%s13022_s3 + $0x334] sm:$0xf] }
 0x21f   :  { %v2968_v24 = vpop.f32.mrf.mxu3  ;;  %3324 = vmatpush.bf16.msrb.mxu0 %v6587_v62  ;;  %v6939_v40 = vor.u32 %v8052_v8, %v6936_v52  ;;  %v6543_v8 = vor.u32 %v7953_v3, %v6540_v16  ;;  %v8036_v3 = vld [vmem:[%s13022_s3 + $0x2b0] sm:$0xf0]  ;;  %v221_v16 = vld [vmem:[%s13022_s3 + $0x548] sm:$0x77] }
 0x220   :  { %v10774_v63 = vadd.f32 %v2968_v24, %v2941_v55  ;;  %v6538_v55 = vld [vmem:[%s13022_s3 + $0x18] sm:$0xf]  ;;  %v8046_v24 = vld [vmem:[%s13022_s3 + $0x300] sm:$0xf0] }
 0x221   :  { %v3026_v44 = vpop.f32.mrf.mxu1  ;;  %3352 = vmatpush.bf16.msrb.mxu1 %v6939_v40  ;;  %v6892_v40 = vld [vmem:[%s13022_s3 + $0x304] sm:$0xf0] }
 0x222   :  { %v10782_v33 = vadd.f32 %v3026_v44, %v2999_v10  ;;  %v6539_v10 = vor.u32 %v7958_v39, %v6538_v55  ;;  %v6891_v44 = vor.u32 %v8046_v24, %v6890_v48 }
 0x223   :  { %v2942_v51 = vpop.f32.mrf.mxu2  ;;  %3325 = vmatpush.bf16.msrb.mxu0 %v6543_v8 }
 0x224   :  { %v2943_v4 = vadd.f32 %v2942_v51, %v9400_v9  ;;  %3269 = vmatpush.bf16.msrb.mxu2 %v6539_v10  ;;  %v8041_v9 = vld [vmem:[%s13022_s3 + $0x2dc] sm:$0xf]  ;;  %3297 = vmatpush.bf16.msrb.mxu3 %v6891_v44  ;;  %v2537_v44 = vunpack.c.l.b16 %v221_v16 }
 0x225   :  { %v3001_v62 = vpop.f32.mrf.mxu0  ;;  %v6895_v55 = vor.u32 %v8041_v9, %v6892_v40 }
 0x226   :  { %v3002_v52 = vadd.f32 %v3001_v62, %v9577_v28  ;;  %v2713_v9 = vpack.c.b16 %v2537_v44, %v2537_v44  ;;  %v6810_v44 = vld [vmem:[%s13022_s3 + $0x230] sm:$0xf] }
 0x227   :  { %v2970_v51 = vpop.f32.mrf.mxu3  ;;  %3353 = vmatpush.bf16.msrb.mxu1 %v6895_v55 }
 0x228   :  { %v10810_v39 = vadd.f32 %v2970_v51, %v2943_v4  ;;  %3168 = vmatmul.bf16.gmra.mxu2 %v10295_v38  ;;  %3224 = vmatmul.bf16.gmra.mxu0 %v10295_v38  ;;  %v6854_v4 = vld [vmem:[%s13022_s3 + $0x288] sm:$0xf]  ;;  %v2918_v55 = vsel %vm1330_vm0, %v2713_v9, 0 }
 0x229   :  { %v3029_v28 = vpop.f32.mrf.mxu1  ;;  %3402 = vmatpush.bf16.msra.mxu3 %v2918_v55 }
 0x22a   :  { %v10814_v48 = vadd.f32 %v3029_v28, %v3002_v52 }
 0x22b   :  { %v2945_v10 = vpop.f32.mrf.mxu2 }
 0x22c   :  { %v2946_v24 = vadd.f32 %v2945_v10, %v9334_v30  ;;  %7190 = vmatmul.msk.bf16.gmra.mxu3 %vm1317_vm1, %v10322_v59  ;;  %7194 = vmatmul.msk.bf16.gmra.mxu1 %vm1317_vm1, %v10322_v59  ;;  %v6855_v30 = vor.u32 %v8036_v3, %v6854_v4  ;;  %v8031_v10 = vld [vmem:[%s13022_s3 + $0x28c] sm:$0xf]  ;;  %v6856_v4 = vld [vmem:[%s13022_s3 + $0x2b4] sm:$0xf0] }
 0x22d   :  { %v3003_v62 = vpop.f32.mrf.mxu0 }
 0x22e   :  { %v3004_v8 = vadd.f32 %v3003_v62, %v9604_v56  ;;  %3374 = vmatpush.bf16.msra.mxu2 %v6855_v30  ;;  %v2538_v56 = vunpack.c.h.b16 %v221_v16  ;;  %v6859_v62 = vor.u32 %v8031_v10, %v6856_v4 }
 0x22f   :  { %v2973_v52 = vpop.f32.mrf.mxu3 }
 0x230   :  { %v10831_v40 = vadd.f32 %v2973_v52, %v2946_v24  ;;  %v2714_v30 = vpack.c.b16 %v2538_v56, %v2538_v56  ;;  %v7162_v52 = vld [vmem:[%s13022_s3 + $0x4f0] sm:$0xf]  ;;  %3430 = vmatpush.bf16.msra.mxu0 %v6859_v62 }
 0x231   :  { %v3031_v51 = vpop.f32.mrf.mxu1 }
 0x232   :  { %v10834_v28 = vadd.f32 %v3031_v51, %v3004_v8  ;;  %v8025_v8 = vld [vmem:[%s13022_s3 + $0x258] sm:$0xf0]  ;;  %v2921_v55 = vsel %vm1330_vm0, %v2714_v30, 0  ;;  %v6812_v30 = vld [vmem:[%s13022_s3 + $0x25c] sm:$0xf0] }
 0x233   :  { %v2947_v3 = vpop.f32.mrf.mxu2  ;;  %v6811_v16 = vor.u32 %v8025_v8, %v6810_v44  ;;  %3458 = vmatpush.bf16.msra.mxu1 %v2921_v55  ;;  %v7118_v55 = vld [vmem:[%s13022_s3 + $0x498] sm:$0xf] }
 0x234   :  { %v2948_v24 = vadd.f32 %v2947_v3, %v9364_v49  ;;  %v8113_v49 = vld [vmem:[%s13022_s3 + $0x518] sm:$0xf0] }
 0x235   :  { %v3006_v9 = vpop.f32.mrf.mxu0  ;;  %v7163_v10 = vor.u32 %v8113_v49, %v7162_v52  ;;  %3375 = vmatpush.bf16.msra.mxu2 %v6811_v16  ;;  %v7164_v52 = vld [vmem:[%s13022_s3 + $0x51c] sm:$0xf0]  ;;  %v6766_v49 = vld [vmem:[%s13022_s3 + $0x1d8] sm:$0xf] }
 0x236   :  { %v3007_v51 = vadd.f32 %v3006_v9, %v9638_v26  ;;  %v8020_v26 = vld [vmem:[%s13022_s3 + $0x234] sm:$0xf] }
 0x237   :  { %v2975_v4 = vpop.f32.mrf.mxu3  ;;  %3403 = vmatpush.bf16.msra.mxu3 %v7163_v10  ;;  %v6815_v8 = vor.u32 %v8020_v26, %v6812_v30 }
 0x238   :  { %v10857_v56 = vadd.f32 %v2975_v4, %v2948_v24  ;;  %3173 = vmatmul.bf16.gmra.mxu2 %v10362_v25  ;;  %3229 = vmatmul.bf16.gmra.mxu0 %v10362_v25  ;;  %v8108_v24 = vld [vmem:[%s13022_s3 + $0x4f4] sm:$0xf]  ;;  %v8102_v4 = vld [vmem:[%s13022_s3 + $0x4c0] sm:$0xf0] }
 0x239   :  { %v3034_v3 = vpop.f32.mrf.mxu1  ;;  %v7167_v16 = vor.u32 %v8108_v24, %v7164_v52  ;;  %3431 = vmatpush.bf16.msra.mxu0 %v6815_v8  ;;  %v6768_v8 = vld [vmem:[%s13022_s3 + $0x204] sm:$0xf0]  ;;  %v8097_v52 = vld [vmem:[%s13022_s3 + $0x49c] sm:$0xf] }
 0x23a   :  { %v10861_v62 = vadd.f32 %v3034_v3, %v3007_v51  ;;  %v8014_v51 = vld [vmem:[%s13022_s3 + $0x200] sm:$0xf0]  ;;  %v7119_v3 = vor.u32 %v8102_v4, %v7118_v55  ;;  %v6722_v55 = vld [vmem:[%s13022_s3 + $0x180] sm:$0xf] }
 0x23b   :  { %v2950_v44 = vpop.f32.mrf.mxu2  ;;  %v6767_v10 = vor.u32 %v8014_v51, %v6766_v49  ;;  %3459 = vmatpush.bf16.msra.mxu1 %v7167_v16 }
 0x23c   :  { %v2951_v9 = vadd.f32 %v2950_v44, %v9398_v7  ;;  %7191 = vmatmul.msk.bf16.gmra.mxu3 %vm1317_vm1, %v10372_v20  ;;  %7195 = vmatmul.msk.bf16.gmra.mxu1 %vm1317_vm1, %v10372_v20  ;;  %v8009_v44 = vld [vmem:[%s13022_s3 + $0x1dc] sm:$0xf] }
 0x23d   :  { %v3008_v7 = vpop.f32.mrf.mxu0  ;;  %3376 = vmatpush.bf16.msra.mxu2 %v6767_v10  ;;  %3404 = vmatpush.bf16.msra.mxu3 %v7119_v3  ;;  %v6771_v49 = vor.u32 %v8009_v44, %v6768_v8  ;;  %v7074_v10 = vld [vmem:[%s13022_s3 + $0x440] sm:$0xf] }
 0x23e   :  { %v8003_v7 = vld [vmem:[%s13022_s3 + $0x1a8] sm:$0xf0] }
 0x23f   :  { %v2978_v26 = vpop.f32.mrf.mxu3  ;;  %3432 = vmatpush.bf16.msra.mxu0 %v6771_v49  ;;  %v6723_v3 = vor.u32 %v8003_v7, %v6722_v55  ;;  %v7998_v49 = vld [vmem:[%s13022_s3 + $0x184] sm:$0xf]  ;;  %v7076_v7 = vld [vmem:[%s13022_s3 + $0x46c] sm:$0xf0] }
 0x240   :  { %v10892_v30 = vadd.f32 %v2978_v26, %v2951_v9  ;;  %v7120_v9 = vld [vmem:[%s13022_s3 + $0x4c4] sm:$0xf0]  ;;  %v8091_v26 = vld [vmem:[%s13022_s3 + $0x468] sm:$0xf0] }
 0x241   :  { %v3036_v24 = vpop.f32.mrf.mxu1  ;;  %v7123_v51 = vor.u32 %v8097_v52, %v7120_v9  ;;  %v7075_v44 = vor.u32 %v8091_v26, %v7074_v10  ;;  %3377 = vmatpush.bf16.msra.mxu2 %v6723_v3  ;;  %v8086_v9 = vld [vmem:[%s13022_s3 + $0x444] sm:$0xf]  ;;  %v6678_v3 = vld [vmem:[%s13022_s3 + $0x128] sm:$0xf]  ;;  %v7992_v26 = vld [vmem:[%s13022_s3 + $0x150] sm:$0xf0] }
 0x243   :  { %v2952_v16 = vpop.f32.mrf.mxu2  ;;  %3460 = vmatpush.bf16.msra.mxu1 %v7123_v51  ;;  %3405 = vmatpush.bf16.msra.mxu3 %v7075_v44  ;;  %v6679_v44 = vor.u32 %v7992_v26, %v6678_v3  ;;  %v6680_v3 = vld [vmem:[%s13022_s3 + $0x154] sm:$0xf0] }
 0x245   :  { %v3103_v4 = vpop.f32.mrf.mxu0  ;;  %3378 = vmatpush.bf16.msra.mxu2 %v6679_v44  ;;  %v6634_v44 = vld [vmem:[%s13022_s3 + $0xd0] sm:$0xf] }
 0x246   :  { %v3104_v24 = vadd.f32 %v3103_v4, %v9696_v23  ;;  %v6724_v23 = vld [vmem:[%s13022_s3 + $0x1ac] sm:$0xf0]  ;;  %v7079_v4 = vor.u32 %v8086_v9, %v7076_v7 }
 0x247   :  { %v2980_v8 = vpop.f32.mrf.mxu3  ;;  %v6727_v55 = vor.u32 %v7998_v49, %v6724_v23 }
 0x248   :  { %3270 = vmatmul.bf16.vlgmr.msrb.gmra.mxu2 %v10138_v6  ;;  %3326 = vmatmul.bf16.vlgmr.msrb.gmra.mxu0 %v10138_v6  ;;  %v8080_v8 = vld [vmem:[%s13022_s3 + $0x410] sm:$0xf0] }
 0x249   :  { %v3131_v52 = vpop.f32.mrf.mxu1  ;;  %3433 = vmatpush.bf16.msra.mxu0 %v6727_v55  ;;  %3461 = vmatpush.bf16.msra.mxu1 %v7079_v4  ;;  %v7987_v55 = vld [vmem:[%s13022_s3 + $0x12c] sm:$0xf] }
 0x24a   :  { %v10921_v16 = vadd.f32 %v3131_v52, %v3104_v24  ;;  %v7030_v24 = vld [vmem:[%s13022_s3 + $0x3e8] sm:$0xf]  ;;  %v6683_v26 = vor.u32 %v7987_v55, %v6680_v3 }
 0x24b   :  { %v3047_v51 = vpop.f32.mrf.mxu2  ;;  %v7031_v49 = vor.u32 %v8080_v8, %v7030_v24  ;;  %v7981_v8 = vld [vmem:[%s13022_s3 + $0xf8] sm:$0xf0] }
 0x24c   :  { %v3048_v10 = vadd.f32 %v3047_v51, %v9428_v34  ;;  %7196 = vmatmul.msk.bf16.vlgmr.msrb.gmra.mxu3 %vm1317_vm1, %v10154_v2  ;;  %7200 = vmatmul.msk.bf16.vlgmr.msrb.gmra.mxu1 %vm1317_vm1, %v10154_v2 }
 0x24d   :  { %v3105_v34 = vpop.f32.mrf.mxu0  ;;  %3406 = vmatpush.bf16.msra.mxu3 %v7031_v49  ;;  %3434 = vmatpush.bf16.msra.mxu0 %v6683_v26 }
 0x24e   :  { %v3106_v52 = vadd.f32 %v3105_v34, %v9724_v50  ;;  %v8075_v50 = vld [vmem:[%s13022_s3 + $0x3ec] sm:$0xf] }
 0x24f   :  { %v3075_v23 = vpop.f32.mrf.mxu3 }
 0x250   :  { %v10953_v9 = vadd.f32 %v3075_v23, %v3048_v10  ;;  %v7032_v10 = vld [vmem:[%s13022_s3 + $0x414] sm:$0xf0]  ;;  %v6635_v23 = vor.u32 %v7981_v8, %v6634_v44  ;;  %v6988_v8 = vld [vmem:[%s13022_s3 + $0x3bc] sm:$0xf0] }
 0x251   :  { %v3133_v51 = vpop.f32.mrf.mxu1  ;;  %v7035_v34 = vor.u32 %v8075_v50, %v7032_v10  ;;  %v7976_v10 = vld [vmem:[%s13022_s3 + $0xd4] sm:$0xf] }
 0x252   :  { %v10955_v7 = vadd.f32 %v3133_v51, %v3106_v52  ;;  %v6986_v52 = vld [vmem:[%s13022_s3 + $0x390] sm:$0xf]  ;;  %3379 = vmatpush.bf16.msra.mxu2 %v6635_v23  ;;  %v6590_v23 = vld [vmem:[%s13022_s3 + $0x78] sm:$0xf] }
 0x253   :  { %v3049_v4 = vpop.f32.mrf.mxu2  ;;  %3462 = vmatpush.bf16.msra.mxu1 %v7035_v34 }
 0x254   :  { %v3050_v24 = vadd.f32 %v3049_v4, %v9460_v54  ;;  %v8069_v54 = vld [vmem:[%s13022_s3 + $0x3b8] sm:$0xf0] }
 0x255   :  { %v3108_v49 = vpop.f32.mrf.mxu0  ;;  %v6987_v55 = vor.u32 %v8069_v54, %v6986_v52  ;;  %v7970_v54 = vld [vmem:[%s13022_s3 + $0xa0] sm:$0xf0] }
 0x256   :  { %v3109_v51 = vadd.f32 %v3108_v49, %v9764_v35  ;;  %v6636_v35 = vld [vmem:[%s13022_s3 + $0xfc] sm:$0xf0] }
 0x257   :  { %v3077_v3 = vpop.f32.mrf.mxu3  ;;  %3407 = vmatpush.bf16.msra.mxu3 %v6987_v55  ;;  %v6639_v44 = vor.u32 %v7976_v10, %v6636_v35  ;;  %v6591_v55 = vor.u32 %v7970_v54, %v6590_v23 }
 0x258   :  { %v10983_v50 = vadd.f32 %v3077_v3, %v3050_v24  ;;  %3275 = vmatmul.bf16.gmra.mxu2 %v10214_v0  ;;  %3331 = vmatmul.bf16.gmra.mxu0 %v10214_v0  ;;  %v8064_v24 = vld [vmem:[%s13022_s3 + $0x394] sm:$0xf]  ;;  %v8058_v3 = vld [vmem:[%s13022_s3 + $0x360] sm:$0xf0] }
 0x259   :  { %v3136_v4 = vpop.f32.mrf.mxu1  ;;  %v6991_v49 = vor.u32 %v8064_v24, %v6988_v8  ;;  %3435 = vmatpush.bf16.msra.mxu0 %v6639_v44  ;;  %3380 = vmatpush.bf16.msra.mxu2 %v6591_v55  ;;  %v7965_v24 = vld [vmem:[%s13022_s3 + $0x7c] sm:$0xf]  ;;  %v7959_v55 = vld [vmem:[%s13022_s3 + $0x48] sm:$0xf0] }
 0x25a   :  { %v10987_v26 = vadd.f32 %v3136_v4, %v3109_v51  ;;  %v6942_v51 = vld [vmem:[%s13022_s3 + $0x338] sm:$0xf] }
 0x25b   :  { %v3052_v34 = vpop.f32.mrf.mxu2  ;;  %3463 = vmatpush.bf16.msra.mxu1 %v6991_v49  ;;  %v6943_v10 = vor.u32 %v8058_v3, %v6942_v51  ;;  %v6944_v49 = vld [vmem:[%s13022_s3 + $0x364] sm:$0xf0]  ;;  %v6898_v3 = vld [vmem:[%s13022_s3 + $0x2e0] sm:$0xf] }
 0x25c   :  { %v3053_v52 = vadd.f32 %v3052_v34, %v9490_v14  ;;  %7197 = vmatmul.msk.bf16.gmra.mxu3 %vm1317_vm1, %v10232_v60  ;;  %7201 = vmatmul.msk.bf16.gmra.mxu1 %vm1317_vm1, %v10232_v60  ;;  %v6592_v34 = vld [vmem:[%s13022_s3 + $0xa4] sm:$0xf0] }
 0x25d   :  { %v3110_v14 = vpop.f32.mrf.mxu0  ;;  %3408 = vmatpush.bf16.msra.mxu3 %v6943_v10  ;;  %v6595_v8 = vor.u32 %v7965_v24, %v6592_v34  ;;  %v7954_v24 = vld [vmem:[%s13022_s3 + $0x24] sm:$0xf]  ;;  %v6548_v34 = vld [vmem:[%s13022_s3 + $0x4c] sm:$0xf0] }
 0x25e   :  { %v3111_v4 = vadd.f32 %v3110_v14, %v9798_v13  ;;  %v8053_v13 = vld [vmem:[%s13022_s3 + $0x33c] sm:$0xf] }
 0x25f   :  { %v3080_v35 = vpop.f32.mrf.mxu3  ;;  %3436 = vmatpush.bf16.msra.mxu0 %v6595_v8  ;;  %v6947_v51 = vor.u32 %v8053_v13, %v6944_v49  ;;  %v6551_v13 = vor.u32 %v7954_v24, %v6548_v34  ;;  %v8037_v24 = vld [vmem:[%s13022_s3 + $0x2b8] sm:$0xf0]  ;;  %v222_v34 = vld [vmem:[%s13022_s3 + $0x550] sm:$0x7] }
 0x260   :  { %v11025_v44 = vadd.f32 %v3080_v35, %v3053_v52  ;;  %v6546_v52 = vld [vmem:[%s13022_s3 + $0x20] sm:$0xf]  ;;  %v8047_v35 = vld [vmem:[%s13022_s3 + $0x308] sm:$0xf0] }
 0x261   :  { %v3138_v23 = vpop.f32.mrf.mxu1  ;;  %3464 = vmatpush.bf16.msra.mxu1 %v6947_v51  ;;  %v6900_v51 = vld [vmem:[%s13022_s3 + $0x30c] sm:$0xf0] }
 0x262   :  { %v11033_v54 = vadd.f32 %v3138_v23, %v3111_v4  ;;  %v6547_v4 = vor.u32 %v7959_v55, %v6546_v52  ;;  %v6899_v23 = vor.u32 %v8047_v35, %v6898_v3 }
 0x263   :  { %v3054_v14 = vpop.f32.mrf.mxu2  ;;  %3437 = vmatpush.bf16.msra.mxu0 %v6551_v13 }
 0x264   :  { %v3055_v10 = vadd.f32 %v3054_v14, %v9534_v46  ;;  %3381 = vmatpush.bf16.msra.mxu2 %v6547_v4  ;;  %v8042_v46 = vld [vmem:[%s13022_s3 + $0x2e4] sm:$0xf]  ;;  %3409 = vmatpush.bf16.msra.mxu3 %v6899_v23  ;;  %v2539_v23 = vunpack.c.l.b16 %v222_v34 }
 0x265   :  { %v3113_v8 = vpop.f32.mrf.mxu0  ;;  %v6903_v52 = vor.u32 %v8042_v46, %v6900_v51 }
 0x266   :  { %v3114_v49 = vadd.f32 %v3113_v8, %v9817_v42  ;;  %v2715_v46 = vpack.c.b16 %v2539_v23, %v2539_v23  ;;  %v8026_v23 = vld [vmem:[%s13022_s3 + $0x260] sm:$0xf0] }
 0x267   :  { %v3082_v14 = vpop.f32.mrf.mxu3  ;;  %3465 = vmatpush.bf16.msra.mxu1 %v6903_v52 }
 0x268   :  { %v11061_v55 = vadd.f32 %v3082_v14, %v3055_v10  ;;  %3280 = vmatmul.bf16.gmra.mxu2 %v10295_v38  ;;  %3336 = vmatmul.bf16.gmra.mxu0 %v10295_v38  ;;  %v6862_v10 = vld [vmem:[%s13022_s3 + $0x290] sm:$0xf]  ;;  %v2924_v52 = vsel %vm1330_vm0, %v2715_v46, 0 }
 0x269   :  { %v3141_v42 = vpop.f32.mrf.mxu1  ;;  %3514 = vmatpush.bf16.msrb.mxu3 %v2924_v52 }
 0x26a   :  { %v11065_v3 = vadd.f32 %v3141_v42, %v3114_v49 }
 0x26b   :  { %v3057_v4 = vpop.f32.mrf.mxu2 }
 0x26c   :  { %v3058_v35 = vadd.f32 %v3057_v4, %v9564_v11  ;;  %7198 = vmatmul.msk.bf16.gmra.mxu3 %vm1317_vm1, %v10322_v59  ;;  %7202 = vmatmul.msk.bf16.gmra.mxu1 %vm1317_vm1, %v10322_v59  ;;  %v6863_v11 = vor.u32 %v8037_v24, %v6862_v10  ;;  %v7550_v4 = vld [vmem:[%s13024_s5 + $0x268] sm:$0xf]  ;;  %v8374_v10 = vld [vmem:[%s13024_s5 + $0x290] sm:$0xf0] }
 0x26d   :  { %v3115_v8 = vpop.f32.mrf.mxu0  ;;  %v7551_v24 = vor.u32 %v8374_v10, %v7550_v4 }
 0x26e   :  { %v3116_v13 = vadd.f32 %v3115_v8, %v9841_v29  ;;  %3486 = vmatpush.bf16.msrb.mxu2 %v6863_v11  ;;  %v11096_v29 = vld [vmem:[%s13024_s5 + $0x528] sm:$0x77]  ;;  %v6818_v11 = vld [vmem:[%s13022_s3 + $0x238] sm:$0xf] }
 0x26f   :  { %v3085_v49 = vpop.f32.mrf.mxu3  ;;  %v4284_v34 = vunpack.c.l.b16 %v11096_v29  ;;  %4681 = vmatpush.bf16.msrb.mxu0 %v7551_v24 }
 0x270   :  { %v11082_v51 = vadd.f32 %v3085_v49, %v3058_v35 }
 0x271   :  { %v3143_v14 = vpop.f32.mrf.mxu1  ;;  %v4460_v46 = vpack.c.b16 %v4284_v34, %v4284_v34 }
 0x272   :  { %v11085_v42 = vadd.f32 %v3143_v14, %v3116_v13  ;;  %v7170_v13 = vld [vmem:[%s13022_s3 + $0x4f8] sm:$0xf]  ;;  %v6819_v14 = vor.u32 %v8026_v23, %v6818_v11  ;;  %v8363_v11 = vld [vmem:[%s13024_s5 + $0x238] sm:$0xf0] }
 0x273   :  { %v3059_v35 = vpop.f32.mrf.mxu2 }
 0x274   :  { %13063 = vst [vmem:[#allocation40_spill] sm:$0xff] %v11085_v42  ;;  %v3060_v8 = vadd.f32 %v3059_v35, %v9580_v32  ;;  %v8114_v32 = vld [vmem:[%s13022_s3 + $0x520] sm:$0xf0]  ;;  %v4649_v35 = vsel %vm1330_vm0, %v4460_v46, 0  ;;  %3487 = vmatpush.bf16.msrb.mxu2 %v6819_v14 }
 0x275   :  { %v3118_v49 = vpop.f32.mrf.mxu0  ;;  %v7171_v4 = vor.u32 %v8114_v32, %v7170_v13  ;;  %4709 = vmatpush.bf16.msrb.mxu1 %v4649_v35  ;;  %v6774_v32 = vld [vmem:[%s13022_s3 + $0x1e0] sm:$0xf]  ;;  %v8103_v35 = vld [vmem:[%s13022_s3 + $0x4c8] sm:$0xf0] }
 0x276   :  { %v3119_v52 = vadd.f32 %v3118_v49, %v9875_v5  ;;  %v7506_v5 = vld [vmem:[%s13024_s5 + $0x210] sm:$0xf]  ;;  %v8451_v49 = vld [vmem:[%s13024_s5 + $0x4f8] sm:$0xf0] }
 0x277   :  { %v3087_v10 = vpop.f32.mrf.mxu3  ;;  %3515 = vmatpush.bf16.msrb.mxu3 %v7171_v4  ;;  %v7507_v13 = vor.u32 %v8363_v11, %v7506_v5  ;;  %v7126_v4 = vld [vmem:[%s13022_s3 + $0x4a0] sm:$0xf] }
 0x278   :  { %v11114_v42 = vadd.f32 %v3087_v10, %v3060_v8  ;;  %3285 = vmatmul.bf16.gmra.mxu2 %v10362_v25  ;;  %3341 = vmatmul.bf16.gmra.mxu0 %v10362_v25  ;;  %v7858_v8 = vld [vmem:[%s13024_s5 + $0x4d0] sm:$0xf] }
 0x279   :  { %v3146_v24 = vpop.f32.mrf.mxu1  ;;  %v7859_v14 = vor.u32 %v8451_v49, %v7858_v8  ;;  %4682 = vmatpush.bf16.msrb.mxu0 %v7507_v13  ;;  %v8352_v13 = vld [vmem:[%s13024_s5 + $0x1e0] sm:$0xf0]  ;;  %v7814_v49 = vld [vmem:[%s13024_s5 + $0x478] sm:$0xf] }
 0x27a   :  { %v11118_v34 = vadd.f32 %v3146_v24, %v3119_v52  ;;  %v8015_v52 = vld [vmem:[%s13022_s3 + $0x208] sm:$0xf0]  ;;  %v7127_v24 = vor.u32 %v8103_v35, %v7126_v4  ;;  %v6730_v4 = vld [vmem:[%s13022_s3 + $0x188] sm:$0xf] }
 0x27b   :  { %v3062_v23 = vpop.f32.mrf.mxu2  ;;  %v6775_v10 = vor.u32 %v8015_v52, %v6774_v32  ;;  %4710 = vmatpush.bf16.msrb.mxu1 %v7859_v14 }
 0x27c   :  { %13064 = vst [vmem:[#allocation41_spill] sm:$0xff] %v11118_v34  ;;  %v3063_v46 = vadd.f32 %v3062_v23, %v9608_v58  ;;  %7199 = vmatmul.msk.bf16.gmra.mxu3 %vm1317_vm1, %v10372_v20  ;;  %7203 = vmatmul.msk.bf16.gmra.mxu1 %vm1317_vm1, %v10372_v20  ;;  %v7462_v23 = vld [vmem:[%s13024_s5 + $0x1b8] sm:$0xf] }
 0x27d   :  { %v3120_v58 = vpop.f32.mrf.mxu0  ;;  %3488 = vmatpush.bf16.msrb.mxu2 %v6775_v10  ;;  %3516 = vmatpush.bf16.msrb.mxu3 %v7127_v24  ;;  %v7463_v32 = vor.u32 %v8352_v13, %v7462_v23  ;;  %v7082_v10 = vld [vmem:[%s13022_s3 + $0x448] sm:$0xf] }
 0x27e   :  { %v8004_v58 = vld [vmem:[%s13022_s3 + $0x1b0] sm:$0xf0] }
 0x27f   :  { %v3090_v5 = vpop.f32.mrf.mxu3  ;;  %4683 = vmatpush.bf16.msrb.mxu0 %v7463_v32  ;;  %v6731_v24 = vor.u32 %v8004_v58, %v6730_v4  ;;  %v7418_v32 = vld [vmem:[%s13024_s5 + $0x160] sm:$0xf]  ;;  %v8429_v58 = vld [vmem:[%s13024_s5 + $0x448] sm:$0xf0] }
 0x280   :  { %v11149_v11 = vadd.f32 %v3090_v5, %v3063_v46  ;;  %v8440_v46 = vld [vmem:[%s13024_s5 + $0x4a0] sm:$0xf0]  ;;  %v8092_v5 = vld [vmem:[%s13022_s3 + $0x470] sm:$0xf0] }
 0x281   :  { %v3148_v8 = vpop.f32.mrf.mxu1  ;;  %v7815_v52 = vor.u32 %v8440_v46, %v7814_v49  ;;  %v7083_v23 = vor.u32 %v8092_v5, %v7082_v10  ;;  %3489 = vmatpush.bf16.msrb.mxu2 %v6731_v24  ;;  %v7770_v46 = vld [vmem:[%s13024_s5 + $0x420] sm:$0xf]  ;;  %v6686_v24 = vld [vmem:[%s13022_s3 + $0x130] sm:$0xf]  ;;  %v7993_v5 = vld [vmem:[%s13022_s3 + $0x158] sm:$0xf0] }
 0x283   :  { %v3064_v14 = vpop.f32.mrf.mxu2  ;;  %4711 = vmatpush.bf16.msrb.mxu1 %v7815_v52  ;;  %3517 = vmatpush.bf16.msrb.mxu3 %v7083_v23  ;;  %v6687_v23 = vor.u32 %v7993_v5, %v6686_v24  ;;  %v8330_v24 = vld [vmem:[%s13024_s5 + $0x130] sm:$0xf0] }
 0x285   :  { %v3215_v35 = vpop.f32.mrf.mxu0  ;;  %3490 = vmatpush.bf16.msrb.mxu2 %v6687_v23  ;;  %v6642_v23 = vld [vmem:[%s13022_s3 + $0xd8] sm:$0xf] }
 0x286   :  { %v3216_v8 = vadd.f32 %v3215_v35, %v9933_v43  ;;  %v8341_v43 = vld [vmem:[%s13024_s5 + $0x188] sm:$0xf0]  ;;  %v7771_v35 = vor.u32 %v8429_v58, %v7770_v46 }
 0x287   :  { %v3092_v13 = vpop.f32.mrf.mxu3  ;;  %v7419_v4 = vor.u32 %v8341_v43, %v7418_v32 }
 0x288   :  { %3382 = vmatmul.bf16.vlgmr.msra.gmra.mxu2 %v10138_v6  ;;  %3438 = vmatmul.bf16.vlgmr.msra.gmra.mxu0 %v10138_v6  ;;  %v8081_v13 = vld [vmem:[%s13022_s3 + $0x418] sm:$0xf0] }
 0x289   :  { %v3243_v49 = vpop.f32.mrf.mxu1  ;;  %4684 = vmatpush.bf16.msrb.mxu0 %v7419_v4  ;;  %4712 = vmatpush.bf16.msrb.mxu1 %v7771_v35  ;;  %v7374_v4 = vld [vmem:[%s13024_s5 + $0x108] sm:$0xf] }
 0x28a   :  { %v11178_v14 = vadd.f32 %v3243_v49, %v3216_v8  ;;  %v7038_v8 = vld [vmem:[%s13022_s3 + $0x3f0] sm:$0xf]  ;;  %v7375_v5 = vor.u32 %v8330_v24, %v7374_v4 }
 0x28b   :  { %v3159_v52 = vpop.f32.mrf.mxu2  ;;  %v7039_v32 = vor.u32 %v8081_v13, %v7038_v8  ;;  %v7982_v13 = vld [vmem:[%s13022_s3 + $0x100] sm:$0xf0] }
 0x28c   :  { %13065 = vst [vmem:[#allocation42_spill] sm:$0xff] %v11178_v14  ;;  %v3160_v10 = vadd.f32 %v3159_v52, %v9666_v53  ;;  %7204 = vmatmul.msk.bf16.vlgmr.msra.gmra.mxu3 %vm1317_vm1, %v10154_v2  ;;  %7208 = vmatmul.msk.bf16.vlgmr.msra.gmra.mxu1 %vm1317_vm1, %v10154_v2 }
 0x28d   :  { %v3217_v53 = vpop.f32.mrf.mxu0  ;;  %3518 = vmatpush.bf16.msrb.mxu3 %v7039_v32  ;;  %4685 = vmatpush.bf16.msrb.mxu0 %v7375_v5 }
 0x28e   :  { %v3218_v49 = vadd.f32 %v3217_v53, %v9961_v37  ;;  %v7726_v37 = vld [vmem:[%s13024_s5 + $0x3c8] sm:$0xf] }
 0x28f   :  { %v3187_v43 = vpop.f32.mrf.mxu3 }
 0x290   :  { %v11210_v46 = vadd.f32 %v3187_v43, %v3160_v10  ;;  %v8418_v10 = vld [vmem:[%s13024_s5 + $0x3f0] sm:$0xf0]  ;;  %v6643_v43 = vor.u32 %v7982_v13, %v6642_v23  ;;  %v8407_v13 = vld [vmem:[%s13024_s5 + $0x398] sm:$0xf0] }
 0x291   :  { %v3245_v52 = vpop.f32.mrf.mxu1  ;;  %v7727_v53 = vor.u32 %v8418_v10, %v7726_v37  ;;  %v7330_v10 = vld [vmem:[%s13024_s5 + $0xb0] sm:$0xf] }
 0x292   :  { %v11212_v58 = vadd.f32 %v3245_v52, %v3218_v49  ;;  %v6994_v49 = vld [vmem:[%s13022_s3 + $0x398] sm:$0xf]  ;;  %3491 = vmatpush.bf16.msrb.mxu2 %v6643_v43  ;;  %v6598_v43 = vld [vmem:[%s13022_s3 + $0x80] sm:$0xf] }
 0x293   :  { %v3161_v35 = vpop.f32.mrf.mxu2  ;;  %4713 = vmatpush.bf16.msrb.mxu1 %v7727_v53 }
 0x294   :  { %13066 = vst [vmem:[#allocation43_spill] sm:$0xff] %v11212_v58  ;;  %v3162_v8 = vadd.f32 %v3161_v35, %v9698_v27  ;;  %v8070_v27 = vld [vmem:[%s13022_s3 + $0x3c0] sm:$0xf0] }
 0x295   :  { %v3220_v32 = vpop.f32.mrf.mxu0  ;;  %v6995_v4 = vor.u32 %v8070_v27, %v6994_v49  ;;  %v7971_v27 = vld [vmem:[%s13022_s3 + $0xa8] sm:$0xf0] }
 0x296   :  { %v3221_v52 = vadd.f32 %v3220_v32, %v10001_v31  ;;  %v8319_v31 = vld [vmem:[%s13024_s5 + $0xd8] sm:$0xf0] }
 0x297   :  { %v3189_v24 = vpop.f32.mrf.mxu3  ;;  %3519 = vmatpush.bf16.msrb.mxu3 %v6995_v4  ;;  %v7331_v23 = vor.u32 %v8319_v31, %v7330_v10  ;;  %v6599_v4 = vor.u32 %v7971_v27, %v6598_v43 }
 0x298   :  { %v11240_v37 = vadd.f32 %v3189_v24, %v3162_v8  ;;  %3387 = vmatmul.bf16.gmra.mxu2 %v10214_v0  ;;  %3443 = vmatmul.bf16.gmra.mxu0 %v10214_v0  ;;  %v7682_v8 = vld [vmem:[%s13024_s5 + $0x370] sm:$0xf]  ;;  %v8059_v24 = vld [vmem:[%s13022_s3 + $0x368] sm:$0xf0] }
 0x299   :  { %v3248_v35 = vpop.f32.mrf.mxu1  ;;  %v7683_v32 = vor.u32 %v8407_v13, %v7682_v8  ;;  %4686 = vmatpush.bf16.msrb.mxu0 %v7331_v23  ;;  %3492 = vmatpush.bf16.msrb.mxu2 %v6599_v4  ;;  %v8308_v23 = vld [vmem:[%s13024_s5 + $0x80] sm:$0xf0]  ;;  %v7960_v4 = vld [vmem:[%s13022_s3 + $0x50] sm:$0xf0] }
 0x29a   :  { %v11244_v5 = vadd.f32 %v3248_v35, %v3221_v52  ;;  %v6950_v52 = vld [vmem:[%s13022_s3 + $0x340] sm:$0xf] }
 0x29b   :  { %v3164_v53 = vpop.f32.mrf.mxu2  ;;  %4714 = vmatpush.bf16.msrb.mxu1 %v7683_v32  ;;  %v6951_v10 = vor.u32 %v8059_v24, %v6950_v52  ;;  %v6906_v24 = vld [vmem:[%s13022_s3 + $0x2e8] sm:$0xf] }
 0x29c   :  { %13067 = vst [vmem:[#allocation44_spill] sm:$0xff] %v11244_v5  ;;  %v3165_v49 = vadd.f32 %v3164_v53, %v9728_v57  ;;  %7205 = vmatmul.msk.bf16.gmra.mxu3 %vm1317_vm1, %v10232_v60  ;;  %7209 = vmatmul.msk.bf16.gmra.mxu1 %vm1317_vm1, %v10232_v60  ;;  %v7286_v53 = vld [vmem:[%s13024_s5 + $0x58] sm:$0xf] }
 0x29d   :  { %v3222_v57 = vpop.f32.mrf.mxu0  ;;  %3520 = vmatpush.bf16.msrb.mxu3 %v6951_v10  ;;  %v7287_v43 = vor.u32 %v8308_v23, %v7286_v53  ;;  %v7242_v53 = vld [vmem:[%s13024_s5] sm:$0xf]  ;;  %v8297_v23 = vld [vmem:[%s13024_s5 + $0x28] sm:$0xf0] }
 0x29e   :  { %v3223_v35 = vadd.f32 %v3222_v57, %v10035_v19  ;;  %v7638_v19 = vld [vmem:[%s13024_s5 + $0x318] sm:$0xf]  ;;  %v6554_v57 = vld [vmem:[%s13022_s3 + $0x28] sm:$0xf] }
 0x29f   :  { %v3192_v31 = vpop.f32.mrf.mxu3  ;;  %4687 = vmatpush.bf16.msrb.mxu0 %v7287_v43 }
 0x2a0   :  { %v11276_v8 = vadd.f32 %v3192_v31, %v3165_v49  ;;  %v8396_v49 = vld [vmem:[%s13024_s5 + $0x340] sm:$0xf0]  ;;  %v8048_v31 = vld [vmem:[%s13022_s3 + $0x310] sm:$0xf0] }
 0x2a1   :  { %v3250_v13 = vpop.f32.mrf.mxu1  ;;  %v7639_v27 = vor.u32 %v8396_v49, %v7638_v19  ;;  %v6907_v43 = vor.u32 %v8048_v31, %v6906_v24  ;;  %v7243_v19 = vor.u32 %v8297_v23, %v7242_v53  ;;  %v7552_v53 = vld [vmem:[%s13024_s5 + $0x294] sm:$0xf0]  ;;  %v4285_v23 = vunpack.c.h.b16 %v11096_v29  ;;  %v8375_v29 = vld [vmem:[%s13024_s5 + $0x298] sm:$0xf0] }
 0x2a2   :  { %v11290_v32 = vadd.f32 %v3250_v13, %v3223_v35  ;;  %v6555_v35 = vor.u32 %v7960_v4, %v6554_v57 }
 0x2a3   :  { %v3166_v52 = vpop.f32.mrf.mxu2  ;;  %4715 = vmatpush.bf16.msrb.mxu1 %v7639_v27  ;;  %v8385_v27 = vld [vmem:[%s13024_s5 + $0x2e8] sm:$0xf0]  ;;  %3521 = vmatpush.bf16.msrb.mxu3 %v6907_v43 }
 0x2a4   :  { %13068 = vst [vmem:[#allocation45_spill] sm:$0xff] %v11290_v32  ;;  %v3167_v10 = vadd.f32 %v3166_v52, %v9772_v41  ;;  %3493 = vmatpush.bf16.msrb.mxu2 %v6555_v35  ;;  %v7594_v41 = vld [vmem:[%s13024_s5 + $0x2c0] sm:$0xf]  ;;  %4688 = vmatpush.bf16.msrb.mxu0 %v7243_v19  ;;  %v4461_v19 = vpack.c.b16 %v4285_v23, %v4285_v23  ;;  %v8358_v23 = vld [vmem:[%s13024_s5 + $0x214] sm:$0xf] }
 0x2a5   :  { %v3225_v13 = vpop.f32.mrf.mxu0  ;;  %v7595_v57 = vor.u32 %v8385_v27, %v7594_v41 }
 0x2a6   :  { %v3226_v49 = vadd.f32 %v3225_v13, %v10054_v17  ;;  %v4652_v27 = vsel %vm1330_vm0, %v4461_v19, 0 }
 0x2a7   :  { %v3194_v52 = vpop.f32.mrf.mxu3  ;;  %4716 = vmatpush.bf16.msrb.mxu1 %v7595_v57  ;;  %4765 = vmatpush.bf16.msra.mxu3 %v4652_v27  ;;  %v13071_v27 = vld [vmem:[#allocation13_spill] sm:$0xff] }
 0x2a8   :  { %v11318_v4 = vadd.f32 %v3194_v52, %v3167_v10  ;;  %3392 = vmatmul.bf16.gmra.mxu2 %v10295_v38  ;;  %3448 = vmatmul.bf16.gmra.mxu0 %v10295_v38  ;;  %v8369_v10 = vld [vmem:[%s13024_s5 + $0x26c] sm:$0xf] }
 0x2a9   :  { %v3253_v17 = vpop.f32.mrf.mxu1  ;;  %v7555_v43 = vor.u32 %v8369_v10, %v7552_v53 }
 0x2aa   :  { %v11322_v24 = vadd.f32 %v3253_v17, %v3226_v49  ;;  %v7558_v17 = vld [vmem:[%s13024_s5 + $0x270] sm:$0xf] }
 0x2ab   :  { %v3169_v35 = vpop.f32.mrf.mxu2  ;;  %4737 = vmatpush.bf16.msra.mxu2 %v7555_v43  ;;  %v8446_v43 = vld [vmem:[%s13024_s5 + $0x4d4] sm:$0xf] }
 0x2ac   :  { %13069 = vst [vmem:[#allocation46_spill] sm:$0xff] %v11322_v24  ;;  %v3170_v31 = vadd.f32 %v3169_v35, %v9802_v21  ;;  %7206 = vmatmul.msk.bf16.gmra.mxu3 %vm1317_vm1, %v10322_v59  ;;  %7210 = vmatmul.msk.bf16.gmra.mxu1 %vm1317_vm1, %v10322_v59 }
 0x2ad   :  { %v3227_v13 = vpop.f32.mrf.mxu0 }
 0x2ae   :  { %v3228_v21 = vadd.f32 %v3227_v13, %v10078_v1  ;;  %v11351_v1 = vld [vmem:[%s13024_s5 + $0x530] sm:$0x77]  ;;  %v7508_v13 = vld [vmem:[%s13024_s5 + $0x23c] sm:$0xf0] }
 0x2af   :  { %v3197_v49 = vpop.f32.mrf.mxu3  ;;  %v4286_v10 = vunpack.c.l.b16 %v11351_v1 }
 0x2b0   :  { %v11337_v41 = vadd.f32 %v3197_v49, %v3170_v31  ;;  %v7559_v31 = vor.u32 %v8375_v29, %v7558_v17  ;;  %v7511_v49 = vor.u32 %v8358_v23, %v7508_v13  ;;  %v7514_v23 = vld [vmem:[%s13024_s5 + $0x218] sm:$0xf]  ;;  %v8364_v13 = vld [vmem:[%s13024_s5 + $0x240] sm:$0xf0] }
 0x2b1   :  { %v3255_v52 = vpop.f32.mrf.mxu1  ;;  %v4462_v19 = vpack.c.b16 %v4286_v10, %v4286_v10 }
 0x2b2   :  { %v11340_v57 = vadd.f32 %v3255_v52, %v3228_v21  ;;  %4793 = vmatpush.bf16.msra.mxu0 %v7559_v31  ;;  %4738 = vmatpush.bf16.msra.mxu2 %v7511_v49  ;;  %v13074_v49 = vld [vmem:[#allocation5_spill] sm:$0xff] }
 0x2b3   :  { %v3171_v35 = vpop.f32.mrf.mxu2 }
 0x2b4   :  { %13070 = vst [vmem:[#allocation47_spill] sm:$0xff] %v11340_v57  ;;  %v3172_v53 = vadd.f32 %v3171_v35, %v9820_v45  ;;  %v7860_v45 = vld [vmem:[%s13024_s5 + $0x4fc] sm:$0xf0]  ;;  %v4655_v35 = vsel %vm1330_vm0, %v4462_v19, 0  ;;  %v8452_v19 = vld [vmem:[%s13024_s5 + $0x500] sm:$0xf0] }
 0x2b5   :  { %v3230_v21 = vpop.f32.mrf.mxu0  ;;  %v7863_v17 = vor.u32 %v8446_v43, %v7860_v45  ;;  %4821 = vmatpush.bf16.msra.mxu1 %v4655_v35 }
 0x2b6   :  { %v3231_v52 = vadd.f32 %v3230_v21, %v13071_v27  ;;  %v7515_v21 = vor.u32 %v8364_v13, %v7514_v23  ;;  %v7816_v23 = vld [vmem:[%s13024_s5 + $0x4a4] sm:$0xf0] }
 0x2b7   :  { %v3199_v29 = vpop.f32.mrf.mxu3  ;;  %4766 = vmatpush.bf16.msra.mxu3 %v7863_v17  ;;  %v7464_v17 = vld [vmem:[%s13024_s5 + $0x1e4] sm:$0xf0] }
 0x2b8   :  { %v11369_v57 = vadd.f32 %v3199_v29, %v3172_v53  ;;  %3397 = vmatmul.bf16.gmra.mxu2 %v10362_v25  ;;  %3453 = vmatmul.bf16.gmra.mxu0 %v10362_v25  ;;  %v7866_v53 = vld [vmem:[%s13024_s5 + $0x4d8] sm:$0xf]  ;;  %v8435_v29 = vld [vmem:[%s13024_s5 + $0x47c] sm:$0xf] }
 0x2b9   :  { %v3258_v31 = vpop.f32.mrf.mxu1  ;;  %v7867_v27 = vor.u32 %v8452_v19, %v7866_v53  ;;  %4794 = vmatpush.bf16.msra.mxu0 %v7515_v21  ;;  %v7819_v13 = vor.u32 %v8435_v29, %v7816_v23  ;;  %v8287_v21 = vld [vmem:[%s13021_s2 + $0x4] sm:$0xf0] }
 0x2ba   :  { %13072 = vst [vmem:[#allocation13_spill] sm:$0xff] %v11369_v57  ;;  %v11373_v10 = vadd.f32 %v3258_v31, %v3231_v52  ;;  %v8347_v52 = vld [vmem:[%s13024_s5 + $0x1bc] sm:$0xf] }
 0x2bb   :  { %v3174_v43 = vpop.f32.mrf.mxu2  ;;  %v7467_v31 = vor.u32 %v8347_v52, %v7464_v17  ;;  %4822 = vmatpush.bf16.msra.mxu1 %v7867_v27  ;;  %4767 = vmatpush.bf16.msra.mxu3 %v7819_v13  ;;  %v7470_v52 = vld [vmem:[%s13024_s5 + $0x1c0] sm:$0xf]  ;;  %v8353_v27 = vld [vmem:[%s13024_s5 + $0x1e8] sm:$0xf0]  ;;  %v8336_v13 = vld [vmem:[%s13024_s5 + $0x164] sm:$0xf] }
 0x2bc   :  { %13073 = vst [vmem:[#allocation48_spill] sm:$0xff] %v11373_v10  ;;  %v3175_v45 = vadd.f32 %v3174_v43, %v13074_v49  ;;  %7207 = vmatmul.msk.bf16.gmra.mxu3 %vm1317_vm1, %v10372_v20  ;;  %7211 = vmatmul.msk.bf16.gmra.mxu1 %vm1317_vm1, %v10372_v20  ;;  %v7218_v49 = vld [vmem:[%s13021_s2] sm:$0xf]  ;;  %v7471_v29 = vor.u32 %v8353_v27, %v7470_v52  ;;  %v8286_v27 = vld [vmem:[%s13021_s2 + $0x4] sm:$0xf] }
 0x2bd   :  { %v3232_v35 = vpop.f32.mrf.mxu0  ;;  %4739 = vmatpush.bf16.msra.mxu2 %v7467_v31  ;;  %v11424_v31 = vor.u32 %v8287_v21, %v7218_v49  ;;  %v7220_v49 = vld [vmem:[%s13021_s2 + $0x8] sm:$0xf0] }
 0x2be   :  { %v8441_v35 = vld [vmem:[%s13024_s5 + $0x4a8] sm:$0xf0]  ;;  %4795 = vmatpush.bf16.msra.mxu0 %v7471_v29  ;;  %v11447_v32 = vor.u32 %v8286_v27, %v7220_v49  ;;  %v7376_v49 = vld [vmem:[%s13024_s5 + $0x134] sm:$0xf0] }
 0x2bf   :  { %v3202_v53 = vpop.f32.mrf.mxu3  ;;  %v8325_v27 = vld [vmem:[%s13024_s5 + $0x10c] sm:$0xf] }
 0x2c0   :  { %v11404_v43 = vadd.f32 %v3202_v53, %v3175_v45  ;;  %v7822_v45 = vld [vmem:[%s13024_s5 + $0x480] sm:$0xf]  ;;  %v7420_v53 = vld [vmem:[%s13024_s5 + $0x18c] sm:$0xf0] }
 0x2c1   :  { %v3260_v19 = vpop.f32.mrf.mxu1  ;;  %v7823_v23 = vor.u32 %v8441_v35, %v7822_v45  ;;  %v7423_v21 = vor.u32 %v8336_v13, %v7420_v53  ;;  %v7772_v45 = vld [vmem:[%s13024_s5 + $0x44c] sm:$0xf0]  ;;  %v7426_v13 = vld [vmem:[%s13024_s5 + $0x168] sm:$0xf] }
 0x2c2   :  { %13075 = vst [vmem:[#allocation5_spill] sm:$0xff] %v11404_v43  ;;  %v8424_v19 = vld [vmem:[%s13024_s5 + $0x424] sm:$0xf] }
 0x2c3   :  { %v3176_v17 = vpop.f32.mrf.mxu2  ;;  %4823 = vmatpush.bf16.msra.mxu1 %v7823_v23  ;;  %v7775_v10 = vor.u32 %v8424_v19, %v7772_v45  ;;  %4740 = vmatpush.bf16.msra.mxu2 %v7423_v21  ;;  %v8342_v23 = vld [vmem:[%s13024_s5 + $0x190] sm:$0xf0]  ;;  %v8413_v21 = vld [vmem:[%s13024_s5 + $0x3cc] sm:$0xf] }
 0x2c4   :  { %v13076_v17 = vld [vmem:[#allocation15_spill] sm:$0xff]  ;;  %v7427_v53 = vor.u32 %v8342_v23, %v7426_v13 }
 0x2c5   :  { %v3327_v52 = vpop.f32.mrf.mxu0  ;;  %4768 = vmatpush.bf16.msra.mxu3 %v7775_v10  ;;  %v8430_v10 = vld [vmem:[%s13024_s5 + $0x450] sm:$0xf0] }
 0x2c6   :  { %v3328_v35 = vadd.f32 %v3327_v52, %v13076_v17  ;;  %4796 = vmatpush.bf16.msra.mxu0 %v7427_v53  ;;  %v7379_v17 = vor.u32 %v8325_v27, %v7376_v49  ;;  %v8289_v53 = vld [vmem:[%s13021_s2 + $0x14] sm:$0xf0]  ;;  %v7734_v49 = vld [vmem:[%s13024_s5 + $0x3d0] sm:$0xf] }
 0x2c7   :  { %v3204_v24 = vpop.f32.mrf.mxu3 }
 0x2c8   :  { %3494 = vmatmul.bf16.vlgmr.msrb.gmra.mxu2 %v10138_v6  ;;  %4689 = vmatmul.bf16.vlgmr.msrb.gmra.mxu0 %v11424_v31  ;;  %v7778_v6 = vld [vmem:[%s13024_s5 + $0x428] sm:$0xf] }
 0x2c9   :  { %v3355_v5 = vpop.f32.mrf.mxu1  ;;  %v7779_v52 = vor.u32 %v8430_v10, %v7778_v6  ;;  %4741 = vmatpush.bf16.msra.mxu2 %v7379_v17  ;;  %v8419_v17 = vld [vmem:[%s13024_s5 + $0x3f8] sm:$0xf0] }
 0x2ca   :  { %v11449_v29 = vadd.f32 %v3355_v5, %v3328_v35  ;;  %v13078_v5 = vld [vmem:[#allocation6_spill] sm:$0xff]  ;;  %v13079_v35 = vld [vmem:[#allocation17_spill] sm:$0xff] }
 0x2cb   :  { %v3271_v24 = vpop.f32.mrf.mxu2  ;;  %4824 = vmatpush.bf16.msra.mxu1 %v7779_v52  ;;  %v7382_v52 = vld [vmem:[%s13024_s5 + $0x110] sm:$0xf] }
 0x2cc   :  { %13077 = vst [vmem:[#allocation15_spill] sm:$0xff] %v11449_v29  ;;  %v3272_v19 = vadd.f32 %v3271_v24, %v13078_v5  ;;  %7212 = vmatmul.msk.bf16.vlgmr.msrb.gmra.mxu3 %vm1317_vm1, %v10154_v2  ;;  %7900 = vmatmul.msk.bf16.vlgmr.msrb.gmra.mxu1 %vm1317_vm1, %v11447_v32  ;;  %v7728_v2 = vld [vmem:[%s13024_s5 + $0x3f4] sm:$0xf0]  ;;  %v7226_v5 = vld [vmem:[%s13021_s2 + $0x10] sm:$0xf] }
 0x2cd   :  { %v3329_v45 = vpop.f32.mrf.mxu0  ;;  %v7731_v23 = vor.u32 %v8413_v21, %v7728_v2  ;;  %v13082_v2 = vld [vmem:[#allocation7_spill] sm:$0xff] }
 0x2ce   :  { %v3330_v13 = vadd.f32 %v3329_v45, %v13079_v35 }
 0x2cf   :  { %v3299_v6 = vpop.f32.mrf.mxu3  ;;  %4769 = vmatpush.bf16.msra.mxu3 %v7731_v23  ;;  %v7735_v23 = vor.u32 %v8419_v17, %v7734_v49  ;;  %v7684_v49 = vld [vmem:[%s13024_s5 + $0x39c] sm:$0xf0]  ;;  %v13083_v17 = vld [vmem:[#allocation19_spill] sm:$0xff] }
 0x2d0   :  { %v11481_v24 = vadd.f32 %v3299_v6, %v3272_v19  ;;  %v8331_v19 = vld [vmem:[%s13024_s5 + $0x138] sm:$0xf0]  ;;  %v8314_v6 = vld [vmem:[%s13024_s5 + $0xb4] sm:$0xf] }
 0x2d1   :  { %v3357_v10 = vpop.f32.mrf.mxu1  ;;  %v7383_v45 = vor.u32 %v8331_v19, %v7382_v52  ;;  %v8402_v52 = vld [vmem:[%s13024_s5 + $0x374] sm:$0xf]  ;;  %4825 = vmatpush.bf16.msra.mxu1 %v7735_v23  ;;  %v8320_v23 = vld [vmem:[%s13024_s5 + $0xe0] sm:$0xf0] }
 0x2d2   :  { %13080 = vst [vmem:[#allocation6_spill] sm:$0xff] %v11481_v24  ;;  %v11489_v27 = vadd.f32 %v3357_v10, %v3330_v13  ;;  %v11504_v13 = vor.u32 %v8289_v53, %v7226_v5  ;;  %v7332_v10 = vld [vmem:[%s13024_s5 + $0xdc] sm:$0xf0]  ;;  %v7228_v5 = vld [vmem:[%s13021_s2 + $0x18] sm:$0xf0] }
 0x2d3   :  { %v3273_v21 = vpop.f32.mrf.mxu2  ;;  %4797 = vmatpush.bf16.msra.mxu0 %v7383_v45  ;;  %v7335_v53 = vor.u32 %v8314_v6, %v7332_v10  ;;  %v7338_v10 = vld [vmem:[%s13024_s5 + $0xb8] sm:$0xf] }
 0x2d4   :  { %13081 = vst [vmem:[#allocation17_spill] sm:$0xff] %v11489_v27  ;;  %v3274_v35 = vadd.f32 %v3273_v21, %v13082_v2  ;;  %v8288_v21 = vld [vmem:[%s13021_s2 + $0x14] sm:$0xf]  ;;  %v7687_v27 = vor.u32 %v8402_v52, %v7684_v49  ;;  %v13086_v52 = vld [vmem:[#allocation8_spill] sm:$0xff]  ;;  %v8391_v49 = vld [vmem:[%s13024_s5 + $0x31c] sm:$0xf] }
 0x2d5   :  { %v3332_v19 = vpop.f32.mrf.mxu0  ;;  %4742 = vmatpush.bf16.msra.mxu2 %v7335_v53  ;;  %v11529_v14 = vor.u32 %v8288_v21, %v7228_v5  ;;  %v8303_v5 = vld [vmem:[%s13024_s5 + $0x5c] sm:$0xf]  ;;  %v7288_v53 = vld [vmem:[%s13024_s5 + $0x84] sm:$0xf0] }
 0x2d6   :  { %v3333_v2 = vadd.f32 %v3332_v19, %v13083_v17  ;;  %4770 = vmatpush.bf16.msra.mxu3 %v7687_v27  ;;  %v8408_v27 = vld [vmem:[%s13024_s5 + $0x3a0] sm:$0xf0] }
 0x2d7   :  { %v3301_v29 = vpop.f32.mrf.mxu3 }
 0x2d8   :  { %v11525_v58 = vadd.f32 %v3301_v29, %v3274_v35  ;;  %3499 = vmatmul.bf16.gmra.mxu2 %v10214_v0  ;;  %4694 = vmatmul.bf16.gmra.mxu0 %v11504_v13  ;;  %v7690_v0 = vld [vmem:[%s13024_s5 + $0x378] sm:$0xf]  ;;  %v7339_v35 = vor.u32 %v8320_v23, %v7338_v10 }
 0x2d9   :  { %v3360_v45 = vpop.f32.mrf.mxu1  ;;  %v7691_v21 = vor.u32 %v8408_v27, %v7690_v0  ;;  %v7234_v27 = vld [vmem:[%s13021_s2 + $0x20] sm:$0xf] }
 0x2da   :  { %13084 = vst [vmem:[#allocation7_spill] sm:$0xff] %v11525_v58  ;;  %v11531_v6 = vadd.f32 %v3360_v45, %v3333_v2  ;;  %4798 = vmatpush.bf16.msra.mxu0 %v7339_v35  ;;  %v7291_v2 = vor.u32 %v8303_v5, %v7288_v53  ;;  %v13087_v45 = vld [vmem:[#allocation21_spill] sm:$0xff]  ;;  %v7294_v35 = vld [vmem:[%s13024_s5 + $0x60] sm:$0xf] }
 0x2db   :  { %v3276_v29 = vpop.f32.mrf.mxu2  ;;  %4826 = vmatpush.bf16.msra.mxu1 %v7691_v21  ;;  %v8291_v21 = vld [vmem:[%s13021_s2 + $0x24] sm:$0xf0]  ;;  %v7646_v53 = vld [vmem:[%s13024_s5 + $0x320] sm:$0xf] }
 0x2dc   :  { %13085 = vst [vmem:[#allocation19_spill] sm:$0xff] %v11531_v6  ;;  %v3277_v19 = vadd.f32 %v3276_v29, %v13086_v52  ;;  %7213 = vmatmul.msk.bf16.gmra.mxu3 %vm1317_vm1, %v10232_v60  ;;  %7901 = vmatmul.msk.bf16.gmra.mxu1 %vm1317_vm1, %v11529_v14  ;;  %v7640_v60 = vld [vmem:[%s13024_s5 + $0x344] sm:$0xf0]  ;;  %v8309_v52 = vld [vmem:[%s13024_s5 + $0x88] sm:$0xf0]  ;;  %v11595_v6 = vor.u32 %v8291_v21, %v7234_v27 }
 0x2dd   :  { %v3334_v17 = vpop.f32.mrf.mxu0  ;;  %v7643_v23 = vor.u32 %v8391_v49, %v7640_v60  ;;  %4743 = vmatpush.bf16.msra.mxu2 %v7291_v2  ;;  %v8397_v49 = vld [vmem:[%s13024_s5 + $0x348] sm:$0xf0]  ;;  %v8290_v27 = vld [vmem:[%s13021_s2 + $0x24] sm:$0xf] }
 0x2de   :  { %v3335_v10 = vadd.f32 %v3334_v17, %v13087_v45  ;;  %v7647_v2 = vor.u32 %v8397_v49, %v7646_v53  ;;  %v8292_v45 = vld [vmem:[%s13024_s5 + $0x4] sm:$0xf]  ;;  %v8298_v53 = vld [vmem:[%s13024_s5 + $0x30] sm:$0xf0]  ;;  %v7236_v21 = vld [vmem:[%s13021_s2 + $0x28] sm:$0xf0] }
 0x2df   :  { %v3304_v0 = vpop.f32.mrf.mxu3  ;;  %4771 = vmatpush.bf16.msra.mxu3 %v7643_v23  ;;  %v7244_v23 = vld [vmem:[%s13024_s5 + $0x2c] sm:$0xf0] }
 0x2e0   :  { %v11563_v29 = vadd.f32 %v3304_v0, %v3277_v19  ;;  %v7295_v19 = vor.u32 %v8309_v52, %v7294_v35  ;;  %v8380_v0 = vld [vmem:[%s13024_s5 + $0x2c4] sm:$0xf]  ;;  %v13090_v35 = vld [vmem:[#allocation9_spill] sm:$0xff]  ;;  %4827 = vmatpush.bf16.msra.mxu1 %v7647_v2 }
 0x2e1   :  { %v3362_v5 = vpop.f32.mrf.mxu1 }
 0x2e2   :  { %13088 = vst [vmem:[#allocation8_spill] sm:$0xff] %v11563_v29  ;;  %v11583_v17 = vadd.f32 %v3362_v5, %v3335_v10  ;;  %4799 = vmatpush.bf16.msra.mxu0 %v7295_v19  ;;  %v7247_v10 = vor.u32 %v8292_v45, %v7244_v23  ;;  %v7596_v5 = vld [vmem:[%s13024_s5 + $0x2ec] sm:$0xf0]  ;;  %v7250_v19 = vld [vmem:[%s13024_s5 + $0x8] sm:$0xf] }
 0x2e3   :  { %v3278_v60 = vpop.f32.mrf.mxu2  ;;  %v7599_v2 = vor.u32 %v8380_v0, %v7596_v5  ;;  %v13091_v45 = vld [vmem:[#allocation23_spill] sm:$0xff]  ;;  %v11623_v0 = vor.u32 %v8290_v27, %v7236_v21 }
 0x2e4   :  { %13089 = vst [vmem:[#allocation21_spill] sm:$0xff] %v11583_v17  ;;  %v3279_v52 = vadd.f32 %v3278_v60, %v13090_v35  ;;  %v7251_v60 = vor.u32 %v8298_v53, %v7250_v19  ;;  %4744 = vmatpush.bf16.msra.mxu2 %v7247_v10  ;;  %v7602_v35 = vld [vmem:[%s13024_s5 + $0x2c8] sm:$0xf]  ;;  %v8386_v17 = vld [vmem:[%s13024_s5 + $0x2f0] sm:$0xf0]  ;;  %v13094_v53 = vld [vmem:[#allocation10_spill] sm:$0xff] }
 0x2e5   :  { %v3337_v49 = vpop.f32.mrf.mxu0  ;;  %4772 = vmatpush.bf16.msra.mxu3 %v7599_v2  ;;  %v7603_v58 = vor.u32 %v8386_v17, %v7602_v35 }
 0x2e6   :  { %v3338_v23 = vadd.f32 %v3337_v49, %v13091_v45  ;;  %4800 = vmatpush.bf16.msra.mxu0 %v7251_v60 }
 0x2e7   :  { %v3306_v29 = vpop.f32.mrf.mxu3  ;;  %4828 = vmatpush.bf16.msra.mxu1 %v7603_v58  ;;  %v4287_v58 = vunpack.c.h.b16 %v11351_v1  ;;  %v7566_v1 = vld [vmem:[%s13024_s5 + $0x278] sm:$0xf] }
 0x2e8   :  { %v11619_v24 = vadd.f32 %v3306_v29, %v3279_v52  ;;  %3504 = vmatmul.bf16.gmra.mxu2 %v10295_v38  ;;  %4699 = vmatmul.bf16.gmra.mxu0 %v11595_v6  ;;  %v8370_v38 = vld [vmem:[%s13024_s5 + $0x274] sm:$0xf]  ;;  %v7560_v29 = vld [vmem:[%s13024_s5 + $0x29c] sm:$0xf0] }
 0x2e9   :  { %v3365_v10 = vpop.f32.mrf.mxu1  ;;  %v3548_v52 = vld [vmem:[%s13021_s2 + $0x30] sm:$0xff]  ;;  %v7563_v27 = vor.u32 %v8370_v38, %v7560_v29  ;;  %v4463_v21 = vpack.c.b16 %v4287_v58, %v4287_v58  ;;  %v13097_v29 = vld [vmem:[#allocation11_spill] sm:$0xff] }
 0x2ea   :  { %13092 = vst [vmem:[#allocation9_spill] sm:$0xff] %v11619_v24  ;;  %v11625_v5 = vadd.f32 %v3365_v10, %v3338_v23  ;;  %v3754_v45 = vunpack.c.l.b16 %v3548_v52 }
 0x2eb   :  { %v3281_v19 = vpop.f32.mrf.mxu2  ;;  %4849 = vmatpush.bf16.msrb.mxu2 %v7563_v27  ;;  %v4658_v23 = vsel %vm1330_vm0, %v4463_v21, 0  ;;  %v3755_v27 = vunpack.c.h.b16 %v3548_v52  ;;  %v7516_v21 = vld [vmem:[%s13024_s5 + $0x244] sm:$0xf0] }
 0x2ec   :  { %13093 = vst [vmem:[#allocation23_spill] sm:$0xff] %v11625_v5  ;;  %v3282_v49 = vadd.f32 %v3281_v19, %v13094_v53  ;;  %7214 = vmatmul.msk.bf16.gmra.mxu3 %vm1317_vm1, %v10322_v59  ;;  %7902 = vmatmul.msk.bf16.gmra.mxu1 %vm1317_vm1, %v11623_v0  ;;  %v11657_v19 = vld [vmem:[%s13024_s5 + $0x538] sm:$0x77]  ;;  %v7868_v52 = vld [vmem:[%s13024_s5 + $0x504] sm:$0xf0] }
 0x2ed   :  { %v3339_v17 = vpop.f32.mrf.mxu0  ;;  %4877 = vmatpush.bf16.msrb.mxu3 %v4658_v23  ;;  %v4288_v38 = vunpack.c.l.b16 %v11657_v19 }
 0x2ee   :  { %v3340_v59 = vadd.f32 %v3339_v17, %v10368_v22  ;;  %v8376_v22 = vld [vmem:[%s13024_s5 + $0x2a0] sm:$0xf0]  ;;  %v11661_v17 = vpack.c.b16 %v3754_v45, %v3754_v45  ;;  %v13098_v45 = vld [vmem:[#allocation26_spill] sm:$0xff] }
 0x2ef   :  { %v3309_v2 = vpop.f32.mrf.mxu3 }
 0x2f0   :  { %v11643_v60 = vadd.f32 %v3309_v2, %v3282_v49  ;;  %v7567_v49 = vor.u32 %v8376_v22, %v7566_v1  ;;  %v8447_v2 = vld [vmem:[%s13024_s5 + $0x4dc] sm:$0xf] }
 0x2f1   :  { %v3367_v35 = vpop.f32.mrf.mxu1 }
 0x2f2   :  { %13095 = vst [vmem:[#allocation10_spill] sm:$0xff] %v11643_v60  ;;  %v11646_v10 = vadd.f32 %v3367_v35, %v3340_v59  ;;  %v8359_v59 = vld [vmem:[%s13024_s5 + $0x21c] sm:$0xf]  ;;  %4905 = vmatpush.bf16.msrb.mxu0 %v7567_v49  ;;  %v4464_v35 = vpack.c.b16 %v4288_v38, %v4288_v38  ;;  %v11681_v49 = vpack.c.b16 %v3755_v27, %v3755_v27 }
 0x2f3   :  { %v3283_v53 = vpop.f32.mrf.mxu2  ;;  %v7519_v1 = vor.u32 %v8359_v59, %v7516_v21  ;;  %v7522_v21 = vld [vmem:[%s13024_s5 + $0x220] sm:$0xf] }
 0x2f4   :  { %13096 = vst [vmem:[#allocation49_spill] sm:$0xff] %v11646_v10  ;;  %v3284_v58 = vadd.f32 %v3283_v53, %v13097_v29  ;;  %v7871_v53 = vor.u32 %v8447_v2, %v7868_v52  ;;  %v4661_v10 = vsel %vm1330_vm0, %v4464_v35, 0  ;;  %v8348_v52 = vld [vmem:[%s13024_s5 + $0x1c4] sm:$0xf] }
 0x2f5   :  { %v3342_v23 = vpop.f32.mrf.mxu0  ;;  %4850 = vmatpush.bf16.msrb.mxu2 %v7519_v1  ;;  %4933 = vmatpush.bf16.msrb.mxu1 %v4661_v10  ;;  %v8453_v10 = vld [vmem:[%s13024_s5 + $0x508] sm:$0xf0] }
 0x2f6   :  { %v3343_v22 = vadd.f32 %v3342_v23, %v13098_v45  ;;  %4878 = vmatpush.bf16.msrb.mxu3 %v7871_v53  ;;  %v13101_v23 = vld [vmem:[#allocation12_spill] sm:$0xff] }
 0x2f7   :  { %v3311_v29 = vpop.f32.mrf.mxu3  ;;  %v7472_v45 = vld [vmem:[%s13024_s5 + $0x1ec] sm:$0xf0] }
 0x2f8   :  { %v11677_v5 = vadd.f32 %v3311_v29, %v3284_v58  ;;  %3509 = vmatmul.bf16.gmra.mxu2 %v10362_v25  ;;  %4704 = vmatmul.bf16.gmra.mxu0 %v11661_v17  ;;  %v8365_v58 = vld [vmem:[%s13024_s5 + $0x248] sm:$0xf0]  ;;  %v7874_v25 = vld [vmem:[%s13024_s5 + $0x4e0] sm:$0xf]  ;;  %v7475_v29 = vor.u32 %v8348_v52, %v7472_v45 }
 0x2f9   :  { %v3370_v38 = vpop.f32.mrf.mxu1  ;;  %v7523_v27 = vor.u32 %v8365_v58, %v7522_v21  ;;  %v7875_v1 = vor.u32 %v8453_v10, %v7874_v25  ;;  %v7830_v10 = vld [vmem:[%s13024_s5 + $0x488] sm:$0xf]  ;;  %v8337_v45 = vld [vmem:[%s13024_s5 + $0x16c] sm:$0xf] }
 0x2fa   :  { %13099 = vst [vmem:[#allocation11_spill] sm:$0xff] %v11677_v5  ;;  %v11683_v59 = vadd.f32 %v3370_v38, %v3343_v22  ;;  %v8436_v22 = vld [vmem:[%s13024_s5 + $0x484] sm:$0xf]  ;;  %4851 = vmatpush.bf16.msrb.mxu2 %v7475_v29 }
 0x2fb   :  { %v3286_v2 = vpop.f32.mrf.mxu2  ;;  %4906 = vmatpush.bf16.msrb.mxu0 %v7523_v27  ;;  %4934 = vmatpush.bf16.msrb.mxu1 %v7875_v1  ;;  %v8354_v27 = vld [vmem:[%s13024_s5 + $0x1f0] sm:$0xf0] }
 0x2fc   :  { %13100 = vst [vmem:[#allocation26_spill] sm:$0xff] %v11683_v59  ;;  %v3287_v35 = vadd.f32 %v3286_v2, %v13101_v23  ;;  %7215 = vmatmul.msk.bf16.gmra.mxu3 %vm1317_vm1, %v10372_v20  ;;  %7903 = vmatmul.msk.bf16.gmra.mxu1 %vm1317_vm1, %v11681_v49  ;;  %v7824_v20 = vld [vmem:[%s13024_s5 + $0x4ac] sm:$0xf0]  ;;  %v7478_v2 = vld [vmem:[%s13024_s5 + $0x1c8] sm:$0xf] }
 0x2fd   :  { %v3344_v53 = vpop.f32.mrf.mxu0  ;;  %v7827_v38 = vor.u32 %v8436_v22, %v7824_v20  ;;  %v7479_v1 = vor.u32 %v8354_v27, %v7478_v2  ;;  %v7428_v22 = vld [vmem:[%s13024_s5 + $0x194] sm:$0xf0] }
 0x2fe   :  { %v8425_v53 = vld [vmem:[%s13024_s5 + $0x42c] sm:$0xf]  ;;  %v7431_v20 = vor.u32 %v8337_v45, %v7428_v22 }
 0x2ff   :  { %v3314_v21 = vpop.f32.mrf.mxu3  ;;  %4879 = vmatpush.bf16.msrb.mxu3 %v7827_v38  ;;  %4907 = vmatpush.bf16.msrb.mxu0 %v7479_v1  ;;  %v7780_v38 = vld [vmem:[%s13024_s5 + $0x454] sm:$0xf0]  ;;  %v7434_v1 = vld [vmem:[%s13024_s5 + $0x170] sm:$0xf] }
 0x300   :  { %v11714_v58 = vadd.f32 %v3314_v21, %v3287_v35  ;;  %v8442_v35 = vld [vmem:[%s13024_s5 + $0x4b0] sm:$0xf0]  ;;  %v13103_v21 = vld [vmem:[#allocation28_spill] sm:$0xff]  ;;  %v7783_v2 = vor.u32 %v8425_v53, %v7780_v38  ;;  %4852 = vmatpush.bf16.msrb.mxu2 %v7431_v20  ;;  %v8431_v53 = vld [vmem:[%s13024_s5 + $0x458] sm:$0xf0] }
 0x301   :  { %v3372_v25 = vpop.f32.mrf.mxu1  ;;  %v7831_v52 = vor.u32 %v8442_v35, %v7830_v10  ;;  %v8343_v35 = vld [vmem:[%s13024_s5 + $0x198] sm:$0xf0] }
 0x302   :  { %13102 = vst [vmem:[#allocation12_spill] sm:$0xff] %v11714_v58  ;;  %v7435_v22 = vor.u32 %v8343_v35, %v7434_v1  ;;  %v7736_v1 = vld [vmem:[%s13024_s5 + $0x3fc] sm:$0xf0] }
 0x303   :  { %v3288_v23 = vpop.f32.mrf.mxu2  ;;  %4935 = vmatpush.bf16.msrb.mxu1 %v7831_v52  ;;  %4880 = vmatpush.bf16.msrb.mxu3 %v7783_v2  ;;  %v7786_v52 = vld [vmem:[%s13024_s5 + $0x430] sm:$0xf]  ;;  %v8414_v2 = vld [vmem:[%s13024_s5 + $0x3d4] sm:$0xf]  ;;  %v13106_v35 = vld [vmem:[#allocation30_spill] sm:$0xff] }
 0x304   :  { %v7787_v38 = vor.u32 %v8431_v53, %v7786_v52  ;;  %4908 = vmatpush.bf16.msrb.mxu0 %v7435_v22  ;;  %v7390_v22 = vld [vmem:[%s13024_s5 + $0x118] sm:$0xf] }
 0x305   :  { %v3439_v29 = vpop.f32.mrf.mxu0 }
 0x306   :  { %v3440_v25 = vadd.f32 %v3439_v29, %v13103_v21  ;;  %v13105_v29 = vld [vmem:[#allocation14_spill] sm:$0xff]  ;;  %v8326_v21 = vld [vmem:[%s13024_s5 + $0x114] sm:$0xf] }
 0x307   :  { %v3316_v27 = vpop.f32.mrf.mxu3  ;;  %4936 = vmatpush.bf16.msrb.mxu1 %v7787_v38  ;;  %v7742_v38 = vld [vmem:[%s13024_s5 + $0x3d8] sm:$0xf] }
 0x308   :  { %4745 = vmatmul.bf16.vlgmr.msra.gmra.mxu2 %v11424_v31  ;;  %4801 = vmatmul.bf16.vlgmr.msra.gmra.mxu0 %v11424_v31 }
 0x309   :  { %v3467_v10 = vpop.f32.mrf.mxu1 }
 0x30a   :  { %v11743_v23 = vadd.f32 %v3467_v10, %v3440_v25  ;;  %v7384_v25 = vld [vmem:[%s13024_s5 + $0x13c] sm:$0xf0] }
 0x30b   :  { %v3383_v45 = vpop.f32.mrf.mxu2  ;;  %v7387_v10 = vor.u32 %v8326_v21, %v7384_v25  ;;  %v8332_v21 = vld [vmem:[%s13024_s5 + $0x140] sm:$0xf0] }
 0x30c   :  { %13104 = vst [vmem:[#allocation28_spill] sm:$0xff] %v11743_v23  ;;  %v3384_v20 = vadd.f32 %v3383_v45, %v13105_v29  ;;  %7904 = vmatmul.msk.bf16.vlgmr.msra.gmra.mxu3 %vm1317_vm1, %v11447_v32  ;;  %7908 = vmatmul.msk.bf16.vlgmr.msra.gmra.mxu1 %vm1317_vm1, %v11447_v32  ;;  %v7739_v45 = vor.u32 %v8414_v2, %v7736_v1  ;;  %v8315_v1 = vld [vmem:[%s13024_s5 + $0xbc] sm:$0xf] }
 0x30d   :  { %v3441_v27 = vpop.f32.mrf.mxu0  ;;  %4853 = vmatpush.bf16.msrb.mxu2 %v7387_v10  ;;  %v7391_v2 = vor.u32 %v8332_v21, %v7390_v22  ;;  %v7692_v22 = vld [vmem:[%s13024_s5 + $0x3a4] sm:$0xf0]  ;;  %v13110_v21 = vld [vmem:[#allocation32_spill] sm:$0xff] }
 0x30e   :  { %v3442_v52 = vadd.f32 %v3441_v27, %v13106_v35  ;;  %4881 = vmatpush.bf16.msrb.mxu3 %v7739_v45  ;;  %v7340_v35 = vld [vmem:[%s13024_s5 + $0xe4] sm:$0xf0] }
 0x30f   :  { %v3411_v53 = vpop.f32.mrf.mxu3  ;;  %4909 = vmatpush.bf16.msrb.mxu0 %v7391_v2 }
 0x310   :  { %v11775_v29 = vadd.f32 %v3411_v53, %v3384_v20  ;;  %v8420_v20 = vld [vmem:[%s13024_s5 + $0x400] sm:$0xf0]  ;;  %v7343_v53 = vor.u32 %v8315_v1, %v7340_v35  ;;  %v7346_v1 = vld [vmem:[%s13024_s5 + $0xc0] sm:$0xf] }
 0x311   :  { %v3469_v23 = vpop.f32.mrf.mxu1  ;;  %v7743_v10 = vor.u32 %v8420_v20, %v7742_v38 }
 0x312   :  { %13107 = vst [vmem:[#allocation14_spill] sm:$0xff] %v11775_v29  ;;  %v11777_v59 = vadd.f32 %v3469_v23, %v3442_v52  ;;  %v13109_v23 = vld [vmem:[#allocation16_spill] sm:$0xff]  ;;  %v8403_v52 = vld [vmem:[%s13024_s5 + $0x37c] sm:$0xf]  ;;  %4854 = vmatpush.bf16.msrb.mxu2 %v7343_v53 }
 0x313   :  { %v3385_v25 = vpop.f32.mrf.mxu2  ;;  %4937 = vmatpush.bf16.msrb.mxu1 %v7743_v10  ;;  %v8321_v10 = vld [vmem:[%s13024_s5 + $0xe8] sm:$0xf0] }
 0x314   :  { %13108 = vst [vmem:[#allocation30_spill] sm:$0xff] %v11777_v59  ;;  %v3386_v27 = vadd.f32 %v3385_v25, %v13109_v23  ;;  %v7695_v25 = vor.u32 %v8403_v52, %v7692_v22  ;;  %v7347_v52 = vor.u32 %v8321_v10, %v7346_v1  ;;  %v7648_v10 = vld [vmem:[%s13024_s5 + $0x34c] sm:$0xf0] }
 0x315   :  { %v3444_v45 = vpop.f32.mrf.mxu0 }
 0x316   :  { %v3445_v38 = vadd.f32 %v3444_v45, %v13110_v21  ;;  %4882 = vmatpush.bf16.msrb.mxu3 %v7695_v25  ;;  %v8409_v45 = vld [vmem:[%s13024_s5 + $0x3a8] sm:$0xf0]  ;;  %v8304_v21 = vld [vmem:[%s13024_s5 + $0x64] sm:$0xf]  ;;  %4910 = vmatpush.bf16.msrb.mxu0 %v7347_v52  ;;  %v8310_v52 = vld [vmem:[%s13024_s5 + $0x90] sm:$0xf0] }
 0x317   :  { %v3413_v20 = vpop.f32.mrf.mxu3  ;;  %v8392_v25 = vld [vmem:[%s13024_s5 + $0x324] sm:$0xf] }
 0x318   :  { %v11805_v23 = vadd.f32 %v3413_v20, %v3386_v27  ;;  %4750 = vmatmul.bf16.gmra.mxu2 %v11504_v13  ;;  %4806 = vmatmul.bf16.gmra.mxu0 %v11504_v13  ;;  %v7698_v27 = vld [vmem:[%s13024_s5 + $0x380] sm:$0xf] }
 0x319   :  { %v3472_v59 = vpop.f32.mrf.mxu1  ;;  %v7699_v22 = vor.u32 %v8409_v45, %v7698_v27  ;;  %v13114_v27 = vld [vmem:[#allocation34_spill] sm:$0xff]  ;;  %v7651_v45 = vor.u32 %v8392_v25, %v7648_v10  ;;  %v8293_v10 = vld [vmem:[%s13024_s5 + $0xc] sm:$0xf] }
 0x31a   :  { %13111 = vst [vmem:[#allocation16_spill] sm:$0xff] %v11805_v23  ;;  %v11809_v2 = vadd.f32 %v3472_v59, %v3445_v38  ;;  %v13113_v59 = vld [vmem:[#allocation18_spill] sm:$0xff]  ;;  %v7296_v38 = vld [vmem:[%s13024_s5 + $0x8c] sm:$0xf0]  ;;  %v7302_v23 = vld [vmem:[%s13024_s5 + $0x68] sm:$0xf] }
 0x31b   :  { %v3388_v35 = vpop.f32.mrf.mxu2  ;;  %v7299_v1 = vor.u32 %v8304_v21, %v7296_v38  ;;  %4938 = vmatpush.bf16.msrb.mxu1 %v7699_v22  ;;  %4883 = vmatpush.bf16.msrb.mxu3 %v7651_v45  ;;  %v7303_v38 = vor.u32 %v8310_v52, %v7302_v23  ;;  %v7654_v22 = vld [vmem:[%s13024_s5 + $0x328] sm:$0xf]  ;;  %v7252_v23 = vld [vmem:[%s13024_s5 + $0x34] sm:$0xf0]  ;;  %v13117_v45 = vld [vmem:[#allocation20_spill] sm:$0xff] }
 0x31c   :  { %13112 = vst [vmem:[#allocation32_spill] sm:$0xff] %v11809_v2  ;;  %v3389_v53 = vadd.f32 %v3388_v35, %v13113_v59  ;;  %7905 = vmatmul.msk.bf16.gmra.mxu3 %vm1317_vm1, %v11529_v14  ;;  %7909 = vmatmul.msk.bf16.gmra.mxu1 %vm1317_vm1, %v11529_v14  ;;  %v7604_v52 = vld [vmem:[%s13024_s5 + $0x2f4] sm:$0xf0] }
 0x31d   :  { %v3446_v20 = vpop.f32.mrf.mxu0  ;;  %4855 = vmatpush.bf16.msrb.mxu2 %v7299_v1  ;;  %4911 = vmatpush.bf16.msrb.mxu0 %v7303_v38  ;;  %v8299_v38 = vld [vmem:[%s13024_s5 + $0x38] sm:$0xf0] }
 0x31e   :  { %v3447_v35 = vadd.f32 %v3446_v20, %v13114_v27  ;;  %v8381_v27 = vld [vmem:[%s13024_s5 + $0x2cc] sm:$0xf] }
 0x31f   :  { %v3416_v59 = vpop.f32.mrf.mxu3 }
 0x320   :  { %v11841_v2 = vadd.f32 %v3416_v59, %v3389_v53  ;;  %v8398_v53 = vld [vmem:[%s13024_s5 + $0x350] sm:$0xf0] }
 0x321   :  { %v3474_v21 = vpop.f32.mrf.mxu1  ;;  %v7655_v20 = vor.u32 %v8398_v53, %v7654_v22  ;;  %v7607_v53 = vor.u32 %v8381_v27, %v7604_v52  ;;  %v13120_v52 = vld [vmem:[#allocation22_spill] sm:$0xff] }
 0x322   :  { %13115 = vst [vmem:[#allocation18_spill] sm:$0xff] %v11841_v2  ;;  %v11855_v25 = vadd.f32 %v3474_v21, %v3447_v35  ;;  %v7255_v35 = vor.u32 %v8293_v10, %v7252_v23  ;;  %v7258_v21 = vld [vmem:[%s13024_s5 + $0x10] sm:$0xf] }
 0x323   :  { %v3390_v1 = vpop.f32.mrf.mxu2  ;;  %4939 = vmatpush.bf16.msrb.mxu1 %v7655_v20  ;;  %v7610_v20 = vld [vmem:[%s13024_s5 + $0x2d0] sm:$0xf]  ;;  %4884 = vmatpush.bf16.msrb.mxu3 %v7607_v53 }
 0x324   :  { %13116 = vst [vmem:[#allocation34_spill] sm:$0xff] %v11855_v25  ;;  %v3391_v59 = vadd.f32 %v3390_v1, %v13117_v45  ;;  %v7259_v25 = vor.u32 %v8299_v38, %v7258_v21  ;;  %4856 = vmatpush.bf16.msrb.mxu2 %v7255_v35  ;;  %v8387_v1 = vld [vmem:[%s13024_s5 + $0x2f8] sm:$0xf0] }
 0x325   :  { %v3449_v22 = vpop.f32.mrf.mxu0  ;;  %v7611_v23 = vor.u32 %v8387_v1, %v7610_v20 }
 0x326   :  { %v3450_v2 = vadd.f32 %v3449_v22, %v10583_v15  ;;  %4912 = vmatpush.bf16.msrb.mxu0 %v7259_v25 }
 0x327   :  { %v3418_v10 = vpop.f32.mrf.mxu3  ;;  %4940 = vmatpush.bf16.msrb.mxu1 %v7611_v23  ;;  %v4289_v23 = vunpack.c.h.b16 %v11657_v19 }
 0x328   :  { %v11883_v45 = vadd.f32 %v3418_v10, %v3391_v59  ;;  %4755 = vmatmul.bf16.gmra.mxu2 %v11595_v6  ;;  %4811 = vmatmul.bf16.gmra.mxu0 %v11595_v6  ;;  %v13121_v59 = vld [vmem:[#allocation37_spill] sm:$0xff]  ;;  %v7568_v10 = vld [vmem:[%s13024_s5 + $0x2a4] sm:$0xf0] }
 0x329   :  { %v3477_v15 = vpop.f32.mrf.mxu1 }
 0x32a   :  { %13118 = vst [vmem:[#allocation20_spill] sm:$0xff] %v11883_v45  ;;  %v11887_v27 = vadd.f32 %v3477_v15, %v3450_v2  ;;  %v8371_v2 = vld [vmem:[%s13024_s5 + $0x27c] sm:$0xf] }
 0x32b   :  { %v3393_v35 = vpop.f32.mrf.mxu2 }
 0x32c   :  { %13119 = vst [vmem:[#allocation50_spill] sm:$0xff] %v11887_v27  ;;  %v3394_v21 = vadd.f32 %v3393_v35, %v13120_v52  ;;  %7906 = vmatmul.msk.bf16.gmra.mxu3 %vm1317_vm1, %v11623_v0  ;;  %7910 = vmatmul.msk.bf16.gmra.mxu1 %vm1317_vm1, %v11623_v0  ;;  %v7571_v35 = vor.u32 %v8371_v2, %v7568_v10  ;;  %v13124_v52 = vld [vmem:[#allocation24_spill] sm:$0xff]  ;;  %v7574_v2 = vld [vmem:[%s13024_s5 + $0x280] sm:$0xf] }
 0x32d   :  { %v3451_v25 = vpop.f32.mrf.mxu0  ;;  %v11924_v10 = vld [vmem:[%s13024_s5 + $0x540] sm:$0x77] }
 0x32e   :  { %v3452_v38 = vadd.f32 %v3451_v25, %v13121_v59  ;;  %v4465_v59 = vpack.c.b16 %v4289_v23, %v4289_v23  ;;  %4961 = vmatpush.bf16.msra.mxu2 %v7571_v35  ;;  %v4290_v35 = vunpack.c.l.b16 %v11924_v10 }
 0x32f   :  { %v3421_v22 = vpop.f32.mrf.mxu3 }
 0x330   :  { %v11895_v53 = vadd.f32 %v3421_v22, %v3394_v21  ;;  %v4664_v22 = vsel %vm1330_vm0, %v4465_v59, 0  ;;  %v8448_v59 = vld [vmem:[%s13024_s5 + $0x4e4] sm:$0xf] }
 0x331   :  { %v3479_v20 = vpop.f32.mrf.mxu1  ;;  %4989 = vmatpush.bf16.msra.mxu3 %v4664_v22 }
 0x332   :  { %13122 = vst [vmem:[#allocation22_spill] sm:$0xff] %v11895_v53  ;;  %v11897_v1 = vadd.f32 %v3479_v20, %v3452_v38  ;;  %v8344_v53 = vld [vmem:[%s13024_s5 + $0x1a0] sm:$0xf0] }
 0x333   :  { %v3395_v15 = vpop.f32.mrf.mxu2 }
 0x334   :  { %13123 = vst [vmem:[#allocation37_spill] sm:$0xff] %v11897_v1  ;;  %v3396_v25 = vadd.f32 %v3395_v15, %v13124_v52  ;;  %v8360_v52 = vld [vmem:[%s13024_s5 + $0x224] sm:$0xf] }
 0x335   :  { %v3454_v21 = vpop.f32.mrf.mxu0 }
 0x336   :  { %v3455_v38 = vadd.f32 %v3454_v21, %v10641_v36  ;;  %v8377_v36 = vld [vmem:[%s13024_s5 + $0x2a8] sm:$0xf0]  ;;  %v13127_v21 = vld [vmem:[#allocation25_spill] sm:$0xff] }
 0x337   :  { %v3423_v20 = vpop.f32.mrf.mxu3  ;;  %v7575_v15 = vor.u32 %v8377_v36, %v7574_v2  ;;  %v4466_v2 = vpack.c.b16 %v4290_v35, %v4290_v35 }
 0x338   :  { %v11909_v1 = vadd.f32 %v3423_v20, %v3396_v25  ;;  %4760 = vmatmul.bf16.gmra.mxu2 %v11661_v17  ;;  %4816 = vmatmul.bf16.gmra.mxu0 %v11661_v17  ;;  %v7524_v25 = vld [vmem:[%s13024_s5 + $0x24c] sm:$0xf0] }
 0x339   :  { %v3482_v19 = vpop.f32.mrf.mxu1  ;;  %v7527_v22 = vor.u32 %v8360_v52, %v7524_v25  ;;  %v7876_v20 = vld [vmem:[%s13024_s5 + $0x50c] sm:$0xf0]  ;;  %5017 = vmatpush.bf16.msra.mxu0 %v7575_v15  ;;  %v7530_v52 = vld [vmem:[%s13024_s5 + $0x228] sm:$0xf]  ;;  %v8366_v25 = vld [vmem:[%s13024_s5 + $0x250] sm:$0xf0] }
 0x33a   :  { %13125 = vst [vmem:[#allocation24_spill] sm:$0xff] %v11909_v1  ;;  %v11913_v27 = vadd.f32 %v3482_v19, %v3455_v38  ;;  %v7879_v36 = vor.u32 %v8448_v59, %v7876_v20  ;;  %v4667_v1 = vsel %vm1330_vm0, %v4466_v2, 0  ;;  %v7882_v15 = vld [vmem:[%s13024_s5 + $0x4e8] sm:$0xf]  ;;  %v7531_v59 = vor.u32 %v8366_v25, %v7530_v52  ;;  %v7832_v2 = vld [vmem:[%s13024_s5 + $0x4b4] sm:$0xf0] }
 0x33b   :  { %v3398_v23 = vpop.f32.mrf.mxu2  ;;  %4962 = vmatpush.bf16.msra.mxu2 %v7527_v22  ;;  %5045 = vmatpush.bf16.msra.mxu1 %v4667_v1  ;;  %v8349_v1 = vld [vmem:[%s13024_s5 + $0x1cc] sm:$0xf] }
 0x33c   :  { %13126 = vst [vmem:[#allocation51_spill] sm:$0xff] %v11913_v27  ;;  %v3399_v38 = vadd.f32 %v3398_v23, %v13127_v21  ;;  %7907 = vmatmul.msk.bf16.gmra.mxu3 %vm1317_vm1, %v11681_v49  ;;  %7911 = vmatmul.msk.bf16.gmra.mxu1 %vm1317_vm1, %v11681_v49 }
 0x33d   :  { %v3456_v19 = vpop.f32.mrf.mxu0  ;;  %4990 = vmatpush.bf16.msra.mxu3 %v7879_v36  ;;  %5018 = vmatpush.bf16.msra.mxu0 %v7531_v59  ;;  %v7838_v59 = vld [vmem:[%s13024_s5 + $0x490] sm:$0xf] }
 0x33e   :  { %v8437_v19 = vld [vmem:[%s13024_s5 + $0x48c] sm:$0xf] }
 0x33f   :  { %v3426_v27 = vpop.f32.mrf.mxu3 }
 0x340   :  { %v11945_v23 = vadd.f32 %v3426_v27, %v3399_v38  ;;  %v8454_v27 = vld [vmem:[%s13024_s5 + $0x510] sm:$0xf0]  ;;  %v7480_v38 = vld [vmem:[%s13024_s5 + $0x1f4] sm:$0xf0] }
 0x341   :  { %v3484_v21 = vpop.f32.mrf.mxu1  ;;  %v7883_v22 = vor.u32 %v8454_v27, %v7882_v15  ;;  %v7483_v20 = vor.u32 %v8349_v1, %v7480_v38  ;;  %v8355_v27 = vld [vmem:[%s13024_s5 + $0x1f8] sm:$0xf0] }
 0x342   :  { %13128 = vst [vmem:[#allocation25_spill] sm:$0xff] %v11945_v23  ;;  %v7835_v21 = vor.u32 %v8437_v19, %v7832_v2  ;;  %v7436_v19 = vld [vmem:[%s13024_s5 + $0x19c] sm:$0xf0] }
 0x343   :  { %v3400_v35 = vpop.f32.mrf.mxu2  ;;  %5046 = vmatpush.bf16.msra.mxu1 %v7883_v22  ;;  %4963 = vmatpush.bf16.msra.mxu2 %v7483_v20  ;;  %v8443_v22 = vld [vmem:[%s13024_s5 + $0x4b8] sm:$0xf0]  ;;  %v8338_v20 = vld [vmem:[%s13024_s5 + $0x174] sm:$0xf] }
 0x344   :  { %4991 = vmatpush.bf16.msra.mxu3 %v7835_v21  ;;  %v7486_v35 = vld [vmem:[%s13024_s5 + $0x1d0] sm:$0xf] }
 0x345   :  { %v4690_v36 = vpop.f32.mrf.mxu0  ;;  %v7487_v38 = vor.u32 %v8355_v27, %v7486_v35  ;;  %v7788_v35 = vld [vmem:[%s13024_s5 + $0x45c] sm:$0xf0] }
 0x347   :  { %v3428_v52 = vpop.f32.mrf.mxu3  ;;  %5019 = vmatpush.bf16.msra.mxu0 %v7487_v38 }
 0x348   :  { %4857 = vmatmul.bf16.vlgmr.msrb.gmra.mxu2 %v11424_v31  ;;  %4913 = vmatmul.bf16.vlgmr.msrb.gmra.mxu0 %v11424_v31  ;;  %v7839_v52 = vor.u32 %v8443_v22, %v7838_v59  ;;  %v7442_v22 = vld [vmem:[%s13024_s5 + $0x178] sm:$0xf] }
 0x349   :  { %v4718_v25 = vpop.f32.mrf.mxu1  ;;  %v7443_v38 = vor.u32 %v8344_v53, %v7442_v22  ;;  %v7392_v53 = vld [vmem:[%s13024_s5 + $0x144] sm:$0xf0]  ;;  %v7398_v22 = vld [vmem:[%s13024_s5 + $0x120] sm:$0xf] }
 0x34a   :  { %v4719_v15 = vadd.f32 %v4718_v25, %v4690_v36  ;;  %v13129_v36 = vld [vmem:[#allocation27_spill] sm:$0xff]  ;;  %v8426_v25 = vld [vmem:[%s13024_s5 + $0x434] sm:$0xf]  ;;  %5047 = vmatpush.bf16.msra.mxu1 %v7839_v52 }
 0x34b   :  { %v3495_v1 = vpop.f32.mrf.mxu2  ;;  %v13131_v52 = vld [vmem:[#allocation29_spill] sm:$0xff]  ;;  %5020 = vmatpush.bf16.msra.mxu0 %v7443_v38  ;;  %v8333_v38 = vld [vmem:[%s13024_s5 + $0x148] sm:$0xf0] }
 0x34c   :  { %v11992_v2 = vadd.f32 %v4719_v15, %v10702_v61  ;;  %v3496_v21 = vadd.f32 %v3495_v1, %v13129_v36  ;;  %7912 = vmatmul.msk.bf16.vlgmr.msrb.gmra.mxu3 %vm1317_vm1, %v11447_v32  ;;  %7916 = vmatmul.msk.bf16.vlgmr.msrb.gmra.mxu1 %vm1317_vm1, %v11447_v32  ;;  %v7439_v61 = vor.u32 %v8338_v20, %v7436_v19  ;;  %v7794_v20 = vld [vmem:[%s13024_s5 + $0x438] sm:$0xf]  ;;  %v8432_v19 = vld [vmem:[%s13024_s5 + $0x460] sm:$0xf0] }
 0x34d   :  { %v4692_v27 = vpop.f32.mrf.mxu0  ;;  %v7791_v15 = vor.u32 %v8426_v25, %v7788_v35  ;;  %v7795_v35 = vor.u32 %v8432_v19, %v7794_v20  ;;  %v7399_v19 = vor.u32 %v8333_v38, %v7398_v22  ;;  %v7700_v38 = vld [vmem:[%s13024_s5 + $0x3ac] sm:$0xf0] }
 0x34e   :  { %4964 = vmatpush.bf16.msra.mxu2 %v7439_v61  ;;  %v7744_v61 = vld [vmem:[%s13024_s5 + $0x404] sm:$0xf0] }
 0x34f   :  { %v3523_v1 = vpop.f32.mrf.mxu3  ;;  %4992 = vmatpush.bf16.msra.mxu3 %v7791_v15  ;;  %5048 = vmatpush.bf16.msra.mxu1 %v7795_v35 }
 0x350   :  { %v12005_v36 = vadd.f32 %v3523_v1, %v3496_v21  ;;  %5021 = vmatpush.bf16.msra.mxu0 %v7399_v19 }
 0x351   :  { %v4720_v23 = vpop.f32.mrf.mxu1 }
 0x352   :  { %13130 = vst [vmem:[#allocation27_spill] sm:$0xff] %v12005_v36  ;;  %v4721_v59 = vadd.f32 %v4720_v23, %v4692_v27  ;;  %v8327_v23 = vld [vmem:[%s13024_s5 + $0x11c] sm:$0xf] }
 0x353   :  { %v3497_v45 = vpop.f32.mrf.mxu2  ;;  %v8415_v27 = vld [vmem:[%s13024_s5 + $0x3dc] sm:$0xf]  ;;  %v7395_v1 = vor.u32 %v8327_v23, %v7392_v53 }
 0x354   :  { %v12023_v21 = vadd.f32 %v4721_v59, %v10732_v12  ;;  %v3498_v25 = vadd.f32 %v3497_v45, %v13131_v52  ;;  %v7747_v12 = vor.u32 %v8415_v27, %v7744_v61  ;;  %v7750_v52 = vld [vmem:[%s13024_s5 + $0x3e0] sm:$0xf]  ;;  %v8316_v27 = vld [vmem:[%s13024_s5 + $0xc4] sm:$0xf]  ;;  %v7348_v61 = vld [vmem:[%s13024_s5 + $0xec] sm:$0xf0] }
 0x355   :  { %v4695_v15 = vpop.f32.mrf.mxu0  ;;  %4965 = vmatpush.bf16.msra.mxu2 %v7395_v1  ;;  %v7351_v22 = vor.u32 %v8316_v27, %v7348_v61 }
 0x356   :  { %4993 = vmatpush.bf16.msra.mxu3 %v7747_v12  ;;  %v13133_v12 = vld [vmem:[#allocation31_spill] sm:$0xff] }
 0x357   :  { %v3525_v59 = vpop.f32.mrf.mxu3 }
 0x358   :  { %v12035_v45 = vadd.f32 %v3525_v59, %v3498_v25  ;;  %4862 = vmatmul.bf16.gmra.mxu2 %v11504_v13  ;;  %4918 = vmatmul.bf16.gmra.mxu0 %v11504_v13  ;;  %v8421_v25 = vld [vmem:[%s13024_s5 + $0x408] sm:$0xf0] }
 0x359   :  { %v4723_v20 = vpop.f32.mrf.mxu1  ;;  %v7751_v53 = vor.u32 %v8421_v25, %v7750_v52  ;;  %4966 = vmatpush.bf16.msra.mxu2 %v7351_v22  ;;  %v7706_v25 = vld [vmem:[%s13024_s5 + $0x388] sm:$0xf] }
 0x35a   :  { %13132 = vst [vmem:[#allocation29_spill] sm:$0xff] %v12035_v45  ;;  %v4724_v23 = vadd.f32 %v4723_v20, %v4695_v15  ;;  %v8404_v15 = vld [vmem:[%s13024_s5 + $0x384] sm:$0xf]  ;;  %v7354_v20 = vld [vmem:[%s13024_s5 + $0xc8] sm:$0xf] }
 0x35b   :  { %v3500_v35 = vpop.f32.mrf.mxu2  ;;  %5049 = vmatpush.bf16.msra.mxu1 %v7751_v53  ;;  %v7304_v53 = vld [vmem:[%s13024_s5 + $0x94] sm:$0xf0] }
 0x35c   :  { %v12061_v1 = vadd.f32 %v4724_v23, %v10774_v63  ;;  %v3501_v59 = vadd.f32 %v3500_v35, %v13133_v12  ;;  %7913 = vmatmul.msk.bf16.gmra.mxu3 %vm1317_vm1, %v11529_v14  ;;  %7917 = vmatmul.msk.bf16.gmra.mxu1 %vm1317_vm1, %v11529_v14  ;;  %v8322_v63 = vld [vmem:[%s13024_s5 + $0xf0] sm:$0xf0]  ;;  %v7703_v23 = vor.u32 %v8404_v15, %v7700_v38  ;;  %v8305_v12 = vld [vmem:[%s13024_s5 + $0x6c] sm:$0xf]  ;;  %v7310_v38 = vld [vmem:[%s13024_s5 + $0x70] sm:$0xf] }
 0x35d   :  { %v4697_v19 = vpop.f32.mrf.mxu0  ;;  %v7355_v52 = vor.u32 %v8322_v63, %v7354_v20  ;;  %v8410_v35 = vld [vmem:[%s13024_s5 + $0x3b0] sm:$0xf0]  ;;  %v7307_v22 = vor.u32 %v8305_v12, %v7304_v53  ;;  %v8311_v20 = vld [vmem:[%s13024_s5 + $0x98] sm:$0xf0]  ;;  %v7662_v12 = vld [vmem:[%s13024_s5 + $0x330] sm:$0xf] }
 0x35e   :  { %4994 = vmatpush.bf16.msra.mxu3 %v7703_v23  ;;  %v7707_v61 = vor.u32 %v8410_v35, %v7706_v25  ;;  %v7311_v23 = vor.u32 %v8311_v20, %v7310_v38  ;;  %v8393_v25 = vld [vmem:[%s13024_s5 + $0x32c] sm:$0xf] }
 0x35f   :  { %v3528_v27 = vpop.f32.mrf.mxu3  ;;  %5022 = vmatpush.bf16.msra.mxu0 %v7355_v52  ;;  %4967 = vmatpush.bf16.msra.mxu2 %v7307_v22  ;;  %v13135_v22 = vld [vmem:[#allocation33_spill] sm:$0xff] }
 0x360   :  { %v12089_v15 = vadd.f32 %v3528_v27, %v3501_v59  ;;  %5050 = vmatpush.bf16.msra.mxu1 %v7707_v61  ;;  %v7656_v59 = vld [vmem:[%s13024_s5 + $0x354] sm:$0xf0]  ;;  %v8294_v61 = vld [vmem:[%s13024_s5 + $0x14] sm:$0xf] }
 0x361   :  { %v4725_v63 = vpop.f32.mrf.mxu1  ;;  %v7659_v27 = vor.u32 %v8393_v25, %v7656_v59  ;;  %v7612_v25 = vld [vmem:[%s13024_s5 + $0x2fc] sm:$0xf0] }
 0x362   :  { %13134 = vst [vmem:[#allocation31_spill] sm:$0xff] %v12089_v15  ;;  %v4726_v52 = vadd.f32 %v4725_v63, %v4697_v19  ;;  %v8399_v19 = vld [vmem:[%s13024_s5 + $0x358] sm:$0xf0]  ;;  %v7260_v63 = vld [vmem:[%s13024_s5 + $0x3c] sm:$0xf0] }
 0x363   :  { %v3502_v35 = vpop.f32.mrf.mxu2  ;;  %5023 = vmatpush.bf16.msra.mxu0 %v7311_v23  ;;  %v7663_v20 = vor.u32 %v8399_v19, %v7662_v12  ;;  %v8382_v23 = vld [vmem:[%s13024_s5 + $0x2d4] sm:$0xf]  ;;  %4995 = vmatpush.bf16.msra.mxu3 %v7659_v27  ;;  %v7263_v15 = vor.u32 %v8294_v61, %v7260_v63  ;;  %v7618_v19 = vld [vmem:[%s13024_s5 + $0x2d8] sm:$0xf]  ;;  %v8388_v27 = vld [vmem:[%s13024_s5 + $0x300] sm:$0xf0] }
 0x364   :  { %v12113_v53 = vadd.f32 %v4726_v52, %v10810_v39  ;;  %v3503_v38 = vadd.f32 %v3502_v35, %v13135_v22  ;;  %v7615_v39 = vor.u32 %v8382_v23, %v7612_v25  ;;  %v7266_v52 = vld [vmem:[%s13024_s5 + $0x18] sm:$0xf]  ;;  %v8300_v35 = vld [vmem:[%s13024_s5 + $0x40] sm:$0xf0]  ;;  %v7619_v22 = vor.u32 %v8388_v27, %v7618_v19 }
 0x365   :  { %v4700_v59 = vpop.f32.mrf.mxu0  ;;  %5051 = vmatpush.bf16.msra.mxu1 %v7663_v20  ;;  %v7267_v12 = vor.u32 %v8300_v35, %v7266_v52  ;;  %4968 = vmatpush.bf16.msra.mxu2 %v7263_v15  ;;  %v13137_v35 = vld [vmem:[#allocation35_spill] sm:$0xff]  ;;  %v4291_v27 = vunpack.c.h.b16 %v11924_v10 }
 0x367   :  { %v3530_v61 = vpop.f32.mrf.mxu3  ;;  %4996 = vmatpush.bf16.msra.mxu3 %v7615_v39  ;;  %5024 = vmatpush.bf16.msra.mxu0 %v7267_v12 }
 0x368   :  { %v12137_v63 = vadd.f32 %v3530_v61, %v3503_v38  ;;  %4867 = vmatmul.bf16.gmra.mxu2 %v11595_v6  ;;  %4923 = vmatmul.bf16.gmra.mxu0 %v11595_v6 }
 0x369   :  { %v4728_v23 = vpop.f32.mrf.mxu1  ;;  %5052 = vmatpush.bf16.msra.mxu1 %v7619_v22 }
 0x36a   :  { %13136 = vst [vmem:[#allocation33_spill] sm:$0xff] %v12137_v63  ;;  %v4729_v20 = vadd.f32 %v4728_v23, %v4700_v59  ;;  %v8372_v59 = vld [vmem:[%s13024_s5 + $0x284] sm:$0xf] }
 0x36b   :  { %v3505_v25 = vpop.f32.mrf.mxu2 }
 0x36c   :  { %v12142_v52 = vadd.f32 %v4729_v20, %v10831_v40  ;;  %v3506_v45 = vadd.f32 %v3505_v25, %v13137_v35  ;;  %7914 = vmatmul.msk.bf16.gmra.mxu3 %vm1317_vm1, %v11623_v0  ;;  %7918 = vmatmul.msk.bf16.gmra.mxu1 %vm1317_vm1, %v11623_v0  ;;  %v7576_v40 = vld [vmem:[%s13024_s5 + $0x2ac] sm:$0xf0]  ;;  %v4467_v25 = vpack.c.b16 %v4291_v27, %v4291_v27 }
 0x36d   :  { %v4702_v15 = vpop.f32.mrf.mxu0  ;;  %v7579_v22 = vor.u32 %v8372_v59, %v7576_v40  ;;  %v13139_v20 = vld [vmem:[#allocation36_spill] sm:$0xff] }
 0x36f   :  { %v3533_v38 = vpop.f32.mrf.mxu3  ;;  %5073 = vmatpush.bf16.msrb.mxu2 %v7579_v22  ;;  %v8378_v22 = vld [vmem:[%s13024_s5 + $0x2b0] sm:$0xf0] }
 0x370   :  { %v12149_v19 = vadd.f32 %v3533_v38, %v3506_v45 }
 0x371   :  { %v4730_v39 = vpop.f32.mrf.mxu1 }
 0x372   :  { %13138 = vst [vmem:[#allocation35_spill] sm:$0xff] %v12149_v19  ;;  %v4731_v12 = vadd.f32 %v4730_v39, %v4702_v15  ;;  %v4670_v15 = vsel %vm1330_vm0, %v4467_v25, 0 }
 0x373   :  { %v3507_v61 = vpop.f32.mrf.mxu2  ;;  %5101 = vmatpush.bf16.msrb.mxu3 %v4670_v15  ;;  %v7532_v15 = vld [vmem:[%s13024_s5 + $0x254] sm:$0xf0] }
 0x374   :  { %v12159_v23 = vadd.f32 %v4731_v12, %v10857_v56  ;;  %v3508_v45 = vadd.f32 %v3507_v61, %v13139_v20  ;;  %v13141_v12 = vld [vmem:[#allocation38_spill] sm:$0xff]  ;;  %v7582_v61 = vld [vmem:[%s13024_s5 + $0x288] sm:$0xf] }
 0x375   :  { %v4705_v35 = vpop.f32.mrf.mxu0 }
 0x377   :  { %v3535_v38 = vpop.f32.mrf.mxu3 }
 0x378   :  { %v12163_v39 = vadd.f32 %v3535_v38, %v3508_v45  ;;  %4872 = vmatmul.bf16.gmra.mxu2 %v11661_v17  ;;  %4928 = vmatmul.bf16.gmra.mxu0 %v11661_v17  ;;  %v7583_v45 = vor.u32 %v8378_v22, %v7582_v61  ;;  %v8449_v38 = vld [vmem:[%s13024_s5 + $0x4ec] sm:$0xf] }
 0x379   :  { %v4733_v10 = vpop.f32.mrf.mxu1 }
 0x37a   :  { %13140 = vst [vmem:[#allocation36_spill] sm:$0xff] %v12163_v39  ;;  %v4734_v59 = vadd.f32 %v4733_v10, %v4705_v35  ;;  %v8361_v35 = vld [vmem:[%s13024_s5 + $0x22c] sm:$0xf]  ;;  %5129 = vmatpush.bf16.msrb.mxu0 %v7583_v45 }
 0x37b   :  { %v3510_v40 = vpop.f32.mrf.mxu2  ;;  %v7535_v10 = vor.u32 %v8361_v35, %v7532_v15  ;;  %v7538_v35 = vld [vmem:[%s13024_s5 + $0x230] sm:$0xf]  ;;  %v8367_v15 = vld [vmem:[%s13024_s5 + $0x258] sm:$0xf0] }
 0x37c   :  { %v12168_v56 = vadd.f32 %v4734_v59, %v10892_v30  ;;  %v3511_v27 = vadd.f32 %v3510_v40, %v13141_v12  ;;  %7915 = vmatmul.msk.bf16.gmra.mxu3 %vm1317_vm1, %v11681_v49  ;;  %7919 = vmatmul.msk.bf16.gmra.mxu1 %vm1317_vm1, %v11681_v49  ;;  %v12184_v30 = vld [vmem:[%s13024_s5 + $0x548] sm:$0x77]  ;;  %v7884_v59 = vld [vmem:[%s13024_s5 + $0x514] sm:$0xf0] }
 0x37d   :  { %v4707_v20 = vpop.f32.mrf.mxu0  ;;  %v4292_v25 = vunpack.c.l.b16 %v12184_v30  ;;  %v7887_v61 = vor.u32 %v8449_v38, %v7884_v59  ;;  %5074 = vmatpush.bf16.msrb.mxu2 %v7535_v10  ;;  %v8455_v38 = vld [vmem:[%s13024_s5 + $0x518] sm:$0xf0] }
 0x37f   :  { %v3538_v40 = vpop.f32.mrf.mxu3  ;;  %v4468_v12 = vpack.c.b16 %v4292_v25, %v4292_v25  ;;  %5102 = vmatpush.bf16.msrb.mxu3 %v7887_v61  ;;  %v7539_v25 = vor.u32 %v8367_v15, %v7538_v35  ;;  %v12229_v35 = vld [vmem:[%s13025_s6] sm:$0xff] }
 0x380   :  { %v12199_v22 = vadd.f32 %v3538_v40, %v3511_v27  ;;  %v7890_v27 = vld [vmem:[%s13024_s5 + $0x4f0] sm:$0xf]  ;;  %v8438_v40 = vld [vmem:[%s13024_s5 + $0x494] sm:$0xf] }
 0x381   :  { %v4735_v20 = vpop.f32.mrf.mxu1  ;;  %v4673_v39 = vsel %vm1330_vm0, %v4468_v12, 0  ;;  %v7891_v10 = vor.u32 %v8455_v38, %v7890_v27  ;;  %v7840_v12 = vld [vmem:[%s13024_s5 + $0x4bc] sm:$0xf0]  ;;  %5130 = vmatpush.bf16.msrb.mxu0 %v7539_v25  ;;  %v12234_v38 = vperm.slane %v12229_v35, 0 }
 0x382   :  { %13142 = vst [vmem:[#allocation38_spill] sm:$0xff] %v12199_v22  ;;  %5157 = vmatpush.bf16.msrb.mxu1 %v4673_v39  ;;  %v7488_v39 = vld [vmem:[%s13024_s5 + $0x1fc] sm:$0xf0]  ;;  %v7843_v20 = vor.u32 %v8438_v40, %v7840_v12  ;;  %v8444_v12 = vld [vmem:[%s13024_s5 + $0x4c0] sm:$0xf0] }
 0x383   :  { %v3512_v19 = vpop.f32.mrf.mxu2  ;;  %v12239_v25 = vld [vmem:[%s13026_s7] sm:$0xff]  ;;  %v8427_v22 = vld [vmem:[%s13024_s5 + $0x43c] sm:$0xf]  ;;  %v5400_v36 = vmul.f32 %v12234_v38, %v11992_v2 }
 0x384   :  { %v8350_v19 = vld [vmem:[%s13024_s5 + $0x1d4] sm:$0xf]  ;;  %5103 = vmatpush.bf16.msrb.mxu3 %v7843_v20  ;;  %v7444_v20 = vld [vmem:[%s13024_s5 + $0x1a4] sm:$0xf0]  ;;  %v12275_v29 = vperm.slane %v12239_v25, 0  ;;  %v12282_v5 = vperm.slane %v12239_v25, 1 }
 0x385   :  { %v4802_v45 = vpop.f32.mrf.mxu0  ;;  %v7491_v59 = vor.u32 %v8350_v19, %v7488_v39 }
 0x386   :  { %5158 = vmatpush.bf16.msrb.mxu1 %v7891_v10  ;;  %v8356_v10 = vld [vmem:[%s13024_s5 + $0x200] sm:$0xf0]  ;;  %v5503_v2 = vadd.f32 %v12275_v29, %v5400_v36  ;;  %v8433_v36 = vld [vmem:[%s13024_s5 + $0x468] sm:$0xf0] }
 0x387   :  { %v3540_v61 = vpop.f32.mrf.mxu3  ;;  %5075 = vmatpush.bf16.msrb.mxu2 %v7491_v59  ;;  %v7846_v59 = vld [vmem:[%s13024_s5 + $0x498] sm:$0xf] }
 0x388   :  { %4969 = vmatmul.bf16.vlgmr.msra.gmra.mxu2 %v11424_v31  ;;  %5025 = vmatmul.bf16.vlgmr.msra.gmra.mxu0 %v11424_v31  ;;  %v8339_v61 = vld [vmem:[%s13024_s5 + $0x17c] sm:$0xf]  ;;  %v5580_v34 = vmax.f32 %v5503_v2, 0.0 }
 0x389   :  { %v4830_v15 = vpop.f32.mrf.mxu1 }
 0x38a   :  { %v4831_v27 = vadd.f32 %v4830_v15, %v4802_v45  ;;  %v7494_v45 = vld [vmem:[%s13024_s5 + $0x1d8] sm:$0xf]  ;;  %v7847_v15 = vor.u32 %v8444_v12, %v7846_v59  ;;  %v12278_v59 = vperm.slane %v12229_v35, 1 }
 0x38b   :  { %v4746_v19 = vpop.f32.mrf.mxu2  ;;  %v7495_v40 = vor.u32 %v8356_v10, %v7494_v45  ;;  %v7796_v45 = vld [vmem:[%s13024_s5 + $0x464] sm:$0xf0] }
 0x38c   :  { %v12242_v39 = vadd.f32 %v4831_v27, %v10953_v9  ;;  %7920 = vmatmul.msk.bf16.vlgmr.msra.gmra.mxu3 %vm1317_vm1, %v11447_v32  ;;  %7924 = vmatmul.msk.bf16.vlgmr.msra.gmra.mxu1 %vm1317_vm1, %v11447_v32  ;;  %v7447_v27 = vor.u32 %v8339_v61, %v7444_v20  ;;  %v7799_v63 = vor.u32 %v8427_v22, %v7796_v45  ;;  %v13143_v61 = vld [vmem:[#allocation39_spill] sm:$0xff] }
 0x38d   :  { %v4804_v9 = vpop.f32.mrf.mxu0  ;;  %5131 = vmatpush.bf16.msrb.mxu0 %v7495_v40  ;;  %5159 = vmatpush.bf16.msrb.mxu1 %v7847_v15  ;;  %v7450_v15 = vld [vmem:[%s13024_s5 + $0x180] sm:$0xf] }
 0x38e   :  { %5076 = vmatpush.bf16.msrb.mxu2 %v7447_v27  ;;  %5104 = vmatpush.bf16.msrb.mxu3 %v7799_v63  ;;  %v7802_v63 = vld [vmem:[%s13024_s5 + $0x440] sm:$0xf] }
 0x38f   :  { %v4774_v10 = vpop.f32.mrf.mxu3 }
 0x390   :  { %v4775_v58 = vadd.f32 %v4774_v10, %v4746_v19  ;;  %v7400_v10 = vld [vmem:[%s13024_s5 + $0x14c] sm:$0xf0] }
 0x391   :  { %v4832_v12 = vpop.f32.mrf.mxu1 }
 0x392   :  { %v5298_v20 = vadd.f32 %v4775_v58, %v13143_v61  ;;  %v4833_v22 = vadd.f32 %v4832_v12, %v4804_v9  ;;  %v8345_v58 = vld [vmem:[%s13024_s5 + $0x1a8] sm:$0xf0]  ;;  %v7803_v61 = vor.u32 %v8433_v36, %v7802_v63  ;;  %v8334_v63 = vld [vmem:[%s13024_s5 + $0x150] sm:$0xf0] }
 0x393   :  { %v4748_v40 = vpop.f32.mrf.mxu2  ;;  %v7451_v27 = vor.u32 %v8345_v58, %v7450_v15  ;;  %v7752_v15 = vld [vmem:[%s13024_s5 + $0x40c] sm:$0xf0]  ;;  %v5411_v58 = vmul.f32 %v12234_v38, %v12023_v21 }
 0x394   :  { %v5401_v45 = vmul.f32 %v12278_v59, %v5298_v20  ;;  %v12287_v19 = vadd.f32 %v4833_v22, %v10983_v50  ;;  %v8328_v50 = vld [vmem:[%s13024_s5 + $0x124] sm:$0xf]  ;;  %5160 = vmatpush.bf16.msrb.mxu1 %v7803_v61 }
 0x395   :  { %v4807_v9 = vpop.f32.mrf.mxu0  ;;  %v7403_v20 = vor.u32 %v8328_v50, %v7400_v10  ;;  %v8416_v22 = vld [vmem:[%s13024_s5 + $0x3e4] sm:$0xf]  ;;  %5132 = vmatpush.bf16.msrb.mxu0 %v7451_v27  ;;  %v8422_v50 = vld [vmem:[%s13024_s5 + $0x410] sm:$0xf0]  ;;  %v5514_v10 = vadd.f32 %v12275_v29, %v5411_v58  ;;  %v8323_v58 = vld [vmem:[%s13024_s5 + $0xf8] sm:$0xf0] }
 0x396   :  { %v5504_v12 = vadd.f32 %v12282_v5, %v5401_v45  ;;  %v7755_v24 = vor.u32 %v8416_v22, %v7752_v15  ;;  %v7406_v45 = vld [vmem:[%s13024_s5 + $0x128] sm:$0xf] }
 0x397   :  { %v4776_v60 = vpop.f32.mrf.mxu3  ;;  %5077 = vmatpush.bf16.msrb.mxu2 %v7403_v20  ;;  %v7407_v21 = vor.u32 %v8334_v63, %v7406_v45  ;;  %v7708_v20 = vld [vmem:[%s13024_s5 + $0x3b4] sm:$0xf0] }
 0x398   :  { %v5581_v43 = vmax.f32 %v5504_v12, 0.0  ;;  %v4777_v57 = vadd.f32 %v4776_v60, %v4748_v40  ;;  %4974 = vmatmul.bf16.gmra.mxu2 %v11504_v13  ;;  %5030 = vmatmul.bf16.gmra.mxu0 %v11504_v13  ;;  %v7758_v40 = vld [vmem:[%s13024_s5 + $0x3e8] sm:$0xf] }
 0x399   :  { %v4835_v36 = vpop.f32.mrf.mxu1  ;;  %5105 = vmatpush.bf16.msrb.mxu3 %v7755_v24  ;;  %5133 = vmatpush.bf16.msrb.mxu0 %v7407_v21  ;;  %v7759_v61 = vor.u32 %v8422_v50, %v7758_v40  ;;  %v8411_v21 = vld [vmem:[%s13024_s5 + $0x3b8] sm:$0xf0]  ;;  %v8306_v40 = vld [vmem:[%s13024_s5 + $0x74] sm:$0xf]  ;;  %v7312_v50 = vld [vmem:[%s13024_s5 + $0x9c] sm:$0xf0] }
 0x39a   :  { %v5657_v27 = vpack.c.bf16 %v5581_v43, %v5580_v34  ;;  %v5309_v2 = vadd.f32 %v4777_v57, %v10704_v18  ;;  %v4836_v60 = vadd.f32 %v4835_v36, %v4807_v9  ;;  %v8317_v34 = vld [vmem:[%s13024_s5 + $0xcc] sm:$0xf]  ;;  %v7356_v18 = vld [vmem:[%s13024_s5 + $0xf4] sm:$0xf0]  ;;  %v7714_v36 = vld [vmem:[%s13024_s5 + $0x390] sm:$0xf] }
 0x39b   :  { %v4751_v12 = vpop.f32.mrf.mxu2  ;;  %v7359_v24 = vor.u32 %v8317_v34, %v7356_v18  ;;  %v8405_v9 = vld [vmem:[%s13024_s5 + $0x38c] sm:$0xf]  ;;  %5161 = vmatpush.bf16.msrb.mxu1 %v7759_v61  ;;  %v5591_v61 = vmax.f32 %v5514_v10, 0.0  ;;  %v8394_v10 = vld [vmem:[%s13024_s5 + $0x334] sm:$0xf] }
 0x39c   :  { %5699 = vst [vmem:[#allocation2] sm:$0xff] %v5657_v27  ;;  %v5412_v57 = vmul.f32 %v12278_v59, %v5309_v2  ;;  %v12340_v43 = vadd.f32 %v4836_v60, %v11025_v44  ;;  %7921 = vmatmul.msk.bf16.gmra.mxu3 %vm1317_vm1, %v11529_v14  ;;  %7925 = vmatmul.msk.bf16.gmra.mxu1 %vm1317_vm1, %v11529_v14  ;;  %v7362_v44 = vld [vmem:[%s13024_s5 + $0xd0] sm:$0xf] }
 0x39d   :  { %v4809_v22 = vpop.f32.mrf.mxu0  ;;  %v7711_v15 = vor.u32 %v8405_v9, %v7708_v20  ;;  %5078 = vmatpush.bf16.msrb.mxu2 %v7359_v24  ;;  %v7363_v63 = vor.u32 %v8323_v58, %v7362_v44  ;;  %v5422_v27 = vmul.f32 %v12234_v38, %v12061_v1  ;;  %v7715_v60 = vor.u32 %v8411_v21, %v7714_v36  ;;  %v7318_v1 = vld [vmem:[%s13024_s5 + $0x78] sm:$0xf]  ;;  %v8312_v24 = vld [vmem:[%s13024_s5 + $0xa0] sm:$0xf0] }
 0x39e   :  { %v5515_v45 = vadd.f32 %v12282_v5, %v5412_v57  ;;  %v7315_v57 = vor.u32 %v8306_v40, %v7312_v50  ;;  %v7319_v20 = vor.u32 %v8312_v24, %v7318_v1  ;;  %v7670_v21 = vld [vmem:[%s13024_s5 + $0x338] sm:$0xf]  ;;  %v7268_v40 = vld [vmem:[%s13024_s5 + $0x44] sm:$0xf0]  ;;  %v7274_v50 = vld [vmem:[%s13024_s5 + $0x20] sm:$0xf] }
 0x39f   :  { %v4779_v2 = vpop.f32.mrf.mxu3  ;;  %5106 = vmatpush.bf16.msrb.mxu3 %v7711_v15  ;;  %5134 = vmatpush.bf16.msrb.mxu0 %v7363_v63  ;;  %v7620_v1 = vld [vmem:[%s13024_s5 + $0x304] sm:$0xf0] }
 0x3a0   :  { %v5592_v34 = vmax.f32 %v5515_v45, 0.0  ;;  %v4780_v18 = vadd.f32 %v4779_v2, %v4751_v12  ;;  %5162 = vmatpush.bf16.msrb.mxu1 %v7715_v60  ;;  %v7664_v12 = vld [vmem:[%s13024_s5 + $0x35c] sm:$0xf0]  ;;  %v5525_v45 = vadd.f32 %v12275_v29, %v5422_v27 }
 0x3a1   :  { %v4837_v9 = vpop.f32.mrf.mxu1  ;;  %5079 = vmatpush.bf16.msrb.mxu2 %v7315_v57  ;;  %v7667_v36 = vor.u32 %v8394_v10, %v7664_v12  ;;  %v8383_v57 = vld [vmem:[%s13024_s5 + $0x2dc] sm:$0xf]  ;;  %v5433_v10 = vmul.f32 %v12234_v38, %v12113_v53 }
 0x3a2   :  { %v5663_v15 = vpack.c.bf16 %v5592_v34, %v5591_v61  ;;  %v5320_v44 = vadd.f32 %v4780_v18, %v10736_v47  ;;  %v4838_v58 = vadd.f32 %v4837_v9, %v4809_v22  ;;  %v8400_v47 = vld [vmem:[%s13024_s5 + $0x360] sm:$0xf0]  ;;  %v8295_v22 = vld [vmem:[%s13024_s5 + $0x1c] sm:$0xf]  ;;  %v8301_v18 = vld [vmem:[%s13024_s5 + $0x48] sm:$0xf0] }
 0x3a3   :  { %v4753_v63 = vpop.f32.mrf.mxu2  ;;  %5135 = vmatpush.bf16.msrb.mxu0 %v7319_v20  ;;  %v7671_v27 = vor.u32 %v8400_v47, %v7670_v21  ;;  %5107 = vmatpush.bf16.msrb.mxu3 %v7667_v36  ;;  %v7271_v34 = vor.u32 %v8295_v22, %v7268_v40  ;;  %v7275_v24 = vor.u32 %v8301_v18, %v7274_v50  ;;  %v7626_v9 = vld [vmem:[%s13024_s5 + $0x2e0] sm:$0xf]  ;;  %v5602_v20 = vmax.f32 %v5525_v45, 0.0 }
 0x3a4   :  { %5706 = vst [vmem:[#allocation2 + $0x2c] sm:$0xff] %v5663_v15  ;;  %v5423_v2 = vmul.f32 %v12278_v59, %v5320_v44  ;;  %v12398_v60 = vadd.f32 %v4838_v58, %v11061_v55  ;;  %v7623_v44 = vor.u32 %v8383_v57, %v7620_v1  ;;  %v8389_v58 = vld [vmem:[%s13024_s5 + $0x308] sm:$0xf0]  ;;  %v5536_v40 = vadd.f32 %v12275_v29, %v5433_v10 }
 0x3a5   :  { %v4812_v61 = vpop.f32.mrf.mxu0  ;;  %5163 = vmatpush.bf16.msrb.mxu1 %v7671_v27  ;;  %5080 = vmatpush.bf16.msrb.mxu2 %v7271_v34  ;;  %v7627_v21 = vor.u32 %v8389_v58, %v7626_v9  ;;  %v5444_v18 = vmul.f32 %v12234_v38, %v12142_v52  ;;  %v4293_v10 = vunpack.c.h.b16 %v12184_v30 }
 0x3a6   :  { %v5526_v55 = vadd.f32 %v12282_v5, %v5423_v2  ;;  %v5613_v34 = vmax.f32 %v5536_v40, 0.0 }
 0x3a7   :  { %v4781_v15 = vpop.f32.mrf.mxu3  ;;  %5108 = vmatpush.bf16.msrb.mxu3 %v7623_v44  ;;  %5136 = vmatpush.bf16.msrb.mxu0 %v7275_v24  ;;  %v5547_v52 = vadd.f32 %v12275_v29, %v5444_v18 }
 0x3a8   :  { %v5603_v12 = vmax.f32 %v5526_v55, 0.0  ;;  %v4782_v36 = vadd.f32 %v4781_v15, %v4753_v63  ;;  %4979 = vmatmul.bf16.gmra.mxu2 %v11595_v6  ;;  %5035 = vmatmul.bf16.gmra.mxu0 %v11595_v6  ;;  %v7584_v15 = vld [vmem:[%s13024_s5 + $0x2b4] sm:$0xf0] }
 0x3a9   :  { %v4840_v47 = vpop.f32.mrf.mxu1  ;;  %5164 = vmatpush.bf16.msrb.mxu1 %v7627_v21  ;;  %v4469_v21 = vpack.c.b16 %v4293_v10, %v4293_v10  ;;  %v5624_v30 = vmax.f32 %v5547_v52, 0.0 }
 0x3aa   :  { %v5669_v45 = vpack.c.bf16 %v5603_v12, %v5602_v20  ;;  %v5331_v22 = vadd.f32 %v4782_v36, %v10782_v33  ;;  %v4841_v2 = vadd.f32 %v4840_v47, %v4812_v61  ;;  %v8373_v20 = vld [vmem:[%s13024_s5 + $0x28c] sm:$0xf] }
 0x3ab   :  { %v4756_v27 = vpop.f32.mrf.mxu2  ;;  %v7587_v58 = vor.u32 %v8373_v20, %v7584_v15 }
 0x3ac   :  { %5712 = vst [vmem:[#allocation2 + $0x58] sm:$0xff] %v5669_v45  ;;  %v5434_v53 = vmul.f32 %v12278_v59, %v5331_v22  ;;  %v12430_v63 = vadd.f32 %v4841_v2, %v11082_v51  ;;  %7922 = vmatmul.msk.bf16.gmra.mxu3 %vm1317_vm1, %v11623_v0  ;;  %7926 = vmatmul.msk.bf16.gmra.mxu1 %vm1317_vm1, %v11623_v0  ;;  %v4676_v2 = vsel %vm1330_vm0, %v4469_v21, 0 }
 0x3ad   :  { %v4814_v50 = vpop.f32.mrf.mxu0  ;;  %5185 = vmatpush.bf16.msra.mxu2 %v7587_v58  ;;  %v5455_v45 = vmul.f32 %v12234_v38, %v12159_v23  ;;  %5213 = vmatpush.bf16.msra.mxu3 %v4676_v2  ;;  %v7892_v58 = vld [vmem:[%s13024_s5 + $0x51c] sm:$0xf0] }
 0x3ae   :  { %v5537_v33 = vadd.f32 %v12282_v5, %v5434_v53 }
 0x3af   :  { %v4784_v61 = vpop.f32.mrf.mxu3 }
 0x3b0   :  { %v5614_v55 = vmax.f32 %v5537_v33, 0.0  ;;  %v4785_v57 = vadd.f32 %v4784_v61, %v4756_v27  ;;  %v5558_v61 = vadd.f32 %v12275_v29, %v5455_v45 }
 0x3b1   :  { %v4842_v1 = vpop.f32.mrf.mxu1 }
 0x3b2   :  { %v5675_v24 = vpack.c.bf16 %v5614_v55, %v5613_v34  ;;  %v5342_v51 = vadd.f32 %v4785_v57, %v10814_v48  ;;  %v4843_v9 = vadd.f32 %v4842_v1, %v4814_v50  ;;  %v8379_v55 = vld [vmem:[%s13024_s5 + $0x2b8] sm:$0xf0]  ;;  %v5635_v10 = vmax.f32 %v5558_v61, 0.0 }
 0x3b3   :  { %v4758_v44 = vpop.f32.mrf.mxu2 }
 0x3b4   :  { %5718 = vst [vmem:[#allocation2 + $0x84] sm:$0xff] %v5675_v24  ;;  %v5445_v12 = vmul.f32 %v12278_v59, %v5342_v51  ;;  %v12450_v48 = vadd.f32 %v4843_v9, %v11114_v42  ;;  %v8362_v24 = vld [vmem:[%s13024_s5 + $0x234] sm:$0xf]  ;;  %v7540_v51 = vld [vmem:[%s13024_s5 + $0x25c] sm:$0xf0] }
 0x3b5   :  { %v4817_v36 = vpop.f32.mrf.mxu0  ;;  %v7543_v15 = vor.u32 %v8362_v24, %v7540_v51 }
 0x3b6   :  { %v5548_v47 = vadd.f32 %v12282_v5, %v5445_v12 }
 0x3b7   :  { %v4786_v22 = vpop.f32.mrf.mxu3  ;;  %5186 = vmatpush.bf16.msra.mxu2 %v7543_v15 }
 0x3b8   :  { %v5625_v27 = vmax.f32 %v5548_v47, 0.0  ;;  %v4787_v40 = vadd.f32 %v4786_v22, %v4758_v44  ;;  %4984 = vmatmul.bf16.gmra.mxu2 %v11661_v17  ;;  %5040 = vmatmul.bf16.gmra.mxu0 %v11661_v17  ;;  %v8450_v44 = vld [vmem:[%s13024_s5 + $0x4f4] sm:$0xf] }
 0x3b9   :  { %v4845_v42 = vpop.f32.mrf.mxu1  ;;  %v7895_v12 = vor.u32 %v8450_v44, %v7892_v58  ;;  %v12524_v44 = vperm.slane %v12229_v35, 2 }
 0x3ba   :  { %v5681_v53 = vpack.c.bf16 %v5625_v27, %v5624_v30  ;;  %v5353_v50 = vadd.f32 %v4787_v40, %v10834_v28  ;;  %v4846_v33 = vadd.f32 %v4845_v42, %v4817_v36  ;;  %v7590_v28 = vld [vmem:[%s13024_s5 + $0x290] sm:$0xf]  ;;  %v5466_v36 = vmul.f32 %v12234_v38, %v12168_v56  ;;  %v7546_v56 = vld [vmem:[%s13024_s5 + $0x238] sm:$0xf]  ;;  %v8368_v38 = vld [vmem:[%s13024_s5 + $0x260] sm:$0xf0] }
 0x3bb   :  { %v4761_v34 = vpop.f32.mrf.mxu2  ;;  %v7591_v1 = vor.u32 %v8379_v55, %v7590_v28  ;;  %5214 = vmatpush.bf16.msra.mxu3 %v7895_v12  ;;  %v8439_v28 = vld [vmem:[%s13024_s5 + $0x49c] sm:$0xf]  ;;  %v7848_v55 = vld [vmem:[%s13024_s5 + $0x4c4] sm:$0xf0] }
 0x3bc   :  { %5724 = vst [vmem:[#allocation2 + $0xb0] sm:$0xff] %v5681_v53  ;;  %v5456_v23 = vmul.f32 %v12278_v59, %v5353_v50  ;;  %v12462_v18 = vadd.f32 %v4846_v33, %v11149_v11  ;;  %7923 = vmatmul.msk.bf16.gmra.mxu3 %vm1317_vm1, %v11681_v49  ;;  %7927 = vmatmul.msk.bf16.gmra.mxu1 %vm1317_vm1, %v11681_v49  ;;  %v3734_v11 = vld [vmem:[%s13024_s5 + $0x550] sm:$0x7] }
 0x3bd   :  { %v4819_v57 = vpop.f32.mrf.mxu0  ;;  %v4294_v20 = vunpack.c.l.b16 %v3734_v11  ;;  %5241 = vmatpush.bf16.msra.mxu0 %v7591_v1  ;;  %v5569_v42 = vadd.f32 %v12275_v29, %v5466_v36  ;;  %v7547_v33 = vor.u32 %v8368_v38, %v7546_v56  ;;  %v8456_v29 = vld [vmem:[%s13024_s5 + $0x520] sm:$0xf0]  ;;  %v7851_v11 = vor.u32 %v8439_v28, %v7848_v55  ;;  %v7458_v28 = vld [vmem:[%s13024_s5 + $0x188] sm:$0xf] }
 0x3be   :  { %v5559_v9 = vadd.f32 %v12282_v5, %v5456_v23  ;;  %v7496_v23 = vld [vmem:[%s13024_s5 + $0x204] sm:$0xf0]  ;;  %v12560_v56 = vperm.slane %v12239_v25, 2 }
 0x3bf   :  { %v4789_v52 = vpop.f32.mrf.mxu3  ;;  %v4470_v45 = vpack.c.b16 %v4294_v20, %v4294_v20  ;;  %v5646_v24 = vmax.f32 %v5569_v42, 0.0  ;;  %5215 = vmatpush.bf16.msra.mxu3 %v7851_v11  ;;  %v7810_v55 = vld [vmem:[%s13024_s5 + $0x448] sm:$0xf]  ;;  %v8434_v11 = vld [vmem:[%s13024_s5 + $0x470] sm:$0xf0] }
 0x3c0   :  { %v5636_v21 = vmax.f32 %v5559_v9, 0.0  ;;  %v4790_v47 = vadd.f32 %v4789_v52, %v4761_v34  ;;  %v8357_v52 = vld [vmem:[%s13024_s5 + $0x208] sm:$0xf0] }
 0x3c1   :  { %v4847_v22 = vpop.f32.mrf.mxu1  ;;  %v4679_v27 = vsel %vm1330_vm0, %v4470_v45, 0  ;;  %5242 = vmatpush.bf16.msra.mxu0 %v7547_v33 }
 0x3c2   :  { %v5687_v2 = vpack.c.bf16 %v5636_v21, %v5635_v10  ;;  %v5364_v30 = vadd.f32 %v4790_v47, %v10861_v62  ;;  %5269 = vmatpush.bf16.msra.mxu1 %v4679_v27  ;;  %v7898_v62 = vld [vmem:[%s13024_s5 + $0x4f8] sm:$0xf]  ;;  %v7502_v10 = vld [vmem:[%s13024_s5 + $0x1e0] sm:$0xf]  ;;  %v8445_v21 = vld [vmem:[%s13024_s5 + $0x4c8] sm:$0xf0] }
 0x3c3   :  { %v4763_v40 = vpop.f32.mrf.mxu2  ;;  %v7899_v34 = vor.u32 %v8456_v29, %v7898_v62  ;;  %v7503_v36 = vor.u32 %v8357_v52, %v7502_v10  ;;  %v8340_v47 = vld [vmem:[%s13024_s5 + $0x184] sm:$0xf]  ;;  %v7452_v22 = vld [vmem:[%s13024_s5 + $0x1ac] sm:$0xf0]  ;;  %v12567_v29 = vperm.slane %v12239_v25, 3  ;;  %v5413_v10 = vmul.f32 %v12524_v44, %v12287_v19 }
 0x3c4   :  { %5730 = vst [vmem:[#allocation2 + $0xdc] sm:$0xff] %v5687_v2  ;;  %v5467_v53 = vmul.f32 %v12278_v59, %v5364_v30  ;;  %v8351_v59 = vld [vmem:[%s13024_s5 + $0x1dc] sm:$0xf]  ;;  %v8428_v2 = vld [vmem:[%s13024_s5 + $0x444] sm:$0xf]  ;;  %v7455_v40 = vor.u32 %v8340_v47, %v7452_v22 }
 0x3c5   :  { %v4914_v50 = vpop.f32.mrf.mxu0  ;;  %v7499_v1 = vor.u32 %v8351_v59, %v7496_v23  ;;  %v7804_v30 = vld [vmem:[%s13024_s5 + $0x46c] sm:$0xf0]  ;;  %5243 = vmatpush.bf16.msra.mxu0 %v7503_v36 }
 0x3c6   :  { %v5570_v61 = vadd.f32 %v12282_v5, %v5467_v53  ;;  %5270 = vmatpush.bf16.msra.mxu1 %v7899_v34  ;;  %v7807_v42 = vor.u32 %v8428_v2, %v7804_v30  ;;  %v5402_v53 = vmul.f32 %v12524_v44, %v12242_v39  ;;  %v7414_v47 = vld [vmem:[%s13024_s5 + $0x130] sm:$0xf] }
 0x3c7   :  { %v4791_v57 = vpop.f32.mrf.mxu3  ;;  %5187 = vmatpush.bf16.msra.mxu2 %v7499_v1 }
 0x3c8   :  { %v5647_v51 = vmax.f32 %v5570_v61, 0.0  ;;  %5081 = vmatmul.bf16.vlgmr.msrb.gmra.mxu2 %v11424_v31  ;;  %5137 = vmatmul.bf16.vlgmr.msrb.gmra.mxu0 %v11424_v31  ;;  %v5505_v39 = vadd.f32 %v12560_v56, %v5402_v53  ;;  %v5516_v53 = vadd.f32 %v12560_v56, %v5413_v10 }
 0x3c9   :  { %v4942_v5 = vpop.f32.mrf.mxu1  ;;  %5216 = vmatpush.bf16.msra.mxu3 %v7807_v42  ;;  %v8423_v42 = vld [vmem:[%s13024_s5 + $0x418] sm:$0xf0] }
 0x3ca   :  { %v5693_v9 = vpack.c.bf16 %v5647_v51, %v5646_v24  ;;  %v4943_v20 = vadd.f32 %v4942_v5, %v4914_v50  ;;  %v12563_v50 = vperm.slane %v12229_v35, 3  ;;  %v7408_v24 = vld [vmem:[%s13024_s5 + $0x154] sm:$0xf0]  ;;  %v7811_v5 = vor.u32 %v8434_v11, %v7810_v55 }
 0x3cb   :  { %v4858_v15 = vpop.f32.mrf.mxu2  ;;  %5188 = vmatpush.bf16.msra.mxu2 %v7455_v40  ;;  %v5582_v36 = vmax.f32 %v5505_v39, 0.0  ;;  %v7766_v40 = vld [vmem:[%s13024_s5 + $0x3f0] sm:$0xf]  ;;  %v5593_v10 = vmax.f32 %v5516_v53, 0.0  ;;  %v7678_v53 = vld [vmem:[%s13024_s5 + $0x340] sm:$0xf] }
 0x3cc   :  { %5736 = vst [vmem:[#allocation2 + $0x108] sm:$0xff] %v5693_v9  ;;  %v12527_v58 = vadd.f32 %v4943_v20, %v11210_v46  ;;  %7928 = vmatmul.msk.bf16.vlgmr.msrb.gmra.mxu3 %vm1317_vm1, %v11447_v32  ;;  %7932 = vmatmul.msk.bf16.vlgmr.msrb.gmra.mxu1 %vm1317_vm1, %v11447_v32  ;;  %v7854_v46 = vld [vmem:[%s13024_s5 + $0x4a0] sm:$0xf]  ;;  %v8417_v20 = vld [vmem:[%s13024_s5 + $0x3ec] sm:$0xf] }
 0x3cd   :  { %v4916_v12 = vpop.f32.mrf.mxu0  ;;  %v7855_v45 = vor.u32 %v8445_v21, %v7854_v46 }
 0x3cf   :  { %v4886_v27 = vpop.f32.mrf.mxu3  ;;  %5271 = vmatpush.bf16.msra.mxu1 %v7855_v45  ;;  %v8335_v45 = vld [vmem:[%s13024_s5 + $0x158] sm:$0xf0] }
 0x3d0   :  { %v4887_v38 = vadd.f32 %v4886_v27, %v4858_v15  ;;  %v7760_v15 = vld [vmem:[%s13024_s5 + $0x414] sm:$0xf0]  ;;  %v7415_v19 = vor.u32 %v8335_v45, %v7414_v47 }
 0x3d1   :  { %v4944_v33 = vpop.f32.mrf.mxu1 }
 0x3d2   :  { %v5300_v62 = vadd.f32 %v4887_v38, %v10921_v16  ;;  %v4945_v59 = vadd.f32 %v4944_v33, %v4916_v12  ;;  %v8346_v16 = vld [vmem:[%s13024_s5 + $0x1b0] sm:$0xf0]  ;;  %v7763_v12 = vor.u32 %v8417_v20, %v7760_v15  ;;  %v7767_v33 = vor.u32 %v8423_v42, %v7766_v40  ;;  %v8307_v20 = vld [vmem:[%s13024_s5 + $0x7c] sm:$0xf]  ;;  %v7320_v15 = vld [vmem:[%s13024_s5 + $0xa4] sm:$0xf0] }
 0x3d3   :  { %v4860_v61 = vpop.f32.mrf.mxu2  ;;  %v7459_v1 = vor.u32 %v8346_v16, %v7458_v28  ;;  %5272 = vmatpush.bf16.msra.mxu1 %v7811_v5  ;;  %v7716_v28 = vld [vmem:[%s13024_s5 + $0x3bc] sm:$0xf0] }
 0x3d4   :  { %v5403_v34 = vmul.f32 %v12563_v50, %v5300_v62  ;;  %v12572_v23 = vadd.f32 %v4945_v59, %v11240_v37  ;;  %v8329_v37 = vld [vmem:[%s13024_s5 + $0x12c] sm:$0xf]  ;;  %5217 = vmatpush.bf16.msra.mxu3 %v7763_v12  ;;  %v8318_v62 = vld [vmem:[%s13024_s5 + $0xd4] sm:$0xf] }
 0x3d5   :  { %v4919_v57 = vpop.f32.mrf.mxu0  ;;  %v7411_v9 = vor.u32 %v8329_v37, %v7408_v24  ;;  %5244 = vmatpush.bf16.msra.mxu0 %v7459_v1  ;;  %v7722_v37 = vld [vmem:[%s13024_s5 + $0x398] sm:$0xf]  ;;  %v8412_v24 = vld [vmem:[%s13024_s5 + $0x3c0] sm:$0xf0] }
 0x3d6   :  { %v5506_v51 = vadd.f32 %v12567_v29, %v5403_v34  ;;  %v8406_v34 = vld [vmem:[%s13024_s5 + $0x394] sm:$0xf] }
 0x3d7   :  { %v4888_v52 = vpop.f32.mrf.mxu3  ;;  %5189 = vmatpush.bf16.msra.mxu2 %v7411_v9  ;;  %5273 = vmatpush.bf16.msra.mxu1 %v7767_v33  ;;  %v7719_v55 = vor.u32 %v8406_v34, %v7716_v28  ;;  %v7723_v9 = vor.u32 %v8412_v24, %v7722_v37 }
 0x3d8   :  { %v5583_v46 = vmax.f32 %v5506_v51, 0.0  ;;  %v4889_v21 = vadd.f32 %v4888_v52, %v4860_v61  ;;  %5086 = vmatmul.bf16.gmra.mxu2 %v11504_v13  ;;  %5142 = vmatmul.bf16.gmra.mxu0 %v11504_v13  ;;  %v5424_v51 = vmul.f32 %v12524_v44, %v12340_v43  ;;  %v7326_v43 = vld [vmem:[%s13024_s5 + $0x80] sm:$0xf] }
 0x3d9   :  { %v4947_v22 = vpop.f32.mrf.mxu1  ;;  %5245 = vmatpush.bf16.msra.mxu0 %v7415_v19  ;;  %5218 = vmatpush.bf16.msra.mxu3 %v7719_v55  ;;  %v8384_v55 = vld [vmem:[%s13024_s5 + $0x2e4] sm:$0xf] }
 0x3da   :  { %v5658_v2 = vpack.c.bf16 %v5583_v46, %v5582_v36  ;;  %v5311_v30 = vadd.f32 %v4889_v21, %v10955_v7  ;;  %v4948_v27 = vadd.f32 %v4947_v22, %v4919_v57  ;;  %v7364_v7 = vld [vmem:[%s13024_s5 + $0xfc] sm:$0xf0]  ;;  %v8324_v57 = vld [vmem:[%s13024_s5 + $0x100] sm:$0xf0]  ;;  %v7323_v36 = vor.u32 %v8307_v20, %v7320_v15  ;;  %v8313_v46 = vld [vmem:[%s13024_s5 + $0xa8] sm:$0xf0] }
 0x3db   :  { %v4863_v38 = vpop.f32.mrf.mxu2  ;;  %v7367_v39 = vor.u32 %v8318_v62, %v7364_v7  ;;  %5274 = vmatpush.bf16.msra.mxu1 %v7723_v9  ;;  %v7327_v47 = vor.u32 %v8313_v46, %v7326_v43 }
 0x3dc   :  { %5700 = vst [vmem:[#allocation2 + $0x8] sm:$0xff] %v5658_v2  ;;  %v5414_v59 = vmul.f32 %v12563_v50, %v5311_v30  ;;  %v12625_v61 = vadd.f32 %v4948_v27, %v11276_v8  ;;  %7929 = vmatmul.msk.bf16.gmra.mxu3 %vm1317_vm1, %v11529_v14  ;;  %7933 = vmatmul.msk.bf16.gmra.mxu1 %vm1317_vm1, %v11529_v14  ;;  %v7370_v8 = vld [vmem:[%s13024_s5 + $0xd8] sm:$0xf]  ;;  %v8395_v2 = vld [vmem:[%s13024_s5 + $0x33c] sm:$0xf] }
 0x3dd   :  { %v4921_v16 = vpop.f32.mrf.mxu0  ;;  %5190 = vmatpush.bf16.msra.mxu2 %v7367_v39  ;;  %v7371_v11 = vor.u32 %v8324_v57, %v7370_v8  ;;  %v7672_v30 = vld [vmem:[%s13024_s5 + $0x364] sm:$0xf0]  ;;  %v5527_v27 = vadd.f32 %v12560_v56, %v5424_v51  ;;  %v7628_v8 = vld [vmem:[%s13024_s5 + $0x30c] sm:$0xf0]  ;;  %v8390_v51 = vld [vmem:[%s13024_s5 + $0x310] sm:$0xf0] }
 0x3de   :  { %v5517_v1 = vadd.f32 %v12567_v29, %v5414_v59  ;;  %v7675_v42 = vor.u32 %v8395_v2, %v7672_v30  ;;  %v7276_v59 = vld [vmem:[%s13024_s5 + $0x4c] sm:$0xf0]  ;;  %v7282_v39 = vld [vmem:[%s13024_s5 + $0x28] sm:$0xf]  ;;  %v7631_v24 = vor.u32 %v8384_v55, %v7628_v8 }
 0x3df   :  { %v4891_v5 = vpop.f32.mrf.mxu3  ;;  %5246 = vmatpush.bf16.msra.mxu0 %v7371_v11  ;;  %v5604_v11 = vmax.f32 %v5527_v27, 0.0  ;;  %v13145_v8 = vld [vmem:[#allocation40_spill] sm:$0xff] }
 0x3e0   :  { %v5594_v52 = vmax.f32 %v5517_v1, 0.0  ;;  %v4892_v12 = vadd.f32 %v4891_v5, %v4863_v38  ;;  %v8296_v38 = vld [vmem:[%s13024_s5 + $0x24] sm:$0xf]  ;;  %5219 = vmatpush.bf16.msra.mxu3 %v7675_v42  ;;  %v7634_v1 = vld [vmem:[%s13024_s5 + $0x2e8] sm:$0xf]  ;;  %v5435_v5 = vmul.f32 %v12524_v44, %v12398_v60 }
 0x3e1   :  { %v4949_v21 = vpop.f32.mrf.mxu1  ;;  %5191 = vmatpush.bf16.msra.mxu2 %v7323_v36  ;;  %v7279_v28 = vor.u32 %v8296_v38, %v7276_v59  ;;  %v7635_v15 = vor.u32 %v8390_v51, %v7634_v1  ;;  %v13146_v51 = vld [vmem:[#allocation5_spill] sm:$0xff] }
 0x3e2   :  { %v5664_v45 = vpack.c.bf16 %v5594_v52, %v5593_v10  ;;  %v5322_v22 = vadd.f32 %v4892_v12, %v10987_v26  ;;  %v4950_v19 = vadd.f32 %v4949_v21, %v4921_v16  ;;  %v8401_v26 = vld [vmem:[%s13024_s5 + $0x368] sm:$0xf0]  ;;  %v8302_v16 = vld [vmem:[%s13024_s5 + $0x50] sm:$0xf0]  ;;  %v5538_v46 = vadd.f32 %v12560_v56, %v5435_v5 }
 0x3e3   :  { %v4865_v40 = vpop.f32.mrf.mxu2  ;;  %5247 = vmatpush.bf16.msra.mxu0 %v7327_v47  ;;  %v7679_v7 = vor.u32 %v8401_v26, %v7678_v53  ;;  %v7283_v57 = vor.u32 %v8302_v16, %v7282_v39 }
 0x3e4   :  { %5707 = vst [vmem:[#allocation2 + $0x34] sm:$0xff] %v5664_v45  ;;  %v5425_v33 = vmul.f32 %v12563_v50, %v5322_v22  ;;  %v12683_v62 = vadd.f32 %v4950_v19, %v11318_v4  ;;  %5220 = vmatpush.bf16.msra.mxu3 %v7631_v24  ;;  %v5615_v22 = vmax.f32 %v5538_v46, 0.0  ;;  %v5446_v19 = vmul.f32 %v12524_v44, %v12430_v63  ;;  %v13147_v46 = vld [vmem:[#allocation41_spill] sm:$0xff] }
 0x3e5   :  { %v4924_v34 = vpop.f32.mrf.mxu0  ;;  %5275 = vmatpush.bf16.msra.mxu1 %v7679_v7  ;;  %5192 = vmatpush.bf16.msra.mxu2 %v7279_v28  ;;  %v5457_v28 = vmul.f32 %v12524_v44, %v12450_v48 }
 0x3e6   :  { %v5528_v4 = vadd.f32 %v12567_v29, %v5425_v33  ;;  %v5549_v26 = vadd.f32 %v12560_v56, %v5446_v19  ;;  %v13144_v33 = vld [vmem:[#allocation13_spill] sm:$0xff] }
 0x3e7   :  { %v4893_v37 = vpop.f32.mrf.mxu3  ;;  %5248 = vmatpush.bf16.msra.mxu0 %v7283_v57 }
 0x3e8   :  { %v5605_v9 = vmax.f32 %v5528_v4, 0.0  ;;  %v4894_v20 = vadd.f32 %v4893_v37, %v4865_v40  ;;  %5091 = vmatmul.bf16.gmra.mxu2 %v11595_v6  ;;  %5147 = vmatmul.bf16.gmra.mxu0 %v11595_v6  ;;  %v5560_v37 = vadd.f32 %v12560_v56, %v5457_v28 }
 0x3e9   :  { %v4952_v10 = vpop.f32.mrf.mxu1  ;;  %5276 = vmatpush.bf16.msra.mxu1 %v7635_v15 }
 0x3ea   :  { %v5670_v52 = vpack.c.bf16 %v5605_v9, %v5604_v11  ;;  %v5333_v12 = vadd.f32 %v4894_v20, %v11033_v54  ;;  %v4953_v36 = vadd.f32 %v4952_v10, %v4924_v34  ;;  %v5626_v34 = vmax.f32 %v5549_v26, 0.0 }
 0x3eb   :  { %v4868_v43 = vpop.f32.mrf.mxu2  ;;  %v5637_v15 = vmax.f32 %v5560_v37, 0.0  ;;  %v5468_v10 = vmul.f32 %v12524_v44, %v12462_v18  ;;  %v12767_v26 = vperm.slane %v12239_v25, 4 }
 0x3ec   :  { %5713 = vst [vmem:[#allocation2 + $0x60] sm:$0xff] %v5670_v52  ;;  %v5436_v60 = vmul.f32 %v12563_v50, %v5333_v12  ;;  %v12715_v21 = vadd.f32 %v4953_v36, %v11337_v41  ;;  %7930 = vmatmul.msk.bf16.gmra.mxu3 %vm1317_vm1, %v11623_v0  ;;  %7934 = vmatmul.msk.bf16.gmra.mxu1 %vm1317_vm1, %v11623_v0 }
 0x3ed   :  { %v4926_v47 = vpop.f32.mrf.mxu0 }
 0x3ee   :  { %v5539_v54 = vadd.f32 %v12567_v29, %v5436_v60 }
 0x3ef   :  { %v4896_v45 = vpop.f32.mrf.mxu3 }
 0x3f0   :  { %v5616_v2 = vmax.f32 %v5539_v54, 0.0  ;;  %v4897_v30 = vadd.f32 %v4896_v45, %v4868_v43  ;;  %v5571_v54 = vadd.f32 %v12560_v56, %v5468_v10  ;;  %v13148_v56 = vld [vmem:[#allocation6_spill] sm:$0xff] }
 0x3f1   :  { %v4954_v27 = vpop.f32.mrf.mxu1 }
 0x3f2   :  { %v5676_v40 = vpack.c.bf16 %v5616_v2, %v5615_v22  ;;  %v5344_v41 = vadd.f32 %v4897_v30, %v11065_v3  ;;  %v4955_v42 = vadd.f32 %v4954_v27, %v4926_v47  ;;  %v5648_v30 = vmax.f32 %v5571_v54, 0.0 }
 0x3f3   :  { %v4870_v53 = vpop.f32.mrf.mxu2 }
 0x3f4   :  { %5719 = vst [vmem:[#allocation2 + $0x8c] sm:$0xff] %v5676_v40  ;;  %v5447_v38 = vmul.f32 %v12563_v50, %v5344_v41  ;;  %v12728_v7 = vadd.f32 %v4955_v42, %v13144_v33  ;;  %v12755_v42 = vperm.slane %v12229_v35, 4  ;;  %v12770_v33 = vperm.slane %v12229_v35, 5 }
 0x3f5   :  { %v4929_v59 = vpop.f32.mrf.mxu0 }
 0x3f6   :  { %v5550_v39 = vadd.f32 %v12567_v29, %v5447_v38 }
 0x3f7   :  { %v4898_v63 = vpop.f32.mrf.mxu3 }
 0x3f8   :  { %v5627_v16 = vmax.f32 %v5550_v39, 0.0  ;;  %v4899_v3 = vadd.f32 %v4898_v63, %v4870_v53  ;;  %5096 = vmatmul.bf16.gmra.mxu2 %v11661_v17  ;;  %5152 = vmatmul.bf16.gmra.mxu0 %v11661_v17  ;;  %v13149_v39 = vld [vmem:[#allocation42_spill] sm:$0xff] }
 0x3f9   :  { %v4957_v4 = vpop.f32.mrf.mxu1 }
 0x3fa   :  { %v5682_v55 = vpack.c.bf16 %v5627_v16, %v5626_v34  ;;  %v5355_v57 = vadd.f32 %v4899_v3, %v13145_v8  ;;  %v4958_v1 = vadd.f32 %v4957_v4, %v4929_v59  ;;  %v12774_v34 = vperm.slane %v12239_v25, 5 }
 0x3fb   :  { %v4873_v11 = vpop.f32.mrf.mxu2 }
 0x3fc   :  { %5725 = vst [vmem:[#allocation2 + $0xb8] sm:$0xff] %v5682_v55  ;;  %v5458_v24 = vmul.f32 %v12563_v50, %v5355_v57  ;;  %v12739_v5 = vadd.f32 %v4958_v1, %v13146_v51  ;;  %7931 = vmatmul.msk.bf16.gmra.mxu3 %vm1317_vm1, %v11681_v49  ;;  %7935 = vmatmul.msk.bf16.gmra.mxu1 %vm1317_vm1, %v11681_v49  ;;  %v13151_v51 = vld [vmem:[#allocation43_spill] sm:$0xff] }
 0x3fd   :  { %v4931_v48 = vpop.f32.mrf.mxu0  ;;  %v5415_v1 = vmul.f32 %v12755_v42, %v12572_v23 }
 0x3fe   :  { %v5561_v9 = vadd.f32 %v12567_v29, %v5458_v24 }
 0x3ff   :  { %v4901_v20 = vpop.f32.mrf.mxu3 }
 0x400   :  { %v5638_v52 = vmax.f32 %v5561_v9, 0.0  ;;  %v4902_v12 = vadd.f32 %v4901_v20, %v4873_v11 }
 0x401   :  { %v4959_v36 = vpop.f32.mrf.mxu1 }
 0x402   :  { %v5688_v43 = vpack.c.bf16 %v5638_v52, %v5637_v15  ;;  %v5366_v60 = vadd.f32 %v4902_v12, %v13147_v46  ;;  %v5518_v15 = vadd.f32 %v12767_v26, %v5415_v1  ;;  %v13152_v52 = vld [vmem:[#allocation8_spill] sm:$0xff]  ;;  %v5426_v46 = vmul.f32 %v12755_v42, %v12625_v61 }
 0x403   :  { %v4875_v47 = vpop.f32.mrf.mxu2 }
 0x404   :  { %5731 = vst [vmem:[#allocation2 + $0xe4] sm:$0xff] %v5688_v43  ;;  %v5469_v45 = vmul.f32 %v12563_v50, %v5366_v60  ;;  %v5595_v43 = vmax.f32 %v5518_v15, 0.0  ;;  %v13158_v15 = vld [vmem:[#allocation11_spill] sm:$0xff] }
 0x405   :  { %v5026_v22 = vpop.f32.mrf.mxu0 }
 0x406   :  { %v5572_v19 = vadd.f32 %v12567_v29, %v5469_v45 }
 0x407   :  { %v4903_v2 = vpop.f32.mrf.mxu3 }
 0x408   :  { %v5649_v27 = vmax.f32 %v5572_v19, 0.0  ;;  %5193 = vmatmul.bf16.vlgmr.msra.gmra.mxu2 %v11424_v31  ;;  %5249 = vmatmul.bf16.vlgmr.msra.gmra.mxu0 %v11424_v31  ;;  %v5404_v31 = vmul.f32 %v12755_v42, %v12527_v58  ;;  %v13150_v58 = vld [vmem:[#allocation7_spill] sm:$0xff] }
 0x409   :  { %v5054_v18 = vpop.f32.mrf.mxu1 }
 0x40a   :  { %v5694_v44 = vpack.c.bf16 %v5649_v27, %v5648_v30  ;;  %v5055_v40 = vadd.f32 %v5054_v18, %v5026_v22  ;;  %v5507_v16 = vadd.f32 %v12767_v26, %v5404_v31  ;;  %v13153_v22 = vld [vmem:[#allocation44_spill] sm:$0xff]  ;;  %v5529_v27 = vadd.f32 %v12767_v26, %v5426_v46  ;;  %v13154_v18 = vld [vmem:[#allocation9_spill] sm:$0xff] }
 0x40b   :  { %v4970_v41 = vpop.f32.mrf.mxu2 }
 0x40c   :  { %5737 = vst [vmem:[#allocation2 + $0x110] sm:$0xff] %v5694_v44  ;;  %v12758_v50 = vadd.f32 %v5055_v40, %v13148_v56  ;;  %7936 = vmatmul.msk.bf16.vlgmr.msra.gmra.mxu3 %vm1317_vm1, %v11447_v32  ;;  %7940 = vmatmul.msk.bf16.vlgmr.msra.gmra.mxu1 %vm1317_vm1, %v11447_v32  ;;  %v5584_v57 = vmax.f32 %v5507_v16, 0.0  ;;  %v5606_v56 = vmax.f32 %v5529_v27, 0.0  ;;  %v13160_v27 = vld [vmem:[#allocation12_spill] sm:$0xff] }
 0x40d   :  { %v5028_v29 = vpop.f32.mrf.mxu0 }
 0x40f   :  { %v4998_v53 = vpop.f32.mrf.mxu3 }
 0x410   :  { %v4999_v38 = vadd.f32 %v4998_v53, %v4970_v41 }
 0x411   :  { %v5056_v59 = vpop.f32.mrf.mxu1 }
 0x412   :  { %v5302_v63 = vadd.f32 %v4999_v38, %v13149_v39  ;;  %v5057_v28 = vadd.f32 %v5056_v59, %v5028_v29  ;;  %v5437_v29 = vmul.f32 %v12755_v42, %v12683_v62  ;;  %v13155_v39 = vld [vmem:[#allocation45_spill] sm:$0xff] }
 0x413   :  { %v4972_v32 = vpop.f32.mrf.mxu2 }
 0x414   :  { %v5405_v3 = vmul.f32 %v12770_v33, %v5302_v63  ;;  %v12779_v4 = vadd.f32 %v5057_v28, %v13150_v58  ;;  %v5540_v16 = vadd.f32 %v12767_v26, %v5437_v29  ;;  %v13156_v58 = vld [vmem:[#allocation10_spill] sm:$0xff] }
 0x415   :  { %v5031_v55 = vpop.f32.mrf.mxu0 }
 0x416   :  { %v5508_v8 = vadd.f32 %v12774_v34, %v5405_v3 }
 0x417   :  { %v5000_v35 = vpop.f32.mrf.mxu3 }
 0x418   :  { %v5585_v11 = vmax.f32 %v5508_v8, 0.0  ;;  %v5001_v25 = vadd.f32 %v5000_v35, %v4972_v32  ;;  %5198 = vmatmul.bf16.gmra.mxu2 %v11504_v13  ;;  %5254 = vmatmul.bf16.gmra.mxu0 %v11504_v13  ;;  %v5617_v35 = vmax.f32 %v5540_v16, 0.0 }
 0x419   :  { %v5059_v37 = vpop.f32.mrf.mxu1 }
 0x41a   :  { %v5659_v24 = vpack.c.bf16 %v5585_v11, %v5584_v57  ;;  %v5313_v48 = vadd.f32 %v5001_v25, %v13151_v51  ;;  %v5060_v9 = vadd.f32 %v5059_v37, %v5031_v55  ;;  %v5448_v57 = vmul.f32 %v12755_v42, %v12715_v21 }
 0x41b   :  { %v4975_v20 = vpop.f32.mrf.mxu2 }
 0x41c   :  { %5701 = vst [vmem:[#allocation2 + $0x10] sm:$0xff] %v5659_v24  ;;  %v5416_v10 = vmul.f32 %v12770_v33, %v5313_v48  ;;  %v12790_v12 = vadd.f32 %v5060_v9, %v13152_v52  ;;  %7937 = vmatmul.msk.bf16.gmra.mxu3 %vm1317_vm1, %v11529_v14  ;;  %7941 = vmatmul.msk.bf16.gmra.mxu1 %vm1317_vm1, %v11529_v14  ;;  %v13157_v24 = vld [vmem:[#allocation46_spill] sm:$0xff] }
 0x41d   :  { %v5033_v13 = vpop.f32.mrf.mxu0 }
 0x41e   :  { %v5519_v23 = vadd.f32 %v12774_v34, %v5416_v10 }
 0x41f   :  { %v5003_v36 = vpop.f32.mrf.mxu3 }
 0x420   :  { %v5596_v60 = vmax.f32 %v5519_v23, 0.0  ;;  %v5004_v47 = vadd.f32 %v5003_v36, %v4975_v20  ;;  %v5551_v20 = vadd.f32 %v12767_v26, %v5448_v57  ;;  %v5459_v36 = vmul.f32 %v12755_v42, %v12728_v7 }
 0x421   :  { %v5061_v54 = vpop.f32.mrf.mxu1 }
 0x422   :  { %v5665_v45 = vpack.c.bf16 %v5596_v60, %v5595_v43  ;;  %v5324_v19 = vadd.f32 %v5004_v47, %v13153_v22  ;;  %v5062_v2 = vadd.f32 %v5061_v54, %v5033_v13  ;;  %v5628_v23 = vmax.f32 %v5551_v20, 0.0  ;;  %v13159_v54 = vld [vmem:[#allocation47_spill] sm:$0xff] }
 0x423   :  { %v4977_v30 = vpop.f32.mrf.mxu2 }
 0x424   :  { %5708 = vst [vmem:[#allocation2 + $0x3c] sm:$0xff] %v5665_v45  ;;  %v5427_v14 = vmul.f32 %v12770_v33, %v5324_v19  ;;  %v12803_v44 = vadd.f32 %v5062_v2, %v13154_v18  ;;  %v5562_v2 = vadd.f32 %v12767_v26, %v5459_v36 }
 0x425   :  { %v5036_v40 = vpop.f32.mrf.mxu0 }
 0x426   :  { %v5530_v41 = vadd.f32 %v12774_v34, %v5427_v14 }
 0x427   :  { %v5005_v61 = vpop.f32.mrf.mxu3 }
 0x428   :  { %v5607_v53 = vmax.f32 %v5530_v41, 0.0  ;;  %v5006_v31 = vadd.f32 %v5005_v61, %v4977_v30  ;;  %5203 = vmatmul.bf16.gmra.mxu2 %v11595_v6  ;;  %5259 = vmatmul.bf16.gmra.mxu0 %v11595_v6  ;;  %v5470_v41 = vmul.f32 %v12755_v42, %v12739_v5 }
 0x429   :  { %v5064_v38 = vpop.f32.mrf.mxu1 }
 0x42a   :  { %v5671_v59 = vpack.c.bf16 %v5607_v53, %v5606_v56  ;;  %v5335_v63 = vadd.f32 %v5006_v31, %v13155_v39  ;;  %v5065_v28 = vadd.f32 %v5064_v38, %v5036_v40  ;;  %v5639_v40 = vmax.f32 %v5562_v2, 0.0  ;;  %v13161_v31 = vld [vmem:[#allocation48_spill] sm:$0xff] }
 0x42b   :  { %v4980_v32 = vpop.f32.mrf.mxu2  ;;  %v5573_v39 = vadd.f32 %v12767_v26, %v5470_v41  ;;  %v13162_v26 = vld [vmem:[#allocation14_spill] sm:$0xff] }
 0x42c   :  { %5714 = vst [vmem:[#allocation2 + $0x68] sm:$0xff] %v5671_v59  ;;  %v5438_v3 = vmul.f32 %v12770_v33, %v5335_v63  ;;  %v12814_v55 = vadd.f32 %v5065_v28, %v13156_v58  ;;  %7938 = vmatmul.msk.bf16.gmra.mxu3 %vm1317_vm1, %v11623_v0  ;;  %7942 = vmatmul.msk.bf16.gmra.mxu1 %vm1317_vm1, %v11623_v0 }
 0x42d   :  { %v5038_v6 = vpop.f32.mrf.mxu0  ;;  %v5650_v16 = vmax.f32 %v5573_v39, 0.0 }
 0x42e   :  { %v5541_v62 = vadd.f32 %v12774_v34, %v5438_v3 }
 0x42f   :  { %v5008_v8 = vpop.f32.mrf.mxu3 }
 0x430   :  { %v5618_v1 = vmax.f32 %v5541_v62, 0.0  ;;  %v5009_v11 = vadd.f32 %v5008_v8, %v4980_v32  ;;  %v8476_v62 = vld [vmem:[%s13025_s6] sm:$0xff] }
 0x431   :  { %v5066_v25 = vpop.f32.mrf.mxu1  ;;  %v12854_v8 = vperm.slane %v8476_v62, 6 }
 0x432   :  { %v5677_v37 = vpack.c.bf16 %v5618_v1, %v5617_v35  ;;  %v5346_v51 = vadd.f32 %v5009_v11, %v13157_v24  ;;  %v5067_v48 = vadd.f32 %v5066_v25, %v5038_v6  ;;  %v8477_v1 = vld [vmem:[%s13026_s7] sm:$0xff] }
 0x433   :  { %v4982_v9 = vpop.f32.mrf.mxu2  ;;  %v12864_v11 = vperm.slane %v8477_v1, 6 }
 0x434   :  { %5720 = vst [vmem:[#allocation2 + $0x94] sm:$0xff] %v5677_v37  ;;  %v5449_v0 = vmul.f32 %v12770_v33, %v5346_v51  ;;  %v12827_v10 = vadd.f32 %v5067_v48, %v13158_v15  ;;  %v12866_v37 = vperm.slane %v8476_v62, 7  ;;  %v13163_v51 = vld [vmem:[#allocation15_spill] sm:$0xff] }
 0x435   :  { %v5041_v52 = vpop.f32.mrf.mxu0 }
 0x436   :  { %v5552_v13 = vadd.f32 %v12774_v34, %v5449_v0 }
 0x437   :  { %v5010_v21 = vpop.f32.mrf.mxu3 }
 0x438   :  { %v5629_v43 = vmax.f32 %v5552_v13, 0.0  ;;  %v5011_v46 = vadd.f32 %v5010_v21, %v4982_v9  ;;  %5208 = vmatmul.bf16.gmra.mxu2 %v11661_v17  ;;  %5264 = vmatmul.bf16.gmra.mxu0 %v11661_v17  ;;  %v12869_v9 = vperm.slane %v8477_v1, 7 }
 0x439   :  { %v5069_v60 = vpop.f32.mrf.mxu1 }
 0x43a   :  { %v5683_v47 = vpack.c.bf16 %v5629_v43, %v5628_v23  ;;  %v5357_v45 = vadd.f32 %v5011_v46, %v13159_v54  ;;  %v5070_v22 = vadd.f32 %v5069_v60, %v5041_v52  ;;  %v13164_v52 = vld [vmem:[#allocation16_spill] sm:$0xff]  ;;  %v5417_v46 = vmul.f32 %v12854_v8, %v12779_v4 }
 0x43b   :  { %v4985_v19 = vpop.f32.mrf.mxu2 }
 0x43c   :  { %5726 = vst [vmem:[#allocation2 + $0xc0] sm:$0xff] %v5683_v47  ;;  %v5460_v30 = vmul.f32 %v12770_v33, %v5357_v45  ;;  %v12838_v14 = vadd.f32 %v5070_v22, %v13160_v27  ;;  %7939 = vmatmul.msk.bf16.gmra.mxu3 %vm1317_vm1, %v11681_v49  ;;  %7943 = vmatmul.msk.bf16.gmra.mxu1 %vm1317_vm1, %v11681_v49  ;;  %v13165_v22 = vld [vmem:[#allocation17_spill] sm:$0xff] }
 0x43d   :  { %v5043_v17 = vpop.f32.mrf.mxu0  ;;  %v5520_v27 = vadd.f32 %v12864_v11, %v5417_v46 }
 0x43e   :  { %v5563_v7 = vadd.f32 %v12774_v34, %v5460_v30 }
 0x43f   :  { %v5013_v18 = vpop.f32.mrf.mxu3 }
 0x440   :  { %v5640_v61 = vmax.f32 %v5563_v7, 0.0  ;;  %v5014_v56 = vadd.f32 %v5013_v18, %v4985_v19  ;;  %v13166_v7 = vld [vmem:[#allocation18_spill] sm:$0xff] }
 0x441   :  { %v5071_v29 = vpop.f32.mrf.mxu1 }
 0x442   :  { %v5689_v53 = vpack.c.bf16 %v5640_v61, %v5639_v40  ;;  %v5368_v38 = vadd.f32 %v5014_v56, %v13161_v31  ;;  %v5597_v61 = vmax.f32 %v5520_v27, 0.0  ;;  %v5428_v56 = vmul.f32 %v12854_v8, %v12790_v12 }
 0x443   :  { %v4987_v59 = vpop.f32.mrf.mxu2 }
 0x444   :  { %5732 = vst [vmem:[#allocation2 + $0xec] sm:$0xff] %v5689_v53  ;;  %v5471_v49 = vmul.f32 %v12770_v33, %v5368_v38  ;;  %v13167_v59 = vld [vmem:[#allocation19_spill] sm:$0xff] }
 0x445   :  { %v5138_v63 = vpop.f32.mrf.mxu0 }
 0x446   :  { %v5574_v28 = vadd.f32 %v12774_v34, %v5471_v49  ;;  %v5406_v34 = vmul.f32 %v12854_v8, %v12758_v50 }
 0x447   :  { %v5015_v32 = vpop.f32.mrf.mxu3 }
 0x448   :  { %v5651_v3 = vmax.f32 %v5574_v28, 0.0  ;;  %v5509_v15 = vadd.f32 %v12864_v11, %v5406_v34  ;;  %v5531_v28 = vadd.f32 %v12864_v11, %v5428_v56  ;;  %v13169_v34 = vld [vmem:[#allocation21_spill] sm:$0xff] }
 0x449   :  { %v5166_v58 = vpop.f32.mrf.mxu1 }
 0x44a   :  { %v5695_v5 = vpack.c.bf16 %v5651_v3, %v5650_v16  ;;  %v5167_v42 = vadd.f32 %v5166_v58, %v5138_v63  ;;  %v5586_v43 = vmax.f32 %v5509_v15, 0.0  ;;  %v13168_v16 = vld [vmem:[#allocation20_spill] sm:$0xff] }
 0x44b   :  { %v5082_v6 = vpop.f32.mrf.mxu2 }
 0x44c   :  { %5738 = vst [vmem:[#allocation2 + $0x118] sm:$0xff] %v5695_v5  ;;  %v12857_v35 = vadd.f32 %v5167_v42, %v13162_v26  ;;  %v5608_v42 = vmax.f32 %v5531_v28, 0.0 }
 0x44d   :  { %v5140_v33 = vpop.f32.mrf.mxu0 }
 0x44f   :  { %v5110_v57 = vpop.f32.mrf.mxu3 }
 0x450   :  { %v5111_v25 = vadd.f32 %v5110_v57, %v5082_v6  ;;  %v5439_v6 = vmul.f32 %v12854_v8, %v12803_v44 }
 0x451   :  { %v5168_v24 = vpop.f32.mrf.mxu1 }
 0x452   :  { %v5304_v48 = vadd.f32 %v5111_v25, %v13163_v51  ;;  %v5169_v20 = vadd.f32 %v5168_v24, %v5140_v33  ;;  %v5542_v51 = vadd.f32 %v12864_v11, %v5439_v6 }
 0x453   :  { %v5084_v0 = vpop.f32.mrf.mxu2 }
 0x454   :  { %v5407_v50 = vmul.f32 %v12866_v37, %v5304_v48  ;;  %v12874_v13 = vadd.f32 %v5169_v20, %v13164_v52  ;;  %v13170_v20 = vld [vmem:[#allocation22_spill] sm:$0xff]  ;;  %v5619_v52 = vmax.f32 %v5542_v51, 0.0 }
 0x455   :  { %v5143_v21 = vpop.f32.mrf.mxu0 }
 0x456   :  { %v5510_v23 = vadd.f32 %v12869_v9, %v5407_v50 }
 0x457   :  { %v5112_v36 = vpop.f32.mrf.mxu3 }
 0x458   :  { %v5587_v60 = vmax.f32 %v5510_v23, 0.0  ;;  %v5113_v47 = vadd.f32 %v5112_v36, %v5084_v0 }
 0x459   :  { %v5171_v54 = vpop.f32.mrf.mxu1 }
 0x45a   :  { %v5660_v45 = vpack.c.bf16 %v5587_v60, %v5586_v43  ;;  %v5315_v19 = vadd.f32 %v5113_v47, %v13165_v22  ;;  %v5172_v2 = vadd.f32 %v5171_v54, %v5143_v21  ;;  %v5450_v21 = vmul.f32 %v12854_v8, %v12814_v55  ;;  %v13171_v60 = vld [vmem:[#allocation23_spill] sm:$0xff] }
 0x45b   :  { %v5087_v30 = vpop.f32.mrf.mxu2 }
 0x45c   :  { %5702 = vst [vmem:[#allocation2 + $0x18] sm:$0xff] %v5660_v45  ;;  %v5418_v17 = vmul.f32 %v12866_v37, %v5315_v19  ;;  %v12883_v18 = vadd.f32 %v5172_v2, %v13166_v7  ;;  %v5553_v22 = vadd.f32 %v12864_v11, %v5450_v21  ;;  %v13172_v2 = vld [vmem:[#allocation24_spill] sm:$0xff] }
 0x45d   :  { %v5145_v40 = vpop.f32.mrf.mxu0 }
 0x45e   :  { %v5521_v41 = vadd.f32 %v12869_v9, %v5418_v17  ;;  %v5630_v7 = vmax.f32 %v5553_v22, 0.0 }
 0x45f   :  { %v5115_v4 = vpop.f32.mrf.mxu3 }
 0x460   :  { %v5598_v29 = vmax.f32 %v5521_v41, 0.0  ;;  %v5116_v53 = vadd.f32 %v5115_v4, %v5087_v30 }
 0x461   :  { %v5173_v31 = vpop.f32.mrf.mxu1 }
 0x462   :  { %v5666_v38 = vpack.c.bf16 %v5598_v29, %v5597_v61  ;;  %v5326_v39 = vadd.f32 %v5116_v53, %v13167_v59  ;;  %v5174_v49 = vadd.f32 %v5173_v31, %v5145_v40  ;;  %v5461_v40 = vmul.f32 %v12854_v8, %v12827_v10  ;;  %v13173_v29 = vld [vmem:[#allocation49_spill] sm:$0xff] }
 0x463   :  { %v5089_v63 = vpop.f32.mrf.mxu2 }
 0x464   :  { %5709 = vst [vmem:[#allocation2 + $0x44] sm:$0xff] %v5666_v38  ;;  %v5429_v32 = vmul.f32 %v12866_v37, %v5326_v39  ;;  %v12892_v3 = vadd.f32 %v5174_v49, %v13168_v16  ;;  %v5564_v59 = vadd.f32 %v12864_v11, %v5461_v40  ;;  %v13174_v49 = vld [vmem:[#allocation25_spill] sm:$0xff] }
 0x465   :  { %v5148_v58 = vpop.f32.mrf.mxu0 }
 0x466   :  { %v5532_v5 = vadd.f32 %v12869_v9, %v5429_v32  ;;  %v5641_v16 = vmax.f32 %v5564_v59, 0.0 }
 0x467   :  { %v5117_v12 = vpop.f32.mrf.mxu3 }
 0x468   :  { %v5609_v62 = vmax.f32 %v5532_v5, 0.0  ;;  %v5118_v26 = vadd.f32 %v5117_v12, %v5089_v63 }
 0x469   :  { %v5176_v33 = vpop.f32.mrf.mxu1 }
 0x46a   :  { %v5672_v57 = vpack.c.bf16 %v5609_v62, %v5608_v42  ;;  %v5337_v1 = vadd.f32 %v5118_v26, %v13169_v34  ;;  %v5177_v25 = vadd.f32 %v5176_v33, %v5148_v58  ;;  %v5472_v58 = vmul.f32 %v12854_v8, %v12838_v14  ;;  %v13175_v62 = vld [vmem:[#allocation26_spill] sm:$0xff]  ;;  %v5375_v14 = vld [vmem:[%s13025_s6 + $0x8] sm:$0x7]  ;;  %s8504_s6 = smov [#allocation2]  }
 0x46b   :  { %v5092_v24 = vpop.f32.mrf.mxu2 }
 0x46c   :  { %5715 = vst [vmem:[#allocation2 + $0x70] sm:$0xff] %v5672_v57  ;;  %v5440_v48 = vmul.f32 %v12866_v37, %v5337_v1  ;;  %v12901_v0 = vadd.f32 %v5177_v25, %v13170_v20  ;;  %v5575_v57 = vadd.f32 %v12864_v11, %v5472_v58  ;;  %v5478_v11 = vld [vmem:[%s13026_s7 + $0x8] sm:$0x7]  ;;  %v13179_v58 = vld [vmem:[#allocation30_spill] sm:$0xff]  ;;  %s5746_s7 = sshll.u32 %s8504_s6, 4  ;;  %s5747_s7 = int_to_ptr.vmem [resolvable:$true] %s5746_s7 }
 0x46d   :  { %v5150_v15 = vpop.f32.mrf.mxu0  ;;  %v12939_v21 = vperm.slane %v5478_v11, 2 }
 0x46e   :  { %v5543_v50 = vadd.f32 %v12869_v9, %v5440_v48  ;;  %v5652_v51 = vmax.f32 %v5575_v57, 0.0 }
 0x46f   :  { %v5120_v44 = vpop.f32.mrf.mxu3 }
 0x470   :  { %v5620_v23 = vmax.f32 %v5543_v50, 0.0  ;;  %v5121_v36 = vadd.f32 %v5120_v44, %v5092_v24  ;;  %v12931_v50 = vperm.slane %v5375_v14, 2  ;;  %v12936_v44 = vperm.slane %v5375_v14, 0 }
 0x471   :  { %v5178_v43 = vpop.f32.mrf.mxu1 }
 0x472   :  { %v5678_v46 = vpack.c.bf16 %v5620_v23, %v5619_v52  ;;  %v5348_v47 = vadd.f32 %v5121_v36, %v13171_v60  ;;  %v5179_v54 = vadd.f32 %v5178_v43, %v5150_v15  ;;  %v12942_v43 = vperm.slane %v5478_v11, 0 }
 0x473   :  { %v5094_v45 = vpop.f32.mrf.mxu2  ;;  %v5408_v60 = vmul.f32 %v12936_v44, %v12857_v35  ;;  %v13178_v35 = vld [vmem:[#allocation29_spill] sm:$0xff] }
 0x474   :  { %5721 = vst [vmem:[#allocation2 + $0x9c] sm:$0xff] %v5678_v46  ;;  %v5451_v19 = vmul.f32 %v12866_v37, %v5348_v47  ;;  %v12910_v30 = vadd.f32 %v5179_v54, %v13172_v2  ;;  %v13177_v2 = vld [vmem:[#allocation28_spill] sm:$0xff] }
 0x475   :  { %v5153_v27 = vpop.f32.mrf.mxu0  ;;  %v5511_v40 = vadd.f32 %v12942_v43, %v5408_v60 }
 0x476   :  { %v5554_v17 = vadd.f32 %v12869_v9, %v5451_v19 }
 0x477   :  { %v5122_v55 = vpop.f32.mrf.mxu3  ;;  %v5588_v59 = vmax.f32 %v5511_v40, 0.0 }
 0x478   :  { %v5631_v41 = vmax.f32 %v5554_v17, 0.0  ;;  %v5123_v4 = vadd.f32 %v5122_v55, %v5094_v45  ;;  %v12947_v45 = vperm.slane %v5375_v14, 1  ;;  %v12950_v17 = vperm.slane %v5478_v11, 1 }
 0x479   :  { %v5181_v61 = vpop.f32.mrf.mxu1 }
 0x47a   :  { %v5684_v56 = vpack.c.bf16 %v5631_v41, %v5630_v7  ;;  %v5359_v53 = vadd.f32 %v5123_v4, %v13173_v29  ;;  %v5182_v31 = vadd.f32 %v5181_v61, %v5153_v27 }
 0x47b   :  { %v5097_v38 = vpop.f32.mrf.mxu2 }
 0x47c   :  { %5727 = vst [vmem:[#allocation2 + $0xc8] sm:$0xff] %v5684_v56  ;;  %v5462_v39 = vmul.f32 %v12866_v37, %v5359_v53  ;;  %v12919_v63 = vadd.f32 %v5182_v31, %v13174_v49  ;;  %v5419_v31 = vmul.f32 %v12936_v44, %v12874_v13  ;;  %v13180_v13 = vld [vmem:[#allocation31_spill] sm:$0xff] }
 0x47d   :  { %v5155_v28 = vpop.f32.mrf.mxu0 }
 0x47e   :  { %v5565_v32 = vadd.f32 %v12869_v9, %v5462_v39 }
 0x47f   :  { %v5125_v10 = vpop.f32.mrf.mxu3 }
 0x480   :  { %v5642_v5 = vmax.f32 %v5565_v32, 0.0  ;;  %v5126_v12 = vadd.f32 %v5125_v10, %v5097_v38 }
 0x481   :  { %v5183_v42 = vpop.f32.mrf.mxu1 }
 0x482   :  { %v5690_v6 = vpack.c.bf16 %v5642_v5, %v5641_v16  ;;  %v5370_v26 = vadd.f32 %v5126_v12, %v13175_v62  ;;  %v5522_v42 = vadd.f32 %v12942_v43, %v5419_v31 }
 0x483   :  { %v5099_v33 = vpop.f32.mrf.mxu2 }
 0x484   :  { %5733 = vst [vmem:[#allocation2 + $0xf4] sm:$0xff] %v5690_v6  ;;  %v5473_v34 = vmul.f32 %v12866_v37, %v5370_v26 }
 0x485   :  { %v5250_v1 = vpop.f32.mrf.mxu0 }
 0x486   :  { %v5576_v25 = vadd.f32 %v12869_v9, %v5473_v34  ;;  %v13176_v9 = vld [vmem:[#allocation27_spill] sm:$0xff] }
 0x487   :  { %v5127_v24 = vpop.f32.mrf.mxu3 }
 0x488   :  { %v5653_v48 = vmax.f32 %v5576_v25, 0.0  ;;  %v5599_v25 = vmax.f32 %v5522_v42, 0.0 }
 0x489   :  { %v5278_v8 = vpop.f32.mrf.mxu1 }
 0x48a   :  { %v5696_v20 = vpack.c.bf16 %v5653_v48, %v5652_v51  ;;  %v5279_v15 = vadd.f32 %v5278_v8, %v5250_v1  ;;  %v5430_v51 = vmul.f32 %v12936_v44, %v12883_v18 }
 0x48b   :  { %v5194_v37 = vpop.f32.mrf.mxu2 }
 0x48c   :  { %5739 = vst [vmem:[#allocation2 + $0x120] sm:$0xff] %v5696_v20  ;;  %v5307_v52 = vadd.f32 %v5279_v15, %v13176_v9 }
 0x48d   :  { %v5252_v23 = vpop.f32.mrf.mxu0 }
 0x48e   :  { %v5410_v36 = vmul.f32 %v12931_v50, %v5307_v52 }
 0x48f   :  { %v5222_v46 = vpop.f32.mrf.mxu3 }
 0x490   :  { %v5513_v47 = vadd.f32 %v12939_v21, %v5410_v36  ;;  %v5223_v54 = vadd.f32 %v5222_v46, %v5194_v37  ;;  %v13181_v37 = vld [vmem:[#allocation32_spill] sm:$0xff]  ;;  %v5533_v36 = vadd.f32 %v12942_v43, %v5430_v51 }
 0x491   :  { %v5280_v22 = vpop.f32.mrf.mxu1 }
 0x492   :  { %v5590_v19 = vmax.f32 %v5513_v47, 0.0  ;;  %v5306_v27 = vadd.f32 %v5223_v54, %v13177_v2  ;;  %v5281_v55 = vadd.f32 %v5280_v22, %v5252_v23  ;;  %v13182_v47 = vld [vmem:[#allocation33_spill] sm:$0xff]  ;;  %v5441_v2 = vmul.f32 %v12936_v44, %v12892_v3  ;;  %v13184_v3 = vld [vmem:[#allocation35_spill] sm:$0xff] }
 0x493   :  { %v5196_v7 = vpop.f32.mrf.mxu2 }
 0x494   :  { %v5662_v41 = vpack.c.bf16 %v5590_v19, %v5590_v19  ;;  %v5409_v4 = vmul.f32 %v12947_v45, %v5306_v27  ;;  %v5318_v61 = vadd.f32 %v5281_v55, %v13178_v35  ;;  %v5610_v55 = vmax.f32 %v5533_v36, 0.0 }
 0x495   :  { %v5255_v56 = vpop.f32.mrf.mxu0  ;;  %v5544_v31 = vadd.f32 %v12942_v43, %v5441_v2 }
 0x496   :  { %5705 = vst.msk [vmem:[#allocation2 + $0x28] sm:$0xf] %vm5704_vm2, %v5662_v41  ;;  %v5512_v29 = vadd.f32 %v12950_v17, %v5409_v4  ;;  %v5421_v53 = vmul.f32 %v12931_v50, %v5318_v61 }
 0x497   :  { %v5224_v38 = vpop.f32.mrf.mxu3 }
 0x498   :  { %v5589_v39 = vmax.f32 %v5512_v29, 0.0  ;;  %v5524_v49 = vadd.f32 %v12939_v21, %v5421_v53  ;;  %v5225_v28 = vadd.f32 %v5224_v38, %v5196_v7 }
 0x499   :  { %v5283_v32 = vpop.f32.mrf.mxu1 }
 0x49a   :  { %v5661_v10 = vpack.c.bf16 %v5589_v39, %v5588_v59  ;;  %v5601_v16 = vmax.f32 %v5524_v49, 0.0  ;;  %v5317_v5 = vadd.f32 %v5225_v28, %v13179_v58  ;;  %v5284_v12 = vadd.f32 %v5283_v32, %v5255_v56  ;;  %v13183_v56 = vld [vmem:[#allocation34_spill] sm:$0xff] }
 0x49b   :  { %v5199_v6 = vpop.f32.mrf.mxu2 }
 0x49c   :  { %5703 = vst [vmem:[#allocation2 + $0x20] sm:$0xff] %v5661_v10  ;;  %v5668_v62 = vpack.c.bf16 %v5601_v16, %v5601_v16  ;;  %v5420_v26 = vmul.f32 %v12947_v45, %v5317_v5  ;;  %v5329_v33 = vadd.f32 %v5284_v12, %v13180_v13  ;;  %v5621_v16 = vmax.f32 %v5544_v31, 0.0 }
 0x49d   :  { %v5257_v57 = vpop.f32.mrf.mxu0  ;;  %v5452_v5 = vmul.f32 %v12936_v44, %v12901_v0 }
 0x49e   :  { %5711 = vst.msk [vmem:[#allocation2 + $0x54] sm:$0xf] %vm5704_vm2, %v5668_v62  ;;  %v5523_v34 = vadd.f32 %v12950_v17, %v5420_v26  ;;  %v5432_v1 = vmul.f32 %v12931_v50, %v5329_v33  ;;  %v13185_v33 = vld [vmem:[#allocation50_spill] sm:$0xff] }
 0x49f   :  { %v5227_v24 = vpop.f32.mrf.mxu3 }
 0x4a0   :  { %v5600_v48 = vmax.f32 %v5523_v34, 0.0  ;;  %v5535_v14 = vadd.f32 %v12939_v21, %v5432_v1  ;;  %v5228_v8 = vadd.f32 %v5227_v24, %v5199_v6 }
 0x4a1   :  { %v5285_v20 = vpop.f32.mrf.mxu1 }
 0x4a2   :  { %v5667_v15 = vpack.c.bf16 %v5600_v48, %v5599_v25  ;;  %v5612_v11 = vmax.f32 %v5535_v14, 0.0  ;;  %v5328_v9 = vadd.f32 %v5228_v8, %v13181_v37  ;;  %v5286_v52 = vadd.f32 %v5285_v20, %v5257_v57  ;;  %v13186_v48 = vld [vmem:[#allocation36_spill] sm:$0xff] }
 0x4a3   :  { %v5201_v23 = vpop.f32.mrf.mxu2  ;;  %v5555_v25 = vadd.f32 %v12942_v43, %v5452_v5 }
 0x4a4   :  { %5710 = vst [vmem:[#allocation2 + $0x4c] sm:$0xff] %v5667_v15  ;;  %v5674_v46 = vpack.c.bf16 %v5612_v11, %v5612_v11  ;;  %v5431_v60 = vmul.f32 %v12947_v45, %v5328_v9  ;;  %v5340_v54 = vadd.f32 %v5286_v52, %v13182_v47  ;;  %v5463_v15 = vmul.f32 %v12936_v44, %v12910_v30  ;;  %v13187_v47 = vld [vmem:[#allocation37_spill] sm:$0xff]  ;;  %v13188_v30 = vld [vmem:[#allocation38_spill] sm:$0xff] }
 0x4a5   :  { %v5260_v18 = vpop.f32.mrf.mxu0  ;;  %v5632_v37 = vmax.f32 %v5555_v25, 0.0 }
 0x4a6   :  { %5717 = vst.msk [vmem:[#allocation2 + $0x80] sm:$0xf] %vm5704_vm2, %v5674_v46  ;;  %v5534_v22 = vadd.f32 %v12950_v17, %v5431_v60  ;;  %v5443_v19 = vmul.f32 %v12931_v50, %v5340_v54 }
 0x4a7   :  { %v5229_v27 = vpop.f32.mrf.mxu3 }
 0x4a8   :  { %v5611_v7 = vmax.f32 %v5534_v22, 0.0  ;;  %v5546_v40 = vadd.f32 %v12939_v21, %v5443_v19  ;;  %v5230_v41 = vadd.f32 %v5229_v27, %v5201_v23  ;;  %v5566_v22 = vadd.f32 %v12942_v43, %v5463_v15 }
 0x4a9   :  { %v5288_v4 = vpop.f32.mrf.mxu1 }
 0x4aa   :  { %v5673_v35 = vpack.c.bf16 %v5611_v7, %v5610_v55  ;;  %v5623_v61 = vmax.f32 %v5546_v40, 0.0  ;;  %v5339_v29 = vadd.f32 %v5230_v41, %v13183_v56  ;;  %v5289_v53 = vadd.f32 %v5288_v4, %v5260_v18 }
 0x4ab   :  { %v5204_v38 = vpop.f32.mrf.mxu2  ;;  %v5643_v4 = vmax.f32 %v5566_v22, 0.0 }
 0x4ac   :  { %5716 = vst [vmem:[#allocation2 + $0x78] sm:$0xff] %v5673_v35  ;;  %v5680_v59 = vpack.c.bf16 %v5623_v61, %v5623_v61  ;;  %v5442_v39 = vmul.f32 %v12947_v45, %v5339_v29  ;;  %v5351_v49 = vadd.f32 %v5289_v53, %v13184_v3  ;;  %v5474_v61 = vmul.f32 %v12936_v44, %v12919_v63 }
 0x4ad   :  { %v5262_v28 = vpop.f32.mrf.mxu0 }
 0x4ae   :  { %5723 = vst.msk [vmem:[#allocation2 + $0xac] sm:$0xf] %vm5704_vm2, %v5680_v59  ;;  %v5545_v32 = vadd.f32 %v12950_v17, %v5442_v39  ;;  %v5454_v10 = vmul.f32 %v12931_v50, %v5351_v49  ;;  %v13189_v39 = vld [vmem:[#allocation51_spill] sm:$0xff] }
 0x4af   :  { %v5232_v58 = vpop.f32.mrf.mxu3 }
 0x4b0   :  { %v5622_v12 = vmax.f32 %v5545_v32, 0.0  ;;  %v5557_v42 = vadd.f32 %v12939_v21, %v5454_v10  ;;  %v5233_v6 = vadd.f32 %v5232_v58, %v5204_v38 }
 0x4b1   :  { %v5290_v62 = vpop.f32.mrf.mxu1 }
 0x4b2   :  { %v5679_v26 = vpack.c.bf16 %v5622_v12, %v5621_v16  ;;  %v5634_v13 = vmax.f32 %v5557_v42, 0.0  ;;  %v5350_v57 = vadd.f32 %v5233_v6, %v13185_v33  ;;  %v5291_v34 = vadd.f32 %v5290_v62, %v5262_v28 }
 0x4b3   :  { %v5206_v1 = vpop.f32.mrf.mxu2  ;;  %v5577_v28 = vadd.f32 %v12942_v43, %v5474_v61 }
 0x4b4   :  { %5722 = vst [vmem:[#allocation2 + $0xa4] sm:$0xff] %v5679_v26  ;;  %v5686_v24 = vpack.c.bf16 %v5634_v13, %v5634_v13  ;;  %v5453_v51 = vmul.f32 %v12947_v45, %v5350_v57  ;;  %v5362_v14 = vadd.f32 %v5291_v34, %v13186_v48 }
 0x4b5   :  { %v5265_v0 = vpop.f32.mrf.mxu0 }
 0x4b6   :  { %5729 = vst.msk [vmem:[#allocation2 + $0xd8] sm:$0xf] %vm5704_vm2, %v5686_v24  ;;  %v5556_v8 = vadd.f32 %v12950_v17, %v5453_v51  ;;  %v5465_v20 = vmul.f32 %v12931_v50, %v5362_v14 }
 0x4b7   :  { %v5234_v11 = vpop.f32.mrf.mxu3 }
 0x4b8   :  { %v5633_v9 = vmax.f32 %v5556_v8, 0.0  ;;  %v5568_v52 = vadd.f32 %v12939_v21, %v5465_v20  ;;  %v5235_v23 = vadd.f32 %v5234_v11, %v5206_v1 }
 0x4b9   :  { %v5293_v36 = vpop.f32.mrf.mxu1 }
 0x4ba   :  { %v5685_v46 = vpack.c.bf16 %v5633_v9, %v5632_v37  ;;  %v5645_v60 = vmax.f32 %v5568_v52, 0.0  ;;  %v5361_v54 = vadd.f32 %v5235_v23, %v13187_v47  ;;  %v5294_v18 = vadd.f32 %v5293_v36, %v5265_v0 }
 0x4bb   :  { %v5209_v19 = vpop.f32.mrf.mxu2 }
 0x4bc   :  { %5728 = vst [vmem:[#allocation2 + $0xd0] sm:$0xff] %v5685_v46  ;;  %v5692_v2 = vpack.c.bf16 %v5645_v60, %v5645_v60  ;;  %v5464_v27 = vmul.f32 %v12947_v45, %v5361_v54  ;;  %v5373_v55 = vadd.f32 %v5294_v18, %v13188_v30 }
 0x4bd   :  { %v5267_v7 = vpop.f32.mrf.mxu0 }
 0x4be   :  { %5735 = vst.msk [vmem:[#allocation2 + $0x104] sm:$0xf] %vm5704_vm2, %v5692_v2  ;;  %v5567_v40 = vadd.f32 %v12950_v17, %v5464_v27  ;;  %v5476_v41 = vmul.f32 %v12931_v50, %v5373_v55 }
 0x4bf   :  { %v5237_v35 = vpop.f32.mrf.mxu3 }
 0x4c0   :  { %v5644_v56 = vmax.f32 %v5567_v40, 0.0  ;;  %v5579_v29 = vadd.f32 %v12939_v21, %v5476_v41  ;;  %v5238_v53 = vadd.f32 %v5237_v35, %v5209_v19  ;;  %v5654_v21 = vmax.f32 %v5577_v28, 0.0 }
 0x4c1   :  { %v5295_v31 = vpop.f32.mrf.mxu1 }
 0x4c2   :  { %v5691_v38 = vpack.c.bf16 %v5644_v56, %v5643_v4  ;;  %v5656_v59 = vmax.f32 %v5579_v29, 0.0  ;;  %v5372_v3 = vadd.f32 %v5238_v53, %v13189_v39 }
 0x4c3   :  { %v5211_v49 = vpop.f32.mrf.mxu2 }
 0x4c4   :  { %5734 = vst [vmem:[#allocation2 + $0xfc] sm:$0xff] %v5691_v38  ;;  %v5698_v32 = vpack.c.bf16 %v5656_v59, %v5656_v59  ;;  %v5475_v50 = vmul.f32 %v12947_v45, %v5372_v3 }
 0x4c6   :  { %5741 = vst.msk [vmem:[#allocation2 + $0x130] sm:$0xf] %vm5704_vm2, %v5698_v32  ;;  %v5578_v63 = vadd.f32 %v12950_v17, %v5475_v50 }
 0x4c7   :  { %v5239_v44 = vpop.f32.mrf.mxu3 }
 0x4c8   :  { %v5655_v10 = vmax.f32 %v5578_v63, 0.0 }
 0x4ca   :  { %v5697_v43 = vpack.c.bf16 %v5655_v10, %v5654_v21 }
 0x4cc   :  { %5740 = vst [vmem:[#allocation2 + $0x128] sm:$0xff] %v5697_v43 }
 0x4cd   :  { %5754 = dma.vmem_to_hbm [thread:$0]  %s5747_s7, 4928, %s5749_s20, [#allocation3], %s8505_s21, %s8505_s21, %s8506_s22  }
 0x4ce   :  { %8502 = dma.done.wait [#allocation3], 4928  }
 0x4cf   :  { %8503 = vsyncadd [#allocation3], 4294962368 }
 0x4d0   :  { %5759 = vsyncpa [#allocation3], 1 }

</bundles_post_ra>
